<compile_context>
chip_gen: v7x
topology: tpu7x:2x2x1
jax: 0.10.0
libtpu: 0.0.40
codegen_flags: <defaults>
</compile_context>

<pallas_src>
import numpy as np
import jax
import jax.numpy as jnp
from jax import lax
from jax.experimental import pallas as pl
from jax.experimental.pallas import tpu as pltpu

PAD = 3                    # max kernel radius (7 // 2); shared padding for all three convs
NSHIFT = 2 * PAD + 1       # 7 column-shifted copies cover every dx offset of every kernel


def _make_ppeg_kernel(H, W, CT, RS):
    """Kernel body for one (batch, channel-tile) grid step."""
    HW = H * W
    Hp, Wp = H + 2 * PAD, W + 2 * PAD
    n_full = H // RS
    rem = H % RS

    def kernel(x_ref, w7_ref, w5_ref, w3_ref, b_ref, o_ref, pad_ref, shift_ref):
        # ---- cls token: pass through untouched --------------------------------
        o_ref[pl.ds(0, 1), :] = x_ref[pl.ds(0, 1), :]

        # ---- zero-padded image: memset the halo only (interior is overwritten) -
        zrow = jnp.zeros((PAD, Wp, CT), jnp.float32)
        zcol = jnp.zeros((H, PAD, CT), jnp.float32)
        pad_ref[pl.ds(0, PAD), :, :] = zrow
        pad_ref[pl.ds(PAD + H, PAD), :, :] = zrow
        pad_ref[pl.ds(PAD, H), pl.ds(0, PAD), :] = zcol
        pad_ref[pl.ds(PAD, H), pl.ds(PAD + W, PAD), :] = zcol
        feat = x_ref[pl.ds(1, HW), :].astype(jnp.float32).reshape(H, W, CT)
        pad_ref[pl.ds(PAD, H), pl.ds(PAD, W), :] = feat

        # ---- 7 column-shifted copies (the only misaligned W slices per step) ---
        # shift_ref rows [s*Hp, (s+1)*Hp) hold pad[:, s:s+W, :].
        for s in range(NSHIFT):
            shift_ref[pl.ds(s * Hp, Hp), :, :] = pad_ref[:, pl.ds(s, W), :]

        bias = b_ref[...]              # (1, CT): b7 + b5 + b3 pre-summed by wrapper

        def do_strip(r0, rows):
            # residual: img[r0+y, x, c] == pad[PAD + r0 + y, PAD + x, c]
            acc = shift_ref[pl.ds(PAD * Hp + PAD + r0, rows), :, :] + bias
            # 83-tap depthwise shift-and-accumulate; every window read is an
            # aligned leading-dim slice of a pre-shifted copy (pure VPU FMAs).
            for w_ref, k in ((w7_ref, 7), (w5_ref, 5), (w3_ref, 3)):
                base = PAD - k // 2
                tap = 0
                for dy in range(k):
                    row0 = (base + dy) + r0
                    for dx in range(k):
                        s = base + dx
                        win = shift_ref[pl.ds(s * Hp + row0, rows), :, :]
                        # keep the (1, CT) weight-row reads as tiny per-tap vlds:
                        # 83 resident weight vregs would force spills instead.
                        acc = acc + win * w_ref[pl.ds(tap, 1), :]
                        tap += 1
            o_ref[pl.ds(1 + r0 * W, rows * W), :] = (
                acc.reshape(rows * W, CT).astype(o_ref.dtype))

        # Rolled loop over full strips keeps vreg live ranges & compile time bounded.
        @pl.loop(0, n_full)
        def _(i):
            do_strip(i * RS, RS)

        if rem:                        # static remainder strip (H % RS rows)
            do_strip(n_full * RS, rem)

    return kernel


def ppeg_forward(x, w7, w5, w3, b7, b5, b3, *, H, W):
    """x: (B, 1+H*W, C); wK: (K*K, C); bK: (C,).  Returns (B, 1+H*W, C)."""
    B, N, C = x.shape
    assert N == 1 + H * W

    # Channel tiling: channels ride the 128-lane axis.
    ct = 128 if C % 128 == 0 else C
    n_ct = C // ct

    # Row-strip size: keep each strip accumulator around 8 vregs (8K f32 elements).
    rs = max(1, min(H, 8192 // (W * ct)))

    b_sum = (b7 + b5 + b3).reshape(1, C).astype(jnp.float32)
    w7 = w7.astype(jnp.float32)
    w5 = w5.astype(jnp.float32)
    w3 = w3.astype(jnp.float32)
    Hp, Wp = H + 2 * PAD, W + 2 * PAD

    kernel = _make_ppeg_kernel(H, W, ct, rs)
    return pl.pallas_call(
        kernel,
        out_shape=jax.ShapeDtypeStruct((B, N, C), x.dtype),
        grid=(B, n_ct),
        in_specs=[
            pl.BlockSpec((None, N, ct), lambda b, c: (b, 0, c)),   # tokens for (b, c-tile)
            pl.BlockSpec((49, ct), lambda b, c: (0, c)),           # 7x7 depthwise weights
            pl.BlockSpec((25, ct), lambda b, c: (0, c)),           # 5x5 depthwise weights
            pl.BlockSpec((9, ct), lambda b, c: (0, c)),            # 3x3 depthwise weights
            pl.BlockSpec((1, ct), lambda b, c: (0, c)),            # summed biases
        ],
        out_specs=pl.BlockSpec((None, N, ct), lambda b, c: (b, 0, c)),
        scratch_shapes=[
            pltpu.VMEM((Hp, Wp, ct), jnp.float32),                 # zero-padded image
            pltpu.VMEM((NSHIFT * Hp, W, ct), jnp.float32),         # 7 column-shifted copies
        ],
        compiler_params=pltpu.CompilerParams(
            dimension_semantics=("parallel", "parallel"),
            vmem_limit_bytes=64 * 1024 * 1024,                     # fits v7x physical VMEM
        ),
    )(x, w7, w5, w3, b_sum)


def ppeg_reference(x, w7, w5, w3, b7, b5, b3, H, W):
    """Pure-JAX reference (XLA grouped conv) matching the PyTorch module."""
    B, N, C = x.shape
    cls_tok = x[:, :1, :]
    img = x[:, 1:, :].reshape(B, H, W, C)

    def dwconv(img, w_flat, b, k):
        w = w_flat.reshape(k, k, 1, C)                             # HWIO depthwise kernel
        y = lax.conv_general_dilated(
            img, w, window_strides=(1, 1), padding="SAME",
            dimension_numbers=("NHWC", "HWIO", "NHWC"),
            feature_group_count=C, precision=lax.Precision.HIGHEST)
        return y + b.reshape(1, 1, 1, C)

    y = img + dwconv(img, w7, b7, 7) + dwconv(img, w5, b5, 5) + dwconv(img, w3, b3, 3)
    return jnp.concatenate([cls_tok, y.reshape(B, H * W, C)], axis=1)


if __name__ == "__main__":
    key = jax.random.PRNGKey(0)
    B, C, H, W = 2, 128, 8, 8          # small shapes; C lane-aligned (PPEG default dim=512)
    N = 1 + H * W

    ks = jax.random.split(key, 4)
    x = jax.random.normal(ks[0], (B, N, C), jnp.float32)

    def dw_init(k, ksize):
        kw, kb = jax.random.split(k)
        lim = 1.0 / float(np.sqrt(ksize * ksize))                  # fan_in = 1*k*k (depthwise)
        w = jax.random.uniform(kw, (ksize * ksize, C), jnp.float32, -lim, lim)
        b = jax.random.uniform(kb, (C,), jnp.float32, -lim, lim)
        return w, b

    w7, b7 = dw_init(ks[1], 7)
    w5, b5 = dw_init(ks[2], 5)
    w3, b3 = dw_init(ks[3], 3)

    fwd = jax.jit(ppeg_forward, static_argnames=("H", "W"))
    out = jax.block_until_ready(fwd(x, w7, w5, w3, b7, b5, b3, H=H, W=W))

    ref = ppeg_reference(x, w7, w5, w3, b7, b5, b3, H, W)
    assert out.shape == (B, N, C)
    assert bool(jnp.all(jnp.isfinite(out)))
    max_err = float(jnp.max(jnp.abs(out - ref)))
    assert max_err < 1e-4, f"mismatch vs reference: max abs err {max_err}"
    print("KERNEL_OK")
</pallas_src>

<mosaic_0001>
module attributes {stable_mosaic.version = 11 : i64} {
  func.func @kernel(%arg0: i32, %arg1: i32, %arg2: memref<1x65x128xf32, #tpu.memory_space<vmem>>, %arg3: memref<49x128xf32, #tpu.memory_space<vmem>>, %arg4: memref<25x128xf32, #tpu.memory_space<vmem>>, %arg5: memref<9x128xf32, #tpu.memory_space<vmem>>, %arg6: memref<1x128xf32, #tpu.memory_space<vmem>>, %arg7: memref<1x65x128xf32, #tpu.memory_space<vmem>>, %arg8: memref<14x14x128xf32, #tpu.memory_space<vmem>>, %arg9: memref<98x8x128xf32, #tpu.memory_space<vmem>>) attributes {dimension_semantics = [#tpu.dimension_semantics<parallel>, #tpu.dimension_semantics<parallel>], iteration_bounds = array<i64: 2, 1>, scalar_prefetch = 0 : i64, scratch_operands = 2 : i64, tpu.core_type = #tpu.core_type<tc>, window_params = [{transform_indices = @transform_0, window_bounds = array<i64: 1, 65, 128>}, {transform_indices = @transform_1, window_bounds = array<i64: 49, 128>}, {transform_indices = @transform_2, window_bounds = array<i64: 25, 128>}, {transform_indices = @transform_3, window_bounds = array<i64: 9, 128>}, {transform_indices = @transform_4, window_bounds = array<i64: 1, 128>}, {transform_indices = @transform_5, window_bounds = array<i64: 1, 65, 128>}]} {
    %c0 = arith.constant 0 : index
    %c0_0 = arith.constant 0 : index
    %c0_1 = arith.constant 0 : index
    %0 = vector.load %arg2[%c0, %c0_0, %c0_1] : memref<1x65x128xf32, #tpu.memory_space<vmem>>, vector<1x1x128xf32>
    %1 = vector.shape_cast %0 : vector<1x1x128xf32> to vector<1x128xf32>
    %c0_2 = arith.constant 0 : index
    %c0_3 = arith.constant 0 : index
    %c0_4 = arith.constant 0 : index
    %2 = vector.load %arg7[%c0_2, %c0_3, %c0_4] : memref<1x65x128xf32, #tpu.memory_space<vmem>>, vector<1x1x128xf32>
    %3 = vector.shape_cast %2 : vector<1x1x128xf32> to vector<1x128xf32>
    %4 = vector.shape_cast %1 : vector<1x128xf32> to vector<1x1x128xf32>
    tpu.vector_store %arg7[%c0_2, %c0_3, %c0_4], %4 {strides = array<i32>} : memref<1x65x128xf32, #tpu.memory_space<vmem>>, vector<1x1x128xf32>,
    %cst = arith.constant 0.000000e+00 : f32
    %5 = vector.broadcast %cst : f32 to vector<3x14x128xf32>
    %cst_5 = arith.constant 0.000000e+00 : f32
    %6 = vector.broadcast %cst_5 : f32 to vector<8x3x128xf32>
    %c0_6 = arith.constant 0 : index
    %c0_7 = arith.constant 0 : index
    %c0_8 = arith.constant 0 : index
    %7 = vector.load %arg8[%c0_6, %c0_7, %c0_8] : memref<14x14x128xf32, #tpu.memory_space<vmem>>, vector<3x14x128xf32>
    tpu.vector_store %arg8[%c0_6, %c0_7, %c0_8], %5 {strides = array<i32>} : memref<14x14x128xf32, #tpu.memory_space<vmem>>, vector<3x14x128xf32>,
    %c11 = arith.constant 11 : index
    %c0_9 = arith.constant 0 : index
    %c0_10 = arith.constant 0 : index
    %8 = vector.load %arg8[%c11, %c0_9, %c0_10] : memref<14x14x128xf32, #tpu.memory_space<vmem>>, vector<3x14x128xf32>
    tpu.vector_store %arg8[%c11, %c0_9, %c0_10], %5 {strides = array<i32>} : memref<14x14x128xf32, #tpu.memory_space<vmem>>, vector<3x14x128xf32>,
    %c3 = arith.constant 3 : index
    %c0_11 = arith.constant 0 : index
    %c0_12 = arith.constant 0 : index
    %9 = vector.load %arg8[%c3, %c0_11, %c0_12] : memref<14x14x128xf32, #tpu.memory_space<vmem>>, vector<8x3x128xf32>
    tpu.vector_store %arg8[%c3, %c0_11, %c0_12], %6 {strides = array<i32>} : memref<14x14x128xf32, #tpu.memory_space<vmem>>, vector<8x3x128xf32>,
    %c3_13 = arith.constant 3 : index
    %c11_14 = arith.constant 11 : index
    %c0_15 = arith.constant 0 : index
    %10 = vector.load %arg8[%c3_13, %c11_14, %c0_15] : memref<14x14x128xf32, #tpu.memory_space<vmem>>, vector<8x3x128xf32>
    tpu.vector_store %arg8[%c3_13, %c11_14, %c0_15], %6 {strides = array<i32>} : memref<14x14x128xf32, #tpu.memory_space<vmem>>, vector<8x3x128xf32>,
    %c0_16 = arith.constant 0 : index
    %c1 = arith.constant 1 : index
    %c0_17 = arith.constant 0 : index
    %11 = vector.load %arg2[%c0_16, %c1, %c0_17] : memref<1x65x128xf32, #tpu.memory_space<vmem>>, vector<1x64x128xf32>
    %12 = vector.shape_cast %11 : vector<1x64x128xf32> to vector<64x128xf32>
    %13 = vector.shape_cast %12 : vector<64x128xf32> to vector<8x8x128xf32>
    %c3_18 = arith.constant 3 : index
    %c3_19 = arith.constant 3 : index
    %c0_20 = arith.constant 0 : index
    %14 = vector.load %arg8[%c3_18, %c3_19, %c0_20] : memref<14x14x128xf32, #tpu.memory_space<vmem>>, vector<8x8x128xf32>
    tpu.vector_store %arg8[%c3_18, %c3_19, %c0_20], %13 {strides = array<i32>} : memref<14x14x128xf32, #tpu.memory_space<vmem>>, vector<8x8x128xf32>,
    %c0_21 = arith.constant 0 : index
    %c0_22 = arith.constant 0 : index
    %c0_23 = arith.constant 0 : index
    %15 = vector.load %arg8[%c0_21, %c0_22, %c0_23] : memref<14x14x128xf32, #tpu.memory_space<vmem>>, vector<14x8x128xf32>
    %c0_24 = arith.constant 0 : index
    %c0_25 = arith.constant 0 : index
    %c0_26 = arith.constant 0 : index
    %16 = vector.load %arg9[%c0_24, %c0_25, %c0_26] : memref<98x8x128xf32, #tpu.memory_space<vmem>>, vector<14x8x128xf32>
    tpu.vector_store %arg9[%c0_24, %c0_25, %c0_26], %15 {strides = array<i32>} : memref<98x8x128xf32, #tpu.memory_space<vmem>>, vector<14x8x128xf32>,
    %c0_27 = arith.constant 0 : index
    %c1_28 = arith.constant 1 : index
    %c0_29 = arith.constant 0 : index
    %17 = vector.load %arg8[%c0_27, %c1_28, %c0_29] : memref<14x14x128xf32, #tpu.memory_space<vmem>>, vector<14x8x128xf32>
    %c14 = arith.constant 14 : index
    %c0_30 = arith.constant 0 : index
    %c0_31 = arith.constant 0 : index
    %18 = vector.load %arg9[%c14, %c0_30, %c0_31] : memref<98x8x128xf32, #tpu.memory_space<vmem>>, vector<14x8x128xf32>
    tpu.vector_store %arg9[%c14, %c0_30, %c0_31], %17 {strides = array<i32>} : memref<98x8x128xf32, #tpu.memory_space<vmem>>, vector<14x8x128xf32>,
    %c0_32 = arith.constant 0 : index
    %c2 = arith.constant 2 : index
    %c0_33 = arith.constant 0 : index
    %19 = vector.load %arg8[%c0_32, %c2, %c0_33] : memref<14x14x128xf32, #tpu.memory_space<vmem>>, vector<14x8x128xf32>
    %c28 = arith.constant 28 : index
    %c0_34 = arith.constant 0 : index
    %c0_35 = arith.constant 0 : index
    %20 = vector.load %arg9[%c28, %c0_34, %c0_35] : memref<98x8x128xf32, #tpu.memory_space<vmem>>, vector<14x8x128xf32>
    tpu.vector_store %arg9[%c28, %c0_34, %c0_35], %19 {strides = array<i32>} : memref<98x8x128xf32, #tpu.memory_space<vmem>>, vector<14x8x128xf32>,
    %c0_36 = arith.constant 0 : index
    %c3_37 = arith.constant 3 : index
    %c0_38 = arith.constant 0 : index
    %21 = vector.load %arg8[%c0_36, %c3_37, %c0_38] : memref<14x14x128xf32, #tpu.memory_space<vmem>>, vector<14x8x128xf32>
    %c42 = arith.constant 42 : index
    %c0_39 = arith.constant 0 : index
    %c0_40 = arith.constant 0 : index
    %22 = vector.load %arg9[%c42, %c0_39, %c0_40] : memref<98x8x128xf32, #tpu.memory_space<vmem>>, vector<14x8x128xf32>
    tpu.vector_store %arg9[%c42, %c0_39, %c0_40], %21 {strides = array<i32>} : memref<98x8x128xf32, #tpu.memory_space<vmem>>, vector<14x8x128xf32>,
    %c0_41 = arith.constant 0 : index
    %c4 = arith.constant 4 : index
    %c0_42 = arith.constant 0 : index
    %23 = vector.load %arg8[%c0_41, %c4, %c0_42] : memref<14x14x128xf32, #tpu.memory_space<vmem>>, vector<14x8x128xf32>
    %c56 = arith.constant 56 : index
    %c0_43 = arith.constant 0 : index
    %c0_44 = arith.constant 0 : index
    %24 = vector.load %arg9[%c56, %c0_43, %c0_44] : memref<98x8x128xf32, #tpu.memory_space<vmem>>, vector<14x8x128xf32>
    tpu.vector_store %arg9[%c56, %c0_43, %c0_44], %23 {strides = array<i32>} : memref<98x8x128xf32, #tpu.memory_space<vmem>>, vector<14x8x128xf32>,
    %c0_45 = arith.constant 0 : index
    %c5 = arith.constant 5 : index
    %c0_46 = arith.constant 0 : index
    %25 = vector.load %arg8[%c0_45, %c5, %c0_46] : memref<14x14x128xf32, #tpu.memory_space<vmem>>, vector<14x8x128xf32>
    %c70 = arith.constant 70 : index
    %c0_47 = arith.constant 0 : index
    %c0_48 = arith.constant 0 : index
    %26 = vector.load %arg9[%c70, %c0_47, %c0_48] : memref<98x8x128xf32, #tpu.memory_space<vmem>>, vector<14x8x128xf32>
    tpu.vector_store %arg9[%c70, %c0_47, %c0_48], %25 {strides = array<i32>} : memref<98x8x128xf32, #tpu.memory_space<vmem>>, vector<14x8x128xf32>,
    %c0_49 = arith.constant 0 : index
    %c6 = arith.constant 6 : index
    %c0_50 = arith.constant 0 : index
    %27 = vector.load %arg8[%c0_49, %c6, %c0_50] : memref<14x14x128xf32, #tpu.memory_space<vmem>>, vector<14x8x128xf32>
    %c84 = arith.constant 84 : index
    %c0_51 = arith.constant 0 : index
    %c0_52 = arith.constant 0 : index
    %28 = vector.load %arg9[%c84, %c0_51, %c0_52] : memref<98x8x128xf32, #tpu.memory_space<vmem>>, vector<14x8x128xf32>
    tpu.vector_store %arg9[%c84, %c0_51, %c0_52], %27 {strides = array<i32>} : memref<98x8x128xf32, #tpu.memory_space<vmem>>, vector<14x8x128xf32>,
    %c0_53 = arith.constant 0 : index
    %c0_54 = arith.constant 0 : index
    %29 = vector.load %arg6[%c0_53, %c0_54] : memref<1x128xf32, #tpu.memory_space<vmem>>, vector<1x128xf32>
    %c0_i32 = arith.constant 0 : i32
    %c1_i32 = arith.constant 1 : i32
    %30 = arith.muli %c0_i32, %c1_i32 : i32
    %c0_i32_55 = arith.constant 0 : i32
    %31 = arith.addi %c0_i32_55, %30 : i32
    %c8_i32 = arith.constant 8 : i32
    %32 = arith.muli %31, %c8_i32 : i32
    %c45_i32 = arith.constant 45 : i32
    %33 = arith.addi %c45_i32, %32 : i32
    %34 = arith.index_cast %33 : i32 to index
    %c0_56 = arith.constant 0 : index
    %c0_57 = arith.constant 0 : index
    %35 = vector.load %arg9[%34, %c0_56, %c0_57] : memref<98x8x128xf32, #tpu.memory_space<vmem>>, vector<8x8x128xf32>
    %36 = vector.shape_cast %29 : vector<1x128xf32> to vector<1x1x128xf32>
    %37 = vector.broadcast %36 : vector<1x1x128xf32> to vector<8x8x128xf32>
    %38 = arith.addf %35, %37 : vector<8x8x128xf32>
    %c0_i32_58 = arith.constant 0 : i32
    %39 = arith.addi %c0_i32_58, %32 : i32
    %c0_i32_59 = arith.constant 0 : i32
    %40 = arith.addi %c0_i32_59, %39 : i32
    %41 = arith.index_cast %40 : i32 to index
    %c0_60 = arith.constant 0 : index
    %c0_61 = arith.constant 0 : index
    %42 = vector.load %arg9[%41, %c0_60, %c0_61] : memref<98x8x128xf32, #tpu.memory_space<vmem>>, vector<8x8x128xf32>
    %c0_62 = arith.constant 0 : index
    %c0_63 = arith.constant 0 : index
    %43 = vector.load %arg3[%c0_62, %c0_63] : memref<49x128xf32, #tpu.memory_space<vmem>>, vector<1x128xf32>
    %44 = vector.shape_cast %43 : vector<1x128xf32> to vector<1x1x128xf32>
    %45 = vector.broadcast %44 : vector<1x1x128xf32> to vector<8x8x128xf32>
    %46 = arith.mulf %42, %45 : vector<8x8x128xf32>
    %47 = arith.addf %38, %46 : vector<8x8x128xf32>
    %c14_i32 = arith.constant 14 : i32
    %48 = arith.addi %c14_i32, %39 : i32
    %49 = arith.index_cast %48 : i32 to index
    %c0_64 = arith.constant 0 : index
    %c0_65 = arith.constant 0 : index
    %50 = vector.load %arg9[%49, %c0_64, %c0_65] : memref<98x8x128xf32, #tpu.memory_space<vmem>>, vector<8x8x128xf32>
    %c1_66 = arith.constant 1 : index
    %c0_67 = arith.constant 0 : index
    %51 = vector.load %arg3[%c1_66, %c0_67] : memref<49x128xf32, #tpu.memory_space<vmem>>, vector<1x128xf32>
    %52 = vector.shape_cast %51 : vector<1x128xf32> to vector<1x1x128xf32>
    %53 = vector.broadcast %52 : vector<1x1x128xf32> to vector<8x8x128xf32>
    %54 = arith.mulf %50, %53 : vector<8x8x128xf32>
    %55 = arith.addf %47, %54 : vector<8x8x128xf32>
    %c28_i32 = arith.constant 28 : i32
    %56 = arith.addi %c28_i32, %39 : i32
    %57 = arith.index_cast %56 : i32 to index
    %c0_68 = arith.constant 0 : index
    %c0_69 = arith.constant 0 : index
    %58 = vector.load %arg9[%57, %c0_68, %c0_69] : memref<98x8x128xf32, #tpu.memory_space<vmem>>, vector<8x8x128xf32>
    %c2_70 = arith.constant 2 : index
    %c0_71 = arith.constant 0 : index
    %59 = vector.load %arg3[%c2_70, %c0_71] : memref<49x128xf32, #tpu.memory_space<vmem>>, vector<1x128xf32>
    %60 = vector.shape_cast %59 : vector<1x128xf32> to vector<1x1x128xf32>
    %61 = vector.broadcast %60 : vector<1x1x128xf32> to vector<8x8x128xf32>
    %62 = arith.mulf %58, %61 : vector<8x8x128xf32>
    %63 = arith.addf %55, %62 : vector<8x8x128xf32>
    %c42_i32 = arith.constant 42 : i32
    %64 = arith.addi %c42_i32, %39 : i32
    %65 = arith.index_cast %64 : i32 to index
    %c0_72 = arith.constant 0 : index
    %c0_73 = arith.constant 0 : index
    %66 = vector.load %arg9[%65, %c0_72, %c0_73] : memref<98x8x128xf32, #tpu.memory_space<vmem>>, vector<8x8x128xf32>
    %c3_74 = arith.constant 3 : index
    %c0_75 = arith.constant 0 : index
    %67 = vector.load %arg3[%c3_74, %c0_75] : memref<49x128xf32, #tpu.memory_space<vmem>>, vector<1x128xf32>
    %68 = vector.shape_cast %67 : vector<1x128xf32> to vector<1x1x128xf32>
    %69 = vector.broadcast %68 : vector<1x1x128xf32> to vector<8x8x128xf32>
    %70 = arith.mulf %66, %69 : vector<8x8x128xf32>
    %71 = arith.addf %63, %70 : vector<8x8x128xf32>
    %c56_i32 = arith.constant 56 : i32
    %72 = arith.addi %c56_i32, %39 : i32
    %73 = arith.index_cast %72 : i32 to index
    %c0_76 = arith.constant 0 : index
    %c0_77 = arith.constant 0 : index
    %74 = vector.load %arg9[%73, %c0_76, %c0_77] : memref<98x8x128xf32, #tpu.memory_space<vmem>>, vector<8x8x128xf32>
    %c4_78 = arith.constant 4 : index
    %c0_79 = arith.constant 0 : index
    %75 = vector.load %arg3[%c4_78, %c0_79] : memref<49x128xf32, #tpu.memory_space<vmem>>, vector<1x128xf32>
    %76 = vector.shape_cast %75 : vector<1x128xf32> to vector<1x1x128xf32>
    %77 = vector.broadcast %76 : vector<1x1x128xf32> to vector<8x8x128xf32>
    %78 = arith.mulf %74, %77 : vector<8x8x128xf32>
    %79 = arith.addf %71, %78 : vector<8x8x128xf32>
    %c70_i32 = arith.constant 70 : i32
    %80 = arith.addi %c70_i32, %39 : i32
    %81 = arith.index_cast %80 : i32 to index
    %c0_80 = arith.constant 0 : index
    %c0_81 = arith.constant 0 : index
    %82 = vector.load %arg9[%81, %c0_80, %c0_81] : memref<98x8x128xf32, #tpu.memory_space<vmem>>, vector<8x8x128xf32>
    %c5_82 = arith.constant 5 : index
    %c0_83 = arith.constant 0 : index
    %83 = vector.load %arg3[%c5_82, %c0_83] : memref<49x128xf32, #tpu.memory_space<vmem>>, vector<1x128xf32>
    %84 = vector.shape_cast %83 : vector<1x128xf32> to vector<1x1x128xf32>
    %85 = vector.broadcast %84 : vector<1x1x128xf32> to vector<8x8x128xf32>
    %86 = arith.mulf %82, %85 : vector<8x8x128xf32>
    %87 = arith.addf %79, %86 : vector<8x8x128xf32>
    %c84_i32 = arith.constant 84 : i32
    %88 = arith.addi %c84_i32, %39 : i32
    %89 = arith.index_cast %88 : i32 to index
    %c0_84 = arith.constant 0 : index
    %c0_85 = arith.constant 0 : index
    %90 = vector.load %arg9[%89, %c0_84, %c0_85] : memref<98x8x128xf32, #tpu.memory_space<vmem>>, vector<8x8x128xf32>
    %c6_86 = arith.constant 6 : index
    %c0_87 = arith.constant 0 : index
    %91 = vector.load %arg3[%c6_86, %c0_87] : memref<49x128xf32, #tpu.memory_space<vmem>>, vector<1x128xf32>
    %92 = vector.shape_cast %91 : vector<1x128xf32> to vector<1x1x128xf32>
    %93 = vector.broadcast %92 : vector<1x1x128xf32> to vector<8x8x128xf32>
    %94 = arith.mulf %90, %93 : vector<8x8x128xf32>
    %95 = arith.addf %87, %94 : vector<8x8x128xf32>
    %c1_i32_88 = arith.constant 1 : i32
    %96 = arith.addi %c1_i32_88, %32 : i32
    %c0_i32_89 = arith.constant 0 : i32
    %97 = arith.addi %c0_i32_89, %96 : i32
    %98 = arith.index_cast %97 : i32 to index
    %c0_90 = arith.constant 0 : index
    %c0_91 = arith.constant 0 : index
    %99 = vector.load %arg9[%98, %c0_90, %c0_91] : memref<98x8x128xf32, #tpu.memory_space<vmem>>, vector<8x8x128xf32>
    %c7 = arith.constant 7 : index
    %c0_92 = arith.constant 0 : index
    %100 = vector.load %arg3[%c7, %c0_92] : memref<49x128xf32, #tpu.memory_space<vmem>>, vector<1x128xf32>
    %101 = vector.shape_cast %100 : vector<1x128xf32> to vector<1x1x128xf32>
    %102 = vector.broadcast %101 : vector<1x1x128xf32> to vector<8x8x128xf32>
    %103 = arith.mulf %99, %102 : vector<8x8x128xf32>
    %104 = arith.addf %95, %103 : vector<8x8x128xf32>
    %c14_i32_93 = arith.constant 14 : i32
    %105 = arith.addi %c14_i32_93, %96 : i32
    %106 = arith.index_cast %105 : i32 to index
    %c0_94 = arith.constant 0 : index
    %c0_95 = arith.constant 0 : index
    %107 = vector.load %arg9[%106, %c0_94, %c0_95] : memref<98x8x128xf32, #tpu.memory_space<vmem>>, vector<8x8x128xf32>
    %c8 = arith.constant 8 : index
    %c0_96 = arith.constant 0 : index
    %108 = vector.load %arg3[%c8, %c0_96] : memref<49x128xf32, #tpu.memory_space<vmem>>, vector<1x128xf32>
    %109 = vector.shape_cast %108 : vector<1x128xf32> to vector<1x1x128xf32>
    %110 = vector.broadcast %109 : vector<1x1x128xf32> to vector<8x8x128xf32>
    %111 = arith.mulf %107, %110 : vector<8x8x128xf32>
    %112 = arith.addf %104, %111 : vector<8x8x128xf32>
    %c28_i32_97 = arith.constant 28 : i32
    %113 = arith.addi %c28_i32_97, %96 : i32
    %114 = arith.index_cast %113 : i32 to index
    %c0_98 = arith.constant 0 : index
    %c0_99 = arith.constant 0 : index
    %115 = vector.load %arg9[%114, %c0_98, %c0_99] : memref<98x8x128xf32, #tpu.memory_space<vmem>>, vector<8x8x128xf32>
    %c9 = arith.constant 9 : index
    %c0_100 = arith.constant 0 : index
    %116 = vector.load %arg3[%c9, %c0_100] : memref<49x128xf32, #tpu.memory_space<vmem>>, vector<1x128xf32>
    %117 = vector.shape_cast %116 : vector<1x128xf32> to vector<1x1x128xf32>
    %118 = vector.broadcast %117 : vector<1x1x128xf32> to vector<8x8x128xf32>
    %119 = arith.mulf %115, %118 : vector<8x8x128xf32>
    %120 = arith.addf %112, %119 : vector<8x8x128xf32>
    %c42_i32_101 = arith.constant 42 : i32
    %121 = arith.addi %c42_i32_101, %96 : i32
    %122 = arith.index_cast %121 : i32 to index
    %c0_102 = arith.constant 0 : index
    %c0_103 = arith.constant 0 : index
    %123 = vector.load %arg9[%122, %c0_102, %c0_103] : memref<98x8x128xf32, #tpu.memory_space<vmem>>, vector<8x8x128xf32>
    %c10 = arith.constant 10 : index
    %c0_104 = arith.constant 0 : index
    %124 = vector.load %arg3[%c10, %c0_104] : memref<49x128xf32, #tpu.memory_space<vmem>>, vector<1x128xf32>
    %125 = vector.shape_cast %124 : vector<1x128xf32> to vector<1x1x128xf32>
    %126 = vector.broadcast %125 : vector<1x1x128xf32> to vector<8x8x128xf32>
    %127 = arith.mulf %123, %126 : vector<8x8x128xf32>
    %128 = arith.addf %120, %127 : vector<8x8x128xf32>
    %c56_i32_105 = arith.constant 56 : i32
    %129 = arith.addi %c56_i32_105, %96 : i32
    %130 = arith.index_cast %129 : i32 to index
    %c0_106 = arith.constant 0 : index
    %c0_107 = arith.constant 0 : index
    %131 = vector.load %arg9[%130, %c0_106, %c0_107] : memref<98x8x128xf32, #tpu.memory_space<vmem>>, vector<8x8x128xf32>
    %c11_108 = arith.constant 11 : index
    %c0_109 = arith.constant 0 : index
    %132 = vector.load %arg3[%c11_108, %c0_109] : memref<49x128xf32, #tpu.memory_space<vmem>>, vector<1x128xf32>
    %133 = vector.shape_cast %132 : vector<1x128xf32> to vector<1x1x128xf32>
    %134 = vector.broadcast %133 : vector<1x1x128xf32> to vector<8x8x128xf32>
    %135 = arith.mulf %131, %134 : vector<8x8x128xf32>
    %136 = arith.addf %128, %135 : vector<8x8x128xf32>
    %c70_i32_110 = arith.constant 70 : i32
    %137 = arith.addi %c70_i32_110, %96 : i32
    %138 = arith.index_cast %137 : i32 to index
    %c0_111 = arith.constant 0 : index
    %c0_112 = arith.constant 0 : index
    %139 = vector.load %arg9[%138, %c0_111, %c0_112] : memref<98x8x128xf32, #tpu.memory_space<vmem>>, vector<8x8x128xf32>
    %c12 = arith.constant 12 : index
    %c0_113 = arith.constant 0 : index
    %140 = vector.load %arg3[%c12, %c0_113] : memref<49x128xf32, #tpu.memory_space<vmem>>, vector<1x128xf32>
    %141 = vector.shape_cast %140 : vector<1x128xf32> to vector<1x1x128xf32>
    %142 = vector.broadcast %141 : vector<1x1x128xf32> to vector<8x8x128xf32>
    %143 = arith.mulf %139, %142 : vector<8x8x128xf32>
    %144 = arith.addf %136, %143 : vector<8x8x128xf32>
    %c84_i32_114 = arith.constant 84 : i32
    %145 = arith.addi %c84_i32_114, %96 : i32
    %146 = arith.index_cast %145 : i32 to index
    %c0_115 = arith.constant 0 : index
    %c0_116 = arith.constant 0 : index
    %147 = vector.load %arg9[%146, %c0_115, %c0_116] : memref<98x8x128xf32, #tpu.memory_space<vmem>>, vector<8x8x128xf32>
    %c13 = arith.constant 13 : index
    %c0_117 = arith.constant 0 : index
    %148 = vector.load %arg3[%c13, %c0_117] : memref<49x128xf32, #tpu.memory_space<vmem>>, vector<1x128xf32>
    %149 = vector.shape_cast %148 : vector<1x128xf32> to vector<1x1x128xf32>
    %150 = vector.broadcast %149 : vector<1x1x128xf32> to vector<8x8x128xf32>
    %151 = arith.mulf %147, %150 : vector<8x8x128xf32>
    %152 = arith.addf %144, %151 : vector<8x8x128xf32>
    %c2_i32 = arith.constant 2 : i32
    %153 = arith.addi %c2_i32, %32 : i32
    %c0_i32_118 = arith.constant 0 : i32
    %154 = arith.addi %c0_i32_118, %153 : i32
    %155 = arith.index_cast %154 : i32 to index
    %c0_119 = arith.constant 0 : index
    %c0_120 = arith.constant 0 : index
    %156 = vector.load %arg9[%155, %c0_119, %c0_120] : memref<98x8x128xf32, #tpu.memory_space<vmem>>, vector<8x8x128xf32>
    %c14_121 = arith.constant 14 : index
    %c0_122 = arith.constant 0 : index
    %157 = vector.load %arg3[%c14_121, %c0_122] : memref<49x128xf32, #tpu.memory_space<vmem>>, vector<1x128xf32>
    %158 = vector.shape_cast %157 : vector<1x128xf32> to vector<1x1x128xf32>
    %159 = vector.broadcast %158 : vector<1x1x128xf32> to vector<8x8x128xf32>
    %160 = arith.mulf %156, %159 : vector<8x8x128xf32>
    %161 = arith.addf %152, %160 : vector<8x8x128xf32>
    %c14_i32_123 = arith.constant 14 : i32
    %162 = arith.addi %c14_i32_123, %153 : i32
    %163 = arith.index_cast %162 : i32 to index
    %c0_124 = arith.constant 0 : index
    %c0_125 = arith.constant 0 : index
    %164 = vector.load %arg9[%163, %c0_124, %c0_125] : memref<98x8x128xf32, #tpu.memory_space<vmem>>, vector<8x8x128xf32>
    %c15 = arith.constant 15 : index
    %c0_126 = arith.constant 0 : index
    %165 = vector.load %arg3[%c15, %c0_126] : memref<49x128xf32, #tpu.memory_space<vmem>>, vector<1x128xf32>
    %166 = vector.shape_cast %165 : vector<1x128xf32> to vector<1x1x128xf32>
    %167 = vector.broadcast %166 : vector<1x1x128xf32> to vector<8x8x128xf32>
    %168 = arith.mulf %164, %167 : vector<8x8x128xf32>
    %169 = arith.addf %161, %168 : vector<8x8x128xf32>
    %c28_i32_127 = arith.constant 28 : i32
    %170 = arith.addi %c28_i32_127, %153 : i32
    %171 = arith.index_cast %170 : i32 to index
    %c0_128 = arith.constant 0 : index
    %c0_129 = arith.constant 0 : index
    %172 = vector.load %arg9[%171, %c0_128, %c0_129] : memref<98x8x128xf32, #tpu.memory_space<vmem>>, vector<8x8x128xf32>
    %c16 = arith.constant 16 : index
    %c0_130 = arith.constant 0 : index
    %173 = vector.load %arg3[%c16, %c0_130] : memref<49x128xf32, #tpu.memory_space<vmem>>, vector<1x128xf32>
    %174 = vector.shape_cast %173 : vector<1x128xf32> to vector<1x1x128xf32>
    %175 = vector.broadcast %174 : vector<1x1x128xf32> to vector<8x8x128xf32>
    %176 = arith.mulf %172, %175 : vector<8x8x128xf32>
    %177 = arith.addf %169, %176 : vector<8x8x128xf32>
    %c42_i32_131 = arith.constant 42 : i32
    %178 = arith.addi %c42_i32_131, %153 : i32
    %179 = arith.index_cast %178 : i32 to index
    %c0_132 = arith.constant 0 : index
    %c0_133 = arith.constant 0 : index
    %180 = vector.load %arg9[%179, %c0_132, %c0_133] : memref<98x8x128xf32, #tpu.memory_space<vmem>>, vector<8x8x128xf32>
    %c17 = arith.constant 17 : index
    %c0_134 = arith.constant 0 : index
    %181 = vector.load %arg3[%c17, %c0_134] : memref<49x128xf32, #tpu.memory_space<vmem>>, vector<1x128xf32>
    %182 = vector.shape_cast %181 : vector<1x128xf32> to vector<1x1x128xf32>
    %183 = vector.broadcast %182 : vector<1x1x128xf32> to vector<8x8x128xf32>
    %184 = arith.mulf %180, %183 : vector<8x8x128xf32>
    %185 = arith.addf %177, %184 : vector<8x8x128xf32>
    %c56_i32_135 = arith.constant 56 : i32
    %186 = arith.addi %c56_i32_135, %153 : i32
    %187 = arith.index_cast %186 : i32 to index
    %c0_136 = arith.constant 0 : index
    %c0_137 = arith.constant 0 : index
    %188 = vector.load %arg9[%187, %c0_136, %c0_137] : memref<98x8x128xf32, #tpu.memory_space<vmem>>, vector<8x8x128xf32>
    %c18 = arith.constant 18 : index
    %c0_138 = arith.constant 0 : index
    %189 = vector.load %arg3[%c18, %c0_138] : memref<49x128xf32, #tpu.memory_space<vmem>>, vector<1x128xf32>
    %190 = vector.shape_cast %189 : vector<1x128xf32> to vector<1x1x128xf32>
    %191 = vector.broadcast %190 : vector<1x1x128xf32> to vector<8x8x128xf32>
    %192 = arith.mulf %188, %191 : vector<8x8x128xf32>
    %193 = arith.addf %185, %192 : vector<8x8x128xf32>
    %c70_i32_139 = arith.constant 70 : i32
    %194 = arith.addi %c70_i32_139, %153 : i32
    %195 = arith.index_cast %194 : i32 to index
    %c0_140 = arith.constant 0 : index
    %c0_141 = arith.constant 0 : index
    %196 = vector.load %arg9[%195, %c0_140, %c0_141] : memref<98x8x128xf32, #tpu.memory_space<vmem>>, vector<8x8x128xf32>
    %c19 = arith.constant 19 : index
    %c0_142 = arith.constant 0 : index
    %197 = vector.load %arg3[%c19, %c0_142] : memref<49x128xf32, #tpu.memory_space<vmem>>, vector<1x128xf32>
    %198 = vector.shape_cast %197 : vector<1x128xf32> to vector<1x1x128xf32>
    %199 = vector.broadcast %198 : vector<1x1x128xf32> to vector<8x8x128xf32>
    %200 = arith.mulf %196, %199 : vector<8x8x128xf32>
    %201 = arith.addf %193, %200 : vector<8x8x128xf32>
    %c84_i32_143 = arith.constant 84 : i32
    %202 = arith.addi %c84_i32_143, %153 : i32
    %203 = arith.index_cast %202 : i32 to index
    %c0_144 = arith.constant 0 : index
    %c0_145 = arith.constant 0 : index
    %204 = vector.load %arg9[%203, %c0_144, %c0_145] : memref<98x8x128xf32, #tpu.memory_space<vmem>>, vector<8x8x128xf32>
    %c20 = arith.constant 20 : index
    %c0_146 = arith.constant 0 : index
    %205 = vector.load %arg3[%c20, %c0_146] : memref<49x128xf32, #tpu.memory_space<vmem>>, vector<1x128xf32>
    %206 = vector.shape_cast %205 : vector<1x128xf32> to vector<1x1x128xf32>
    %207 = vector.broadcast %206 : vector<1x1x128xf32> to vector<8x8x128xf32>
    %208 = arith.mulf %204, %207 : vector<8x8x128xf32>
    %209 = arith.addf %201, %208 : vector<8x8x128xf32>
    %c3_i32 = arith.constant 3 : i32
    %210 = arith.addi %c3_i32, %32 : i32
    %c0_i32_147 = arith.constant 0 : i32
    %211 = arith.addi %c0_i32_147, %210 : i32
    %212 = arith.index_cast %211 : i32 to index
    %c0_148 = arith.constant 0 : index
    %c0_149 = arith.constant 0 : index
    %213 = vector.load %arg9[%212, %c0_148, %c0_149] : memref<98x8x128xf32, #tpu.memory_space<vmem>>, vector<8x8x128xf32>
    %c21 = arith.constant 21 : index
    %c0_150 = arith.constant 0 : index
    %214 = vector.load %arg3[%c21, %c0_150] : memref<49x128xf32, #tpu.memory_space<vmem>>, vector<1x128xf32>
    %215 = vector.shape_cast %214 : vector<1x128xf32> to vector<1x1x128xf32>
    %216 = vector.broadcast %215 : vector<1x1x128xf32> to vector<8x8x128xf32>
    %217 = arith.mulf %213, %216 : vector<8x8x128xf32>
    %218 = arith.addf %209, %217 : vector<8x8x128xf32>
    %c14_i32_151 = arith.constant 14 : i32
    %219 = arith.addi %c14_i32_151, %210 : i32
    %220 = arith.index_cast %219 : i32 to index
    %c0_152 = arith.constant 0 : index
    %c0_153 = arith.constant 0 : index
    %221 = vector.load %arg9[%220, %c0_152, %c0_153] : memref<98x8x128xf32, #tpu.memory_space<vmem>>, vector<8x8x128xf32>
    %c22 = arith.constant 22 : index
    %c0_154 = arith.constant 0 : index
    %222 = vector.load %arg3[%c22, %c0_154] : memref<49x128xf32, #tpu.memory_space<vmem>>, vector<1x128xf32>
    %223 = vector.shape_cast %222 : vector<1x128xf32> to vector<1x1x128xf32>
    %224 = vector.broadcast %223 : vector<1x1x128xf32> to vector<8x8x128xf32>
    %225 = arith.mulf %221, %224 : vector<8x8x128xf32>
    %226 = arith.addf %218, %225 : vector<8x8x128xf32>
    %c28_i32_155 = arith.constant 28 : i32
    %227 = arith.addi %c28_i32_155, %210 : i32
    %228 = arith.index_cast %227 : i32 to index
    %c0_156 = arith.constant 0 : index
    %c0_157 = arith.constant 0 : index
    %229 = vector.load %arg9[%228, %c0_156, %c0_157] : memref<98x8x128xf32, #tpu.memory_space<vmem>>, vector<8x8x128xf32>
    %c23 = arith.constant 23 : index
    %c0_158 = arith.constant 0 : index
    %230 = vector.load %arg3[%c23, %c0_158] : memref<49x128xf32, #tpu.memory_space<vmem>>, vector<1x128xf32>
    %231 = vector.shape_cast %230 : vector<1x128xf32> to vector<1x1x128xf32>
    %232 = vector.broadcast %231 : vector<1x1x128xf32> to vector<8x8x128xf32>
    %233 = arith.mulf %229, %232 : vector<8x8x128xf32>
    %234 = arith.addf %226, %233 : vector<8x8x128xf32>
    %c42_i32_159 = arith.constant 42 : i32
    %235 = arith.addi %c42_i32_159, %210 : i32
    %236 = arith.index_cast %235 : i32 to index
    %c0_160 = arith.constant 0 : index
    %c0_161 = arith.constant 0 : index
    %237 = vector.load %arg9[%236, %c0_160, %c0_161] : memref<98x8x128xf32, #tpu.memory_space<vmem>>, vector<8x8x128xf32>
    %c24 = arith.constant 24 : index
    %c0_162 = arith.constant 0 : index
    %238 = vector.load %arg3[%c24, %c0_162] : memref<49x128xf32, #tpu.memory_space<vmem>>, vector<1x128xf32>
    %239 = vector.shape_cast %238 : vector<1x128xf32> to vector<1x1x128xf32>
    %240 = vector.broadcast %239 : vector<1x1x128xf32> to vector<8x8x128xf32>
    %241 = arith.mulf %237, %240 : vector<8x8x128xf32>
    %242 = arith.addf %234, %241 : vector<8x8x128xf32>
    %c56_i32_163 = arith.constant 56 : i32
    %243 = arith.addi %c56_i32_163, %210 : i32
    %244 = arith.index_cast %243 : i32 to index
    %c0_164 = arith.constant 0 : index
    %c0_165 = arith.constant 0 : index
    %245 = vector.load %arg9[%244, %c0_164, %c0_165] : memref<98x8x128xf32, #tpu.memory_space<vmem>>, vector<8x8x128xf32>
    %c25 = arith.constant 25 : index
    %c0_166 = arith.constant 0 : index
    %246 = vector.load %arg3[%c25, %c0_166] : memref<49x128xf32, #tpu.memory_space<vmem>>, vector<1x128xf32>
    %247 = vector.shape_cast %246 : vector<1x128xf32> to vector<1x1x128xf32>
    %248 = vector.broadcast %247 : vector<1x1x128xf32> to vector<8x8x128xf32>
    %249 = arith.mulf %245, %248 : vector<8x8x128xf32>
    %250 = arith.addf %242, %249 : vector<8x8x128xf32>
    %c70_i32_167 = arith.constant 70 : i32
    %251 = arith.addi %c70_i32_167, %210 : i32
    %252 = arith.index_cast %251 : i32 to index
    %c0_168 = arith.constant 0 : index
    %c0_169 = arith.constant 0 : index
    %253 = vector.load %arg9[%252, %c0_168, %c0_169] : memref<98x8x128xf32, #tpu.memory_space<vmem>>, vector<8x8x128xf32>
    %c26 = arith.constant 26 : index
    %c0_170 = arith.constant 0 : index
    %254 = vector.load %arg3[%c26, %c0_170] : memref<49x128xf32, #tpu.memory_space<vmem>>, vector<1x128xf32>
    %255 = vector.shape_cast %254 : vector<1x128xf32> to vector<1x1x128xf32>
    %256 = vector.broadcast %255 : vector<1x1x128xf32> to vector<8x8x128xf32>
    %257 = arith.mulf %253, %256 : vector<8x8x128xf32>
    %258 = arith.addf %250, %257 : vector<8x8x128xf32>
    %c84_i32_171 = arith.constant 84 : i32
    %259 = arith.addi %c84_i32_171, %210 : i32
    %260 = arith.index_cast %259 : i32 to index
    %c0_172 = arith.constant 0 : index
    %c0_173 = arith.constant 0 : index
    %261 = vector.load %arg9[%260, %c0_172, %c0_173] : memref<98x8x128xf32, #tpu.memory_space<vmem>>, vector<8x8x128xf32>
    %c27 = arith.constant 27 : index
    %c0_174 = arith.constant 0 : index
    %262 = vector.load %arg3[%c27, %c0_174] : memref<49x128xf32, #tpu.memory_space<vmem>>, vector<1x128xf32>
    %263 = vector.shape_cast %262 : vector<1x128xf32> to vector<1x1x128xf32>
    %264 = vector.broadcast %263 : vector<1x1x128xf32> to vector<8x8x128xf32>
    %265 = arith.mulf %261, %264 : vector<8x8x128xf32>
    %266 = arith.addf %258, %265 : vector<8x8x128xf32>
    %c4_i32 = arith.constant 4 : i32
    %267 = arith.addi %c4_i32, %32 : i32
    %c0_i32_175 = arith.constant 0 : i32
    %268 = arith.addi %c0_i32_175, %267 : i32
    %269 = arith.index_cast %268 : i32 to index
    %c0_176 = arith.constant 0 : index
    %c0_177 = arith.constant 0 : index
    %270 = vector.load %arg9[%269, %c0_176, %c0_177] : memref<98x8x128xf32, #tpu.memory_space<vmem>>, vector<8x8x128xf32>
    %c28_178 = arith.constant 28 : index
    %c0_179 = arith.constant 0 : index
    %271 = vector.load %arg3[%c28_178, %c0_179] : memref<49x128xf32, #tpu.memory_space<vmem>>, vector<1x128xf32>
    %272 = vector.shape_cast %271 : vector<1x128xf32> to vector<1x1x128xf32>
    %273 = vector.broadcast %272 : vector<1x1x128xf32> to vector<8x8x128xf32>
    %274 = arith.mulf %270, %273 : vector<8x8x128xf32>
    %275 = arith.addf %266, %274 : vector<8x8x128xf32>
    %c14_i32_180 = arith.constant 14 : i32
    %276 = arith.addi %c14_i32_180, %267 : i32
    %277 = arith.index_cast %276 : i32 to index
    %c0_181 = arith.constant 0 : index
    %c0_182 = arith.constant 0 : index
    %278 = vector.load %arg9[%277, %c0_181, %c0_182] : memref<98x8x128xf32, #tpu.memory_space<vmem>>, vector<8x8x128xf32>
    %c29 = arith.constant 29 : index
    %c0_183 = arith.constant 0 : index
    %279 = vector.load %arg3[%c29, %c0_183] : memref<49x128xf32, #tpu.memory_space<vmem>>, vector<1x128xf32>
    %280 = vector.shape_cast %279 : vector<1x128xf32> to vector<1x1x128xf32>
    %281 = vector.broadcast %280 : vector<1x1x128xf32> to vector<8x8x128xf32>
    %282 = arith.mulf %278, %281 : vector<8x8x128xf32>
    %283 = arith.addf %275, %282 : vector<8x8x128xf32>
    %c28_i32_184 = arith.constant 28 : i32
    %284 = arith.addi %c28_i32_184, %267 : i32
    %285 = arith.index_cast %284 : i32 to index
    %c0_185 = arith.constant 0 : index
    %c0_186 = arith.constant 0 : index
    %286 = vector.load %arg9[%285, %c0_185, %c0_186] : memref<98x8x128xf32, #tpu.memory_space<vmem>>, vector<8x8x128xf32>
    %c30 = arith.constant 30 : index
    %c0_187 = arith.constant 0 : index
    %287 = vector.load %arg3[%c30, %c0_187] : memref<49x128xf32, #tpu.memory_space<vmem>>, vector<1x128xf32>
    %288 = vector.shape_cast %287 : vector<1x128xf32> to vector<1x1x128xf32>
    %289 = vector.broadcast %288 : vector<1x1x128xf32> to vector<8x8x128xf32>
    %290 = arith.mulf %286, %289 : vector<8x8x128xf32>
    %291 = arith.addf %283, %290 : vector<8x8x128xf32>
    %c42_i32_188 = arith.constant 42 : i32
    %292 = arith.addi %c42_i32_188, %267 : i32
    %293 = arith.index_cast %292 : i32 to index
    %c0_189 = arith.constant 0 : index
    %c0_190 = arith.constant 0 : index
    %294 = vector.load %arg9[%293, %c0_189, %c0_190] : memref<98x8x128xf32, #tpu.memory_space<vmem>>, vector<8x8x128xf32>
    %c31 = arith.constant 31 : index
    %c0_191 = arith.constant 0 : index
    %295 = vector.load %arg3[%c31, %c0_191] : memref<49x128xf32, #tpu.memory_space<vmem>>, vector<1x128xf32>
    %296 = vector.shape_cast %295 : vector<1x128xf32> to vector<1x1x128xf32>
    %297 = vector.broadcast %296 : vector<1x1x128xf32> to vector<8x8x128xf32>
    %298 = arith.mulf %294, %297 : vector<8x8x128xf32>
    %299 = arith.addf %291, %298 : vector<8x8x128xf32>
    %c56_i32_192 = arith.constant 56 : i32
    %300 = arith.addi %c56_i32_192, %267 : i32
    %301 = arith.index_cast %300 : i32 to index
    %c0_193 = arith.constant 0 : index
    %c0_194 = arith.constant 0 : index
    %302 = vector.load %arg9[%301, %c0_193, %c0_194] : memref<98x8x128xf32, #tpu.memory_space<vmem>>, vector<8x8x128xf32>
    %c32 = arith.constant 32 : index
    %c0_195 = arith.constant 0 : index
    %303 = vector.load %arg3[%c32, %c0_195] : memref<49x128xf32, #tpu.memory_space<vmem>>, vector<1x128xf32>
    %304 = vector.shape_cast %303 : vector<1x128xf32> to vector<1x1x128xf32>
    %305 = vector.broadcast %304 : vector<1x1x128xf32> to vector<8x8x128xf32>
    %306 = arith.mulf %302, %305 : vector<8x8x128xf32>
    %307 = arith.addf %299, %306 : vector<8x8x128xf32>
    %c70_i32_196 = arith.constant 70 : i32
    %308 = arith.addi %c70_i32_196, %267 : i32
    %309 = arith.index_cast %308 : i32 to index
    %c0_197 = arith.constant 0 : index
    %c0_198 = arith.constant 0 : index
    %310 = vector.load %arg9[%309, %c0_197, %c0_198] : memref<98x8x128xf32, #tpu.memory_space<vmem>>, vector<8x8x128xf32>
    %c33 = arith.constant 33 : index
    %c0_199 = arith.constant 0 : index
    %311 = vector.load %arg3[%c33, %c0_199] : memref<49x128xf32, #tpu.memory_space<vmem>>, vector<1x128xf32>
    %312 = vector.shape_cast %311 : vector<1x128xf32> to vector<1x1x128xf32>
    %313 = vector.broadcast %312 : vector<1x1x128xf32> to vector<8x8x128xf32>
    %314 = arith.mulf %310, %313 : vector<8x8x128xf32>
    %315 = arith.addf %307, %314 : vector<8x8x128xf32>
    %c84_i32_200 = arith.constant 84 : i32
    %316 = arith.addi %c84_i32_200, %267 : i32
    %317 = arith.index_cast %316 : i32 to index
    %c0_201 = arith.constant 0 : index
    %c0_202 = arith.constant 0 : index
    %318 = vector.load %arg9[%317, %c0_201, %c0_202] : memref<98x8x128xf32, #tpu.memory_space<vmem>>, vector<8x8x128xf32>
    %c34 = arith.constant 34 : index
    %c0_203 = arith.constant 0 : index
    %319 = vector.load %arg3[%c34, %c0_203] : memref<49x128xf32, #tpu.memory_space<vmem>>, vector<1x128xf32>
    %320 = vector.shape_cast %319 : vector<1x128xf32> to vector<1x1x128xf32>
    %321 = vector.broadcast %320 : vector<1x1x128xf32> to vector<8x8x128xf32>
    %322 = arith.mulf %318, %321 : vector<8x8x128xf32>
    %323 = arith.addf %315, %322 : vector<8x8x128xf32>
    %c5_i32 = arith.constant 5 : i32
    %324 = arith.addi %c5_i32, %32 : i32
    %c0_i32_204 = arith.constant 0 : i32
    %325 = arith.addi %c0_i32_204, %324 : i32
    %326 = arith.index_cast %325 : i32 to index
    %c0_205 = arith.constant 0 : index
    %c0_206 = arith.constant 0 : index
    %327 = vector.load %arg9[%326, %c0_205, %c0_206] : memref<98x8x128xf32, #tpu.memory_space<vmem>>, vector<8x8x128xf32>
    %c35 = arith.constant 35 : index
    %c0_207 = arith.constant 0 : index
    %328 = vector.load %arg3[%c35, %c0_207] : memref<49x128xf32, #tpu.memory_space<vmem>>, vector<1x128xf32>
    %329 = vector.shape_cast %328 : vector<1x128xf32> to vector<1x1x128xf32>
    %330 = vector.broadcast %329 : vector<1x1x128xf32> to vector<8x8x128xf32>
    %331 = arith.mulf %327, %330 : vector<8x8x128xf32>
    %332 = arith.addf %323, %331 : vector<8x8x128xf32>
    %c14_i32_208 = arith.constant 14 : i32
    %333 = arith.addi %c14_i32_208, %324 : i32
    %334 = arith.index_cast %333 : i32 to index
    %c0_209 = arith.constant 0 : index
    %c0_210 = arith.constant 0 : index
    %335 = vector.load %arg9[%334, %c0_209, %c0_210] : memref<98x8x128xf32, #tpu.memory_space<vmem>>, vector<8x8x128xf32>
    %c36 = arith.constant 36 : index
    %c0_211 = arith.constant 0 : index
    %336 = vector.load %arg3[%c36, %c0_211] : memref<49x128xf32, #tpu.memory_space<vmem>>, vector<1x128xf32>
    %337 = vector.shape_cast %336 : vector<1x128xf32> to vector<1x1x128xf32>
    %338 = vector.broadcast %337 : vector<1x1x128xf32> to vector<8x8x128xf32>
    %339 = arith.mulf %335, %338 : vector<8x8x128xf32>
    %340 = arith.addf %332, %339 : vector<8x8x128xf32>
    %c28_i32_212 = arith.constant 28 : i32
    %341 = arith.addi %c28_i32_212, %324 : i32
    %342 = arith.index_cast %341 : i32 to index
    %c0_213 = arith.constant 0 : index
    %c0_214 = arith.constant 0 : index
    %343 = vector.load %arg9[%342, %c0_213, %c0_214] : memref<98x8x128xf32, #tpu.memory_space<vmem>>, vector<8x8x128xf32>
    %c37 = arith.constant 37 : index
    %c0_215 = arith.constant 0 : index
    %344 = vector.load %arg3[%c37, %c0_215] : memref<49x128xf32, #tpu.memory_space<vmem>>, vector<1x128xf32>
    %345 = vector.shape_cast %344 : vector<1x128xf32> to vector<1x1x128xf32>
    %346 = vector.broadcast %345 : vector<1x1x128xf32> to vector<8x8x128xf32>
    %347 = arith.mulf %343, %346 : vector<8x8x128xf32>
    %348 = arith.addf %340, %347 : vector<8x8x128xf32>
    %c42_i32_216 = arith.constant 42 : i32
    %349 = arith.addi %c42_i32_216, %324 : i32
    %350 = arith.index_cast %349 : i32 to index
    %c0_217 = arith.constant 0 : index
    %c0_218 = arith.constant 0 : index
    %351 = vector.load %arg9[%350, %c0_217, %c0_218] : memref<98x8x128xf32, #tpu.memory_space<vmem>>, vector<8x8x128xf32>
    %c38 = arith.constant 38 : index
    %c0_219 = arith.constant 0 : index
    %352 = vector.load %arg3[%c38, %c0_219] : memref<49x128xf32, #tpu.memory_space<vmem>>, vector<1x128xf32>
    %353 = vector.shape_cast %352 : vector<1x128xf32> to vector<1x1x128xf32>
    %354 = vector.broadcast %353 : vector<1x1x128xf32> to vector<8x8x128xf32>
    %355 = arith.mulf %351, %354 : vector<8x8x128xf32>
    %356 = arith.addf %348, %355 : vector<8x8x128xf32>
    %c56_i32_220 = arith.constant 56 : i32
    %357 = arith.addi %c56_i32_220, %324 : i32
    %358 = arith.index_cast %357 : i32 to index
    %c0_221 = arith.constant 0 : index
    %c0_222 = arith.constant 0 : index
    %359 = vector.load %arg9[%358, %c0_221, %c0_222] : memref<98x8x128xf32, #tpu.memory_space<vmem>>, vector<8x8x128xf32>
    %c39 = arith.constant 39 : index
    %c0_223 = arith.constant 0 : index
    %360 = vector.load %arg3[%c39, %c0_223] : memref<49x128xf32, #tpu.memory_space<vmem>>, vector<1x128xf32>
    %361 = vector.shape_cast %360 : vector<1x128xf32> to vector<1x1x128xf32>
    %362 = vector.broadcast %361 : vector<1x1x128xf32> to vector<8x8x128xf32>
    %363 = arith.mulf %359, %362 : vector<8x8x128xf32>
    %364 = arith.addf %356, %363 : vector<8x8x128xf32>
    %c70_i32_224 = arith.constant 70 : i32
    %365 = arith.addi %c70_i32_224, %324 : i32
    %366 = arith.index_cast %365 : i32 to index
    %c0_225 = arith.constant 0 : index
    %c0_226 = arith.constant 0 : index
    %367 = vector.load %arg9[%366, %c0_225, %c0_226] : memref<98x8x128xf32, #tpu.memory_space<vmem>>, vector<8x8x128xf32>
    %c40 = arith.constant 40 : index
    %c0_227 = arith.constant 0 : index
    %368 = vector.load %arg3[%c40, %c0_227] : memref<49x128xf32, #tpu.memory_space<vmem>>, vector<1x128xf32>
    %369 = vector.shape_cast %368 : vector<1x128xf32> to vector<1x1x128xf32>
    %370 = vector.broadcast %369 : vector<1x1x128xf32> to vector<8x8x128xf32>
    %371 = arith.mulf %367, %370 : vector<8x8x128xf32>
    %372 = arith.addf %364, %371 : vector<8x8x128xf32>
    %c84_i32_228 = arith.constant 84 : i32
    %373 = arith.addi %c84_i32_228, %324 : i32
    %374 = arith.index_cast %373 : i32 to index
    %c0_229 = arith.constant 0 : index
    %c0_230 = arith.constant 0 : index
    %375 = vector.load %arg9[%374, %c0_229, %c0_230] : memref<98x8x128xf32, #tpu.memory_space<vmem>>, vector<8x8x128xf32>
    %c41 = arith.constant 41 : index
    %c0_231 = arith.constant 0 : index
    %376 = vector.load %arg3[%c41, %c0_231] : memref<49x128xf32, #tpu.memory_space<vmem>>, vector<1x128xf32>
    %377 = vector.shape_cast %376 : vector<1x128xf32> to vector<1x1x128xf32>
    %378 = vector.broadcast %377 : vector<1x1x128xf32> to vector<8x8x128xf32>
    %379 = arith.mulf %375, %378 : vector<8x8x128xf32>
    %380 = arith.addf %372, %379 : vector<8x8x128xf32>
    %c6_i32 = arith.constant 6 : i32
    %381 = arith.addi %c6_i32, %32 : i32
    %c0_i32_232 = arith.constant 0 : i32
    %382 = arith.addi %c0_i32_232, %381 : i32
    %383 = arith.index_cast %382 : i32 to index
    %c0_233 = arith.constant 0 : index
    %c0_234 = arith.constant 0 : index
    %384 = vector.load %arg9[%383, %c0_233, %c0_234] : memref<98x8x128xf32, #tpu.memory_space<vmem>>, vector<8x8x128xf32>
    %c42_235 = arith.constant 42 : index
    %c0_236 = arith.constant 0 : index
    %385 = vector.load %arg3[%c42_235, %c0_236] : memref<49x128xf32, #tpu.memory_space<vmem>>, vector<1x128xf32>
    %386 = vector.shape_cast %385 : vector<1x128xf32> to vector<1x1x128xf32>
    %387 = vector.broadcast %386 : vector<1x1x128xf32> to vector<8x8x128xf32>
    %388 = arith.mulf %384, %387 : vector<8x8x128xf32>
    %389 = arith.addf %380, %388 : vector<8x8x128xf32>
    %c14_i32_237 = arith.constant 14 : i32
    %390 = arith.addi %c14_i32_237, %381 : i32
    %391 = arith.index_cast %390 : i32 to index
    %c0_238 = arith.constant 0 : index
    %c0_239 = arith.constant 0 : index
    %392 = vector.load %arg9[%391, %c0_238, %c0_239] : memref<98x8x128xf32, #tpu.memory_space<vmem>>, vector<8x8x128xf32>
    %c43 = arith.constant 43 : index
    %c0_240 = arith.constant 0 : index
    %393 = vector.load %arg3[%c43, %c0_240] : memref<49x128xf32, #tpu.memory_space<vmem>>, vector<1x128xf32>
    %394 = vector.shape_cast %393 : vector<1x128xf32> to vector<1x1x128xf32>
    %395 = vector.broadcast %394 : vector<1x1x128xf32> to vector<8x8x128xf32>
    %396 = arith.mulf %392, %395 : vector<8x8x128xf32>
    %397 = arith.addf %389, %396 : vector<8x8x128xf32>
    %c28_i32_241 = arith.constant 28 : i32
    %398 = arith.addi %c28_i32_241, %381 : i32
    %399 = arith.index_cast %398 : i32 to index
    %c0_242 = arith.constant 0 : index
    %c0_243 = arith.constant 0 : index
    %400 = vector.load %arg9[%399, %c0_242, %c0_243] : memref<98x8x128xf32, #tpu.memory_space<vmem>>, vector<8x8x128xf32>
    %c44 = arith.constant 44 : index
    %c0_244 = arith.constant 0 : index
    %401 = vector.load %arg3[%c44, %c0_244] : memref<49x128xf32, #tpu.memory_space<vmem>>, vector<1x128xf32>
    %402 = vector.shape_cast %401 : vector<1x128xf32> to vector<1x1x128xf32>
    %403 = vector.broadcast %402 : vector<1x1x128xf32> to vector<8x8x128xf32>
    %404 = arith.mulf %400, %403 : vector<8x8x128xf32>
    %405 = arith.addf %397, %404 : vector<8x8x128xf32>
    %c42_i32_245 = arith.constant 42 : i32
    %406 = arith.addi %c42_i32_245, %381 : i32
    %407 = arith.index_cast %406 : i32 to index
    %c0_246 = arith.constant 0 : index
    %c0_247 = arith.constant 0 : index
    %408 = vector.load %arg9[%407, %c0_246, %c0_247] : memref<98x8x128xf32, #tpu.memory_space<vmem>>, vector<8x8x128xf32>
    %c45 = arith.constant 45 : index
    %c0_248 = arith.constant 0 : index
    %409 = vector.load %arg3[%c45, %c0_248] : memref<49x128xf32, #tpu.memory_space<vmem>>, vector<1x128xf32>
    %410 = vector.shape_cast %409 : vector<1x128xf32> to vector<1x1x128xf32>
    %411 = vector.broadcast %410 : vector<1x1x128xf32> to vector<8x8x128xf32>
    %412 = arith.mulf %408, %411 : vector<8x8x128xf32>
    %413 = arith.addf %405, %412 : vector<8x8x128xf32>
    %c56_i32_249 = arith.constant 56 : i32
    %414 = arith.addi %c56_i32_249, %381 : i32
    %415 = arith.index_cast %414 : i32 to index
    %c0_250 = arith.constant 0 : index
    %c0_251 = arith.constant 0 : index
    %416 = vector.load %arg9[%415, %c0_250, %c0_251] : memref<98x8x128xf32, #tpu.memory_space<vmem>>, vector<8x8x128xf32>
    %c46 = arith.constant 46 : index
    %c0_252 = arith.constant 0 : index
    %417 = vector.load %arg3[%c46, %c0_252] : memref<49x128xf32, #tpu.memory_space<vmem>>, vector<1x128xf32>
    %418 = vector.shape_cast %417 : vector<1x128xf32> to vector<1x1x128xf32>
    %419 = vector.broadcast %418 : vector<1x1x128xf32> to vector<8x8x128xf32>
    %420 = arith.mulf %416, %419 : vector<8x8x128xf32>
    %421 = arith.addf %413, %420 : vector<8x8x128xf32>
    %c70_i32_253 = arith.constant 70 : i32
    %422 = arith.addi %c70_i32_253, %381 : i32
    %423 = arith.index_cast %422 : i32 to index
    %c0_254 = arith.constant 0 : index
    %c0_255 = arith.constant 0 : index
    %424 = vector.load %arg9[%423, %c0_254, %c0_255] : memref<98x8x128xf32, #tpu.memory_space<vmem>>, vector<8x8x128xf32>
    %c47 = arith.constant 47 : index
    %c0_256 = arith.constant 0 : index
    %425 = vector.load %arg3[%c47, %c0_256] : memref<49x128xf32, #tpu.memory_space<vmem>>, vector<1x128xf32>
    %426 = vector.shape_cast %425 : vector<1x128xf32> to vector<1x1x128xf32>
    %427 = vector.broadcast %426 : vector<1x1x128xf32> to vector<8x8x128xf32>
    %428 = arith.mulf %424, %427 : vector<8x8x128xf32>
    %429 = arith.addf %421, %428 : vector<8x8x128xf32>
    %c84_i32_257 = arith.constant 84 : i32
    %430 = arith.addi %c84_i32_257, %381 : i32
    %431 = arith.index_cast %430 : i32 to index
    %c0_258 = arith.constant 0 : index
    %c0_259 = arith.constant 0 : index
    %432 = vector.load %arg9[%431, %c0_258, %c0_259] : memref<98x8x128xf32, #tpu.memory_space<vmem>>, vector<8x8x128xf32>
    %c48 = arith.constant 48 : index
    %c0_260 = arith.constant 0 : index
    %433 = vector.load %arg3[%c48, %c0_260] : memref<49x128xf32, #tpu.memory_space<vmem>>, vector<1x128xf32>
    %434 = vector.shape_cast %433 : vector<1x128xf32> to vector<1x1x128xf32>
    %435 = vector.broadcast %434 : vector<1x1x128xf32> to vector<8x8x128xf32>
    %436 = arith.mulf %432, %435 : vector<8x8x128xf32>
    %437 = arith.addf %429, %436 : vector<8x8x128xf32>
    %c1_i32_261 = arith.constant 1 : i32
    %438 = arith.addi %c1_i32_261, %32 : i32
    %c14_i32_262 = arith.constant 14 : i32
    %439 = arith.addi %c14_i32_262, %438 : i32
    %440 = arith.index_cast %439 : i32 to index
    %c0_263 = arith.constant 0 : index
    %c0_264 = arith.constant 0 : index
    %441 = vector.load %arg9[%440, %c0_263, %c0_264] : memref<98x8x128xf32, #tpu.memory_space<vmem>>, vector<8x8x128xf32>
    %c0_265 = arith.constant 0 : index
    %c0_266 = arith.constant 0 : index
    %442 = vector.load %arg4[%c0_265, %c0_266] : memref<25x128xf32, #tpu.memory_space<vmem>>, vector<1x128xf32>
    %443 = vector.shape_cast %442 : vector<1x128xf32> to vector<1x1x128xf32>
    %444 = vector.broadcast %443 : vector<1x1x128xf32> to vector<8x8x128xf32>
    %445 = arith.mulf %441, %444 : vector<8x8x128xf32>
    %446 = arith.addf %437, %445 : vector<8x8x128xf32>
    %c28_i32_267 = arith.constant 28 : i32
    %447 = arith.addi %c28_i32_267, %438 : i32
    %448 = arith.index_cast %447 : i32 to index
    %c0_268 = arith.constant 0 : index
    %c0_269 = arith.constant 0 : index
    %449 = vector.load %arg9[%448, %c0_268, %c0_269] : memref<98x8x128xf32, #tpu.memory_space<vmem>>, vector<8x8x128xf32>
    %c1_270 = arith.constant 1 : index
    %c0_271 = arith.constant 0 : index
    %450 = vector.load %arg4[%c1_270, %c0_271] : memref<25x128xf32, #tpu.memory_space<vmem>>, vector<1x128xf32>
    %451 = vector.shape_cast %450 : vector<1x128xf32> to vector<1x1x128xf32>
    %452 = vector.broadcast %451 : vector<1x1x128xf32> to vector<8x8x128xf32>
    %453 = arith.mulf %449, %452 : vector<8x8x128xf32>
    %454 = arith.addf %446, %453 : vector<8x8x128xf32>
    %c42_i32_272 = arith.constant 42 : i32
    %455 = arith.addi %c42_i32_272, %438 : i32
    %456 = arith.index_cast %455 : i32 to index
    %c0_273 = arith.constant 0 : index
    %c0_274 = arith.constant 0 : index
    %457 = vector.load %arg9[%456, %c0_273, %c0_274] : memref<98x8x128xf32, #tpu.memory_space<vmem>>, vector<8x8x128xf32>
    %c2_275 = arith.constant 2 : index
    %c0_276 = arith.constant 0 : index
    %458 = vector.load %arg4[%c2_275, %c0_276] : memref<25x128xf32, #tpu.memory_space<vmem>>, vector<1x128xf32>
    %459 = vector.shape_cast %458 : vector<1x128xf32> to vector<1x1x128xf32>
    %460 = vector.broadcast %459 : vector<1x1x128xf32> to vector<8x8x128xf32>
    %461 = arith.mulf %457, %460 : vector<8x8x128xf32>
    %462 = arith.addf %454, %461 : vector<8x8x128xf32>
    %c56_i32_277 = arith.constant 56 : i32
    %463 = arith.addi %c56_i32_277, %438 : i32
    %464 = arith.index_cast %463 : i32 to index
    %c0_278 = arith.constant 0 : index
    %c0_279 = arith.constant 0 : index
    %465 = vector.load %arg9[%464, %c0_278, %c0_279] : memref<98x8x128xf32, #tpu.memory_space<vmem>>, vector<8x8x128xf32>
    %c3_280 = arith.constant 3 : index
    %c0_281 = arith.constant 0 : index
    %466 = vector.load %arg4[%c3_280, %c0_281] : memref<25x128xf32, #tpu.memory_space<vmem>>, vector<1x128xf32>
    %467 = vector.shape_cast %466 : vector<1x128xf32> to vector<1x1x128xf32>
    %468 = vector.broadcast %467 : vector<1x1x128xf32> to vector<8x8x128xf32>
    %469 = arith.mulf %465, %468 : vector<8x8x128xf32>
    %470 = arith.addf %462, %469 : vector<8x8x128xf32>
    %c70_i32_282 = arith.constant 70 : i32
    %471 = arith.addi %c70_i32_282, %438 : i32
    %472 = arith.index_cast %471 : i32 to index
    %c0_283 = arith.constant 0 : index
    %c0_284 = arith.constant 0 : index
    %473 = vector.load %arg9[%472, %c0_283, %c0_284] : memref<98x8x128xf32, #tpu.memory_space<vmem>>, vector<8x8x128xf32>
    %c4_285 = arith.constant 4 : index
    %c0_286 = arith.constant 0 : index
    %474 = vector.load %arg4[%c4_285, %c0_286] : memref<25x128xf32, #tpu.memory_space<vmem>>, vector<1x128xf32>
    %475 = vector.shape_cast %474 : vector<1x128xf32> to vector<1x1x128xf32>
    %476 = vector.broadcast %475 : vector<1x1x128xf32> to vector<8x8x128xf32>
    %477 = arith.mulf %473, %476 : vector<8x8x128xf32>
    %478 = arith.addf %470, %477 : vector<8x8x128xf32>
    %c2_i32_287 = arith.constant 2 : i32
    %479 = arith.addi %c2_i32_287, %32 : i32
    %c14_i32_288 = arith.constant 14 : i32
    %480 = arith.addi %c14_i32_288, %479 : i32
    %481 = arith.index_cast %480 : i32 to index
    %c0_289 = arith.constant 0 : index
    %c0_290 = arith.constant 0 : index
    %482 = vector.load %arg9[%481, %c0_289, %c0_290] : memref<98x8x128xf32, #tpu.memory_space<vmem>>, vector<8x8x128xf32>
    %c5_291 = arith.constant 5 : index
    %c0_292 = arith.constant 0 : index
    %483 = vector.load %arg4[%c5_291, %c0_292] : memref<25x128xf32, #tpu.memory_space<vmem>>, vector<1x128xf32>
    %484 = vector.shape_cast %483 : vector<1x128xf32> to vector<1x1x128xf32>
    %485 = vector.broadcast %484 : vector<1x1x128xf32> to vector<8x8x128xf32>
    %486 = arith.mulf %482, %485 : vector<8x8x128xf32>
    %487 = arith.addf %478, %486 : vector<8x8x128xf32>
    %c28_i32_293 = arith.constant 28 : i32
    %488 = arith.addi %c28_i32_293, %479 : i32
    %489 = arith.index_cast %488 : i32 to index
    %c0_294 = arith.constant 0 : index
    %c0_295 = arith.constant 0 : index
    %490 = vector.load %arg9[%489, %c0_294, %c0_295] : memref<98x8x128xf32, #tpu.memory_space<vmem>>, vector<8x8x128xf32>
    %c6_296 = arith.constant 6 : index
    %c0_297 = arith.constant 0 : index
    %491 = vector.load %arg4[%c6_296, %c0_297] : memref<25x128xf32, #tpu.memory_space<vmem>>, vector<1x128xf32>
    %492 = vector.shape_cast %491 : vector<1x128xf32> to vector<1x1x128xf32>
    %493 = vector.broadcast %492 : vector<1x1x128xf32> to vector<8x8x128xf32>
    %494 = arith.mulf %490, %493 : vector<8x8x128xf32>
    %495 = arith.addf %487, %494 : vector<8x8x128xf32>
    %c42_i32_298 = arith.constant 42 : i32
    %496 = arith.addi %c42_i32_298, %479 : i32
    %497 = arith.index_cast %496 : i32 to index
    %c0_299 = arith.constant 0 : index
    %c0_300 = arith.constant 0 : index
    %498 = vector.load %arg9[%497, %c0_299, %c0_300] : memref<98x8x128xf32, #tpu.memory_space<vmem>>, vector<8x8x128xf32>
    %c7_301 = arith.constant 7 : index
    %c0_302 = arith.constant 0 : index
    %499 = vector.load %arg4[%c7_301, %c0_302] : memref<25x128xf32, #tpu.memory_space<vmem>>, vector<1x128xf32>
    %500 = vector.shape_cast %499 : vector<1x128xf32> to vector<1x1x128xf32>
    %501 = vector.broadcast %500 : vector<1x1x128xf32> to vector<8x8x128xf32>
    %502 = arith.mulf %498, %501 : vector<8x8x128xf32>
    %503 = arith.addf %495, %502 : vector<8x8x128xf32>
    %c56_i32_303 = arith.constant 56 : i32
    %504 = arith.addi %c56_i32_303, %479 : i32
    %505 = arith.index_cast %504 : i32 to index
    %c0_304 = arith.constant 0 : index
    %c0_305 = arith.constant 0 : index
    %506 = vector.load %arg9[%505, %c0_304, %c0_305] : memref<98x8x128xf32, #tpu.memory_space<vmem>>, vector<8x8x128xf32>
    %c8_306 = arith.constant 8 : index
    %c0_307 = arith.constant 0 : index
    %507 = vector.load %arg4[%c8_306, %c0_307] : memref<25x128xf32, #tpu.memory_space<vmem>>, vector<1x128xf32>
    %508 = vector.shape_cast %507 : vector<1x128xf32> to vector<1x1x128xf32>
    %509 = vector.broadcast %508 : vector<1x1x128xf32> to vector<8x8x128xf32>
    %510 = arith.mulf %506, %509 : vector<8x8x128xf32>
    %511 = arith.addf %503, %510 : vector<8x8x128xf32>
    %c70_i32_308 = arith.constant 70 : i32
    %512 = arith.addi %c70_i32_308, %479 : i32
    %513 = arith.index_cast %512 : i32 to index
    %c0_309 = arith.constant 0 : index
    %c0_310 = arith.constant 0 : index
    %514 = vector.load %arg9[%513, %c0_309, %c0_310] : memref<98x8x128xf32, #tpu.memory_space<vmem>>, vector<8x8x128xf32>
    %c9_311 = arith.constant 9 : index
    %c0_312 = arith.constant 0 : index
    %515 = vector.load %arg4[%c9_311, %c0_312] : memref<25x128xf32, #tpu.memory_space<vmem>>, vector<1x128xf32>
    %516 = vector.shape_cast %515 : vector<1x128xf32> to vector<1x1x128xf32>
    %517 = vector.broadcast %516 : vector<1x1x128xf32> to vector<8x8x128xf32>
    %518 = arith.mulf %514, %517 : vector<8x8x128xf32>
    %519 = arith.addf %511, %518 : vector<8x8x128xf32>
    %c3_i32_313 = arith.constant 3 : i32
    %520 = arith.addi %c3_i32_313, %32 : i32
    %c14_i32_314 = arith.constant 14 : i32
    %521 = arith.addi %c14_i32_314, %520 : i32
    %522 = arith.index_cast %521 : i32 to index
    %c0_315 = arith.constant 0 : index
    %c0_316 = arith.constant 0 : index
    %523 = vector.load %arg9[%522, %c0_315, %c0_316] : memref<98x8x128xf32, #tpu.memory_space<vmem>>, vector<8x8x128xf32>
    %c10_317 = arith.constant 10 : index
    %c0_318 = arith.constant 0 : index
    %524 = vector.load %arg4[%c10_317, %c0_318] : memref<25x128xf32, #tpu.memory_space<vmem>>, vector<1x128xf32>
    %525 = vector.shape_cast %524 : vector<1x128xf32> to vector<1x1x128xf32>
    %526 = vector.broadcast %525 : vector<1x1x128xf32> to vector<8x8x128xf32>
    %527 = arith.mulf %523, %526 : vector<8x8x128xf32>
    %528 = arith.addf %519, %527 : vector<8x8x128xf32>
    %c28_i32_319 = arith.constant 28 : i32
    %529 = arith.addi %c28_i32_319, %520 : i32
    %530 = arith.index_cast %529 : i32 to index
    %c0_320 = arith.constant 0 : index
    %c0_321 = arith.constant 0 : index
    %531 = vector.load %arg9[%530, %c0_320, %c0_321] : memref<98x8x128xf32, #tpu.memory_space<vmem>>, vector<8x8x128xf32>
    %c11_322 = arith.constant 11 : index
    %c0_323 = arith.constant 0 : index
    %532 = vector.load %arg4[%c11_322, %c0_323] : memref<25x128xf32, #tpu.memory_space<vmem>>, vector<1x128xf32>
    %533 = vector.shape_cast %532 : vector<1x128xf32> to vector<1x1x128xf32>
    %534 = vector.broadcast %533 : vector<1x1x128xf32> to vector<8x8x128xf32>
    %535 = arith.mulf %531, %534 : vector<8x8x128xf32>
    %536 = arith.addf %528, %535 : vector<8x8x128xf32>
    %c42_i32_324 = arith.constant 42 : i32
    %537 = arith.addi %c42_i32_324, %520 : i32
    %538 = arith.index_cast %537 : i32 to index
    %c0_325 = arith.constant 0 : index
    %c0_326 = arith.constant 0 : index
    %539 = vector.load %arg9[%538, %c0_325, %c0_326] : memref<98x8x128xf32, #tpu.memory_space<vmem>>, vector<8x8x128xf32>
    %c12_327 = arith.constant 12 : index
    %c0_328 = arith.constant 0 : index
    %540 = vector.load %arg4[%c12_327, %c0_328] : memref<25x128xf32, #tpu.memory_space<vmem>>, vector<1x128xf32>
    %541 = vector.shape_cast %540 : vector<1x128xf32> to vector<1x1x128xf32>
    %542 = vector.broadcast %541 : vector<1x1x128xf32> to vector<8x8x128xf32>
    %543 = arith.mulf %539, %542 : vector<8x8x128xf32>
    %544 = arith.addf %536, %543 : vector<8x8x128xf32>
    %c56_i32_329 = arith.constant 56 : i32
    %545 = arith.addi %c56_i32_329, %520 : i32
    %546 = arith.index_cast %545 : i32 to index
    %c0_330 = arith.constant 0 : index
    %c0_331 = arith.constant 0 : index
    %547 = vector.load %arg9[%546, %c0_330, %c0_331] : memref<98x8x128xf32, #tpu.memory_space<vmem>>, vector<8x8x128xf32>
    %c13_332 = arith.constant 13 : index
    %c0_333 = arith.constant 0 : index
    %548 = vector.load %arg4[%c13_332, %c0_333] : memref<25x128xf32, #tpu.memory_space<vmem>>, vector<1x128xf32>
    %549 = vector.shape_cast %548 : vector<1x128xf32> to vector<1x1x128xf32>
    %550 = vector.broadcast %549 : vector<1x1x128xf32> to vector<8x8x128xf32>
    %551 = arith.mulf %547, %550 : vector<8x8x128xf32>
    %552 = arith.addf %544, %551 : vector<8x8x128xf32>
    %c70_i32_334 = arith.constant 70 : i32
    %553 = arith.addi %c70_i32_334, %520 : i32
    %554 = arith.index_cast %553 : i32 to index
    %c0_335 = arith.constant 0 : index
    %c0_336 = arith.constant 0 : index
    %555 = vector.load %arg9[%554, %c0_335, %c0_336] : memref<98x8x128xf32, #tpu.memory_space<vmem>>, vector<8x8x128xf32>
    %c14_337 = arith.constant 14 : index
    %c0_338 = arith.constant 0 : index
    %556 = vector.load %arg4[%c14_337, %c0_338] : memref<25x128xf32, #tpu.memory_space<vmem>>, vector<1x128xf32>
    %557 = vector.shape_cast %556 : vector<1x128xf32> to vector<1x1x128xf32>
    %558 = vector.broadcast %557 : vector<1x1x128xf32> to vector<8x8x128xf32>
    %559 = arith.mulf %555, %558 : vector<8x8x128xf32>
    %560 = arith.addf %552, %559 : vector<8x8x128xf32>
    %c4_i32_339 = arith.constant 4 : i32
    %561 = arith.addi %c4_i32_339, %32 : i32
    %c14_i32_340 = arith.constant 14 : i32
    %562 = arith.addi %c14_i32_340, %561 : i32
    %563 = arith.index_cast %562 : i32 to index
    %c0_341 = arith.constant 0 : index
    %c0_342 = arith.constant 0 : index
    %564 = vector.load %arg9[%563, %c0_341, %c0_342] : memref<98x8x128xf32, #tpu.memory_space<vmem>>, vector<8x8x128xf32>
    %c15_343 = arith.constant 15 : index
    %c0_344 = arith.constant 0 : index
    %565 = vector.load %arg4[%c15_343, %c0_344] : memref<25x128xf32, #tpu.memory_space<vmem>>, vector<1x128xf32>
    %566 = vector.shape_cast %565 : vector<1x128xf32> to vector<1x1x128xf32>
    %567 = vector.broadcast %566 : vector<1x1x128xf32> to vector<8x8x128xf32>
    %568 = arith.mulf %564, %567 : vector<8x8x128xf32>
    %569 = arith.addf %560, %568 : vector<8x8x128xf32>
    %c28_i32_345 = arith.constant 28 : i32
    %570 = arith.addi %c28_i32_345, %561 : i32
    %571 = arith.index_cast %570 : i32 to index
    %c0_346 = arith.constant 0 : index
    %c0_347 = arith.constant 0 : index
    %572 = vector.load %arg9[%571, %c0_346, %c0_347] : memref<98x8x128xf32, #tpu.memory_space<vmem>>, vector<8x8x128xf32>
    %c16_348 = arith.constant 16 : index
    %c0_349 = arith.constant 0 : index
    %573 = vector.load %arg4[%c16_348, %c0_349] : memref<25x128xf32, #tpu.memory_space<vmem>>, vector<1x128xf32>
    %574 = vector.shape_cast %573 : vector<1x128xf32> to vector<1x1x128xf32>
    %575 = vector.broadcast %574 : vector<1x1x128xf32> to vector<8x8x128xf32>
    %576 = arith.mulf %572, %575 : vector<8x8x128xf32>
    %577 = arith.addf %569, %576 : vector<8x8x128xf32>
    %c42_i32_350 = arith.constant 42 : i32
    %578 = arith.addi %c42_i32_350, %561 : i32
    %579 = arith.index_cast %578 : i32 to index
    %c0_351 = arith.constant 0 : index
    %c0_352 = arith.constant 0 : index
    %580 = vector.load %arg9[%579, %c0_351, %c0_352] : memref<98x8x128xf32, #tpu.memory_space<vmem>>, vector<8x8x128xf32>
    %c17_353 = arith.constant 17 : index
    %c0_354 = arith.constant 0 : index
    %581 = vector.load %arg4[%c17_353, %c0_354] : memref<25x128xf32, #tpu.memory_space<vmem>>, vector<1x128xf32>
    %582 = vector.shape_cast %581 : vector<1x128xf32> to vector<1x1x128xf32>
    %583 = vector.broadcast %582 : vector<1x1x128xf32> to vector<8x8x128xf32>
    %584 = arith.mulf %580, %583 : vector<8x8x128xf32>
    %585 = arith.addf %577, %584 : vector<8x8x128xf32>
    %c56_i32_355 = arith.constant 56 : i32
    %586 = arith.addi %c56_i32_355, %561 : i32
    %587 = arith.index_cast %586 : i32 to index
    %c0_356 = arith.constant 0 : index
    %c0_357 = arith.constant 0 : index
    %588 = vector.load %arg9[%587, %c0_356, %c0_357] : memref<98x8x128xf32, #tpu.memory_space<vmem>>, vector<8x8x128xf32>
    %c18_358 = arith.constant 18 : index
    %c0_359 = arith.constant 0 : index
    %589 = vector.load %arg4[%c18_358, %c0_359] : memref<25x128xf32, #tpu.memory_space<vmem>>, vector<1x128xf32>
    %590 = vector.shape_cast %589 : vector<1x128xf32> to vector<1x1x128xf32>
    %591 = vector.broadcast %590 : vector<1x1x128xf32> to vector<8x8x128xf32>
    %592 = arith.mulf %588, %591 : vector<8x8x128xf32>
    %593 = arith.addf %585, %592 : vector<8x8x128xf32>
    %c70_i32_360 = arith.constant 70 : i32
    %594 = arith.addi %c70_i32_360, %561 : i32
    %595 = arith.index_cast %594 : i32 to index
    %c0_361 = arith.constant 0 : index
    %c0_362 = arith.constant 0 : index
    %596 = vector.load %arg9[%595, %c0_361, %c0_362] : memref<98x8x128xf32, #tpu.memory_space<vmem>>, vector<8x8x128xf32>
    %c19_363 = arith.constant 19 : index
    %c0_364 = arith.constant 0 : index
    %597 = vector.load %arg4[%c19_363, %c0_364] : memref<25x128xf32, #tpu.memory_space<vmem>>, vector<1x128xf32>
    %598 = vector.shape_cast %597 : vector<1x128xf32> to vector<1x1x128xf32>
    %599 = vector.broadcast %598 : vector<1x1x128xf32> to vector<8x8x128xf32>
    %600 = arith.mulf %596, %599 : vector<8x8x128xf32>
    %601 = arith.addf %593, %600 : vector<8x8x128xf32>
    %c5_i32_365 = arith.constant 5 : i32
    %602 = arith.addi %c5_i32_365, %32 : i32
    %c14_i32_366 = arith.constant 14 : i32
    %603 = arith.addi %c14_i32_366, %602 : i32
    %604 = arith.index_cast %603 : i32 to index
    %c0_367 = arith.constant 0 : index
    %c0_368 = arith.constant 0 : index
    %605 = vector.load %arg9[%604, %c0_367, %c0_368] : memref<98x8x128xf32, #tpu.memory_space<vmem>>, vector<8x8x128xf32>
    %c20_369 = arith.constant 20 : index
    %c0_370 = arith.constant 0 : index
    %606 = vector.load %arg4[%c20_369, %c0_370] : memref<25x128xf32, #tpu.memory_space<vmem>>, vector<1x128xf32>
    %607 = vector.shape_cast %606 : vector<1x128xf32> to vector<1x1x128xf32>
    %608 = vector.broadcast %607 : vector<1x1x128xf32> to vector<8x8x128xf32>
    %609 = arith.mulf %605, %608 : vector<8x8x128xf32>
    %610 = arith.addf %601, %609 : vector<8x8x128xf32>
    %c28_i32_371 = arith.constant 28 : i32
    %611 = arith.addi %c28_i32_371, %602 : i32
    %612 = arith.index_cast %611 : i32 to index
    %c0_372 = arith.constant 0 : index
    %c0_373 = arith.constant 0 : index
    %613 = vector.load %arg9[%612, %c0_372, %c0_373] : memref<98x8x128xf32, #tpu.memory_space<vmem>>, vector<8x8x128xf32>
    %c21_374 = arith.constant 21 : index
    %c0_375 = arith.constant 0 : index
    %614 = vector.load %arg4[%c21_374, %c0_375] : memref<25x128xf32, #tpu.memory_space<vmem>>, vector<1x128xf32>
    %615 = vector.shape_cast %614 : vector<1x128xf32> to vector<1x1x128xf32>
    %616 = vector.broadcast %615 : vector<1x1x128xf32> to vector<8x8x128xf32>
    %617 = arith.mulf %613, %616 : vector<8x8x128xf32>
    %618 = arith.addf %610, %617 : vector<8x8x128xf32>
    %c42_i32_376 = arith.constant 42 : i32
    %619 = arith.addi %c42_i32_376, %602 : i32
    %620 = arith.index_cast %619 : i32 to index
    %c0_377 = arith.constant 0 : index
    %c0_378 = arith.constant 0 : index
    %621 = vector.load %arg9[%620, %c0_377, %c0_378] : memref<98x8x128xf32, #tpu.memory_space<vmem>>, vector<8x8x128xf32>
    %c22_379 = arith.constant 22 : index
    %c0_380 = arith.constant 0 : index
    %622 = vector.load %arg4[%c22_379, %c0_380] : memref<25x128xf32, #tpu.memory_space<vmem>>, vector<1x128xf32>
    %623 = vector.shape_cast %622 : vector<1x128xf32> to vector<1x1x128xf32>
    %624 = vector.broadcast %623 : vector<1x1x128xf32> to vector<8x8x128xf32>
    %625 = arith.mulf %621, %624 : vector<8x8x128xf32>
    %626 = arith.addf %618, %625 : vector<8x8x128xf32>
    %c56_i32_381 = arith.constant 56 : i32
    %627 = arith.addi %c56_i32_381, %602 : i32
    %628 = arith.index_cast %627 : i32 to index
    %c0_382 = arith.constant 0 : index
    %c0_383 = arith.constant 0 : index
    %629 = vector.load %arg9[%628, %c0_382, %c0_383] : memref<98x8x128xf32, #tpu.memory_space<vmem>>, vector<8x8x128xf32>
    %c23_384 = arith.constant 23 : index
    %c0_385 = arith.constant 0 : index
    %630 = vector.load %arg4[%c23_384, %c0_385] : memref<25x128xf32, #tpu.memory_space<vmem>>, vector<1x128xf32>
    %631 = vector.shape_cast %630 : vector<1x128xf32> to vector<1x1x128xf32>
    %632 = vector.broadcast %631 : vector<1x1x128xf32> to vector<8x8x128xf32>
    %633 = arith.mulf %629, %632 : vector<8x8x128xf32>
    %634 = arith.addf %626, %633 : vector<8x8x128xf32>
    %c70_i32_386 = arith.constant 70 : i32
    %635 = arith.addi %c70_i32_386, %602 : i32
    %636 = arith.index_cast %635 : i32 to index
    %c0_387 = arith.constant 0 : index
    %c0_388 = arith.constant 0 : index
    %637 = vector.load %arg9[%636, %c0_387, %c0_388] : memref<98x8x128xf32, #tpu.memory_space<vmem>>, vector<8x8x128xf32>
    %c24_389 = arith.constant 24 : index
    %c0_390 = arith.constant 0 : index
    %638 = vector.load %arg4[%c24_389, %c0_390] : memref<25x128xf32, #tpu.memory_space<vmem>>, vector<1x128xf32>
    %639 = vector.shape_cast %638 : vector<1x128xf32> to vector<1x1x128xf32>
    %640 = vector.broadcast %639 : vector<1x1x128xf32> to vector<8x8x128xf32>
    %641 = arith.mulf %637, %640 : vector<8x8x128xf32>
    %642 = arith.addf %634, %641 : vector<8x8x128xf32>
    %c2_i32_391 = arith.constant 2 : i32
    %643 = arith.addi %c2_i32_391, %32 : i32
    %c28_i32_392 = arith.constant 28 : i32
    %644 = arith.addi %c28_i32_392, %643 : i32
    %645 = arith.index_cast %644 : i32 to index
    %c0_393 = arith.constant 0 : index
    %c0_394 = arith.constant 0 : index
    %646 = vector.load %arg9[%645, %c0_393, %c0_394] : memref<98x8x128xf32, #tpu.memory_space<vmem>>, vector<8x8x128xf32>
    %c0_395 = arith.constant 0 : index
    %c0_396 = arith.constant 0 : index
    %647 = vector.load %arg5[%c0_395, %c0_396] : memref<9x128xf32, #tpu.memory_space<vmem>>, vector<1x128xf32>
    %648 = vector.shape_cast %647 : vector<1x128xf32> to vector<1x1x128xf32>
    %649 = vector.broadcast %648 : vector<1x1x128xf32> to vector<8x8x128xf32>
    %650 = arith.mulf %646, %649 : vector<8x8x128xf32>
    %651 = arith.addf %642, %650 : vector<8x8x128xf32>
    %c42_i32_397 = arith.constant 42 : i32
    %652 = arith.addi %c42_i32_397, %643 : i32
    %653 = arith.index_cast %652 : i32 to index
    %c0_398 = arith.constant 0 : index
    %c0_399 = arith.constant 0 : index
    %654 = vector.load %arg9[%653, %c0_398, %c0_399] : memref<98x8x128xf32, #tpu.memory_space<vmem>>, vector<8x8x128xf32>
    %c1_400 = arith.constant 1 : index
    %c0_401 = arith.constant 0 : index
    %655 = vector.load %arg5[%c1_400, %c0_401] : memref<9x128xf32, #tpu.memory_space<vmem>>, vector<1x128xf32>
    %656 = vector.shape_cast %655 : vector<1x128xf32> to vector<1x1x128xf32>
    %657 = vector.broadcast %656 : vector<1x1x128xf32> to vector<8x8x128xf32>
    %658 = arith.mulf %654, %657 : vector<8x8x128xf32>
    %659 = arith.addf %651, %658 : vector<8x8x128xf32>
    %c56_i32_402 = arith.constant 56 : i32
    %660 = arith.addi %c56_i32_402, %643 : i32
    %661 = arith.index_cast %660 : i32 to index
    %c0_403 = arith.constant 0 : index
    %c0_404 = arith.constant 0 : index
    %662 = vector.load %arg9[%661, %c0_403, %c0_404] : memref<98x8x128xf32, #tpu.memory_space<vmem>>, vector<8x8x128xf32>
    %c2_405 = arith.constant 2 : index
    %c0_406 = arith.constant 0 : index
    %663 = vector.load %arg5[%c2_405, %c0_406] : memref<9x128xf32, #tpu.memory_space<vmem>>, vector<1x128xf32>
    %664 = vector.shape_cast %663 : vector<1x128xf32> to vector<1x1x128xf32>
    %665 = vector.broadcast %664 : vector<1x1x128xf32> to vector<8x8x128xf32>
    %666 = arith.mulf %662, %665 : vector<8x8x128xf32>
    %667 = arith.addf %659, %666 : vector<8x8x128xf32>
    %c3_i32_407 = arith.constant 3 : i32
    %668 = arith.addi %c3_i32_407, %32 : i32
    %c28_i32_408 = arith.constant 28 : i32
    %669 = arith.addi %c28_i32_408, %668 : i32
    %670 = arith.index_cast %669 : i32 to index
    %c0_409 = arith.constant 0 : index
    %c0_410 = arith.constant 0 : index
    %671 = vector.load %arg9[%670, %c0_409, %c0_410] : memref<98x8x128xf32, #tpu.memory_space<vmem>>, vector<8x8x128xf32>
    %c3_411 = arith.constant 3 : index
    %c0_412 = arith.constant 0 : index
    %672 = vector.load %arg5[%c3_411, %c0_412] : memref<9x128xf32, #tpu.memory_space<vmem>>, vector<1x128xf32>
    %673 = vector.shape_cast %672 : vector<1x128xf32> to vector<1x1x128xf32>
    %674 = vector.broadcast %673 : vector<1x1x128xf32> to vector<8x8x128xf32>
    %675 = arith.mulf %671, %674 : vector<8x8x128xf32>
    %676 = arith.addf %667, %675 : vector<8x8x128xf32>
    %c42_i32_413 = arith.constant 42 : i32
    %677 = arith.addi %c42_i32_413, %668 : i32
    %678 = arith.index_cast %677 : i32 to index
    %c0_414 = arith.constant 0 : index
    %c0_415 = arith.constant 0 : index
    %679 = vector.load %arg9[%678, %c0_414, %c0_415] : memref<98x8x128xf32, #tpu.memory_space<vmem>>, vector<8x8x128xf32>
    %c4_416 = arith.constant 4 : index
    %c0_417 = arith.constant 0 : index
    %680 = vector.load %arg5[%c4_416, %c0_417] : memref<9x128xf32, #tpu.memory_space<vmem>>, vector<1x128xf32>
    %681 = vector.shape_cast %680 : vector<1x128xf32> to vector<1x1x128xf32>
    %682 = vector.broadcast %681 : vector<1x1x128xf32> to vector<8x8x128xf32>
    %683 = arith.mulf %679, %682 : vector<8x8x128xf32>
    %684 = arith.addf %676, %683 : vector<8x8x128xf32>
    %c56_i32_418 = arith.constant 56 : i32
    %685 = arith.addi %c56_i32_418, %668 : i32
    %686 = arith.index_cast %685 : i32 to index
    %c0_419 = arith.constant 0 : index
    %c0_420 = arith.constant 0 : index
    %687 = vector.load %arg9[%686, %c0_419, %c0_420] : memref<98x8x128xf32, #tpu.memory_space<vmem>>, vector<8x8x128xf32>
    %c5_421 = arith.constant 5 : index
    %c0_422 = arith.constant 0 : index
    %688 = vector.load %arg5[%c5_421, %c0_422] : memref<9x128xf32, #tpu.memory_space<vmem>>, vector<1x128xf32>
    %689 = vector.shape_cast %688 : vector<1x128xf32> to vector<1x1x128xf32>
    %690 = vector.broadcast %689 : vector<1x1x128xf32> to vector<8x8x128xf32>
    %691 = arith.mulf %687, %690 : vector<8x8x128xf32>
    %692 = arith.addf %684, %691 : vector<8x8x128xf32>
    %c4_i32_423 = arith.constant 4 : i32
    %693 = arith.addi %c4_i32_423, %32 : i32
    %c28_i32_424 = arith.constant 28 : i32
    %694 = arith.addi %c28_i32_424, %693 : i32
    %695 = arith.index_cast %694 : i32 to index
    %c0_425 = arith.constant 0 : index
    %c0_426 = arith.constant 0 : index
    %696 = vector.load %arg9[%695, %c0_425, %c0_426] : memref<98x8x128xf32, #tpu.memory_space<vmem>>, vector<8x8x128xf32>
    %c6_427 = arith.constant 6 : index
    %c0_428 = arith.constant 0 : index
    %697 = vector.load %arg5[%c6_427, %c0_428] : memref<9x128xf32, #tpu.memory_space<vmem>>, vector<1x128xf32>
    %698 = vector.shape_cast %697 : vector<1x128xf32> to vector<1x1x128xf32>
    %699 = vector.broadcast %698 : vector<1x1x128xf32> to vector<8x8x128xf32>
    %700 = arith.mulf %696, %699 : vector<8x8x128xf32>
    %701 = arith.addf %692, %700 : vector<8x8x128xf32>
    %c42_i32_429 = arith.constant 42 : i32
    %702 = arith.addi %c42_i32_429, %693 : i32
    %703 = arith.index_cast %702 : i32 to index
    %c0_430 = arith.constant 0 : index
    %c0_431 = arith.constant 0 : index
    %704 = vector.load %arg9[%703, %c0_430, %c0_431] : memref<98x8x128xf32, #tpu.memory_space<vmem>>, vector<8x8x128xf32>
    %c7_432 = arith.constant 7 : index
    %c0_433 = arith.constant 0 : index
    %705 = vector.load %arg5[%c7_432, %c0_433] : memref<9x128xf32, #tpu.memory_space<vmem>>, vector<1x128xf32>
    %706 = vector.shape_cast %705 : vector<1x128xf32> to vector<1x1x128xf32>
    %707 = vector.broadcast %706 : vector<1x1x128xf32> to vector<8x8x128xf32>
    %708 = arith.mulf %704, %707 : vector<8x8x128xf32>
    %709 = arith.addf %701, %708 : vector<8x8x128xf32>
    %c56_i32_434 = arith.constant 56 : i32
    %710 = arith.addi %c56_i32_434, %693 : i32
    %711 = arith.index_cast %710 : i32 to index
    %c0_435 = arith.constant 0 : index
    %c0_436 = arith.constant 0 : index
    %712 = vector.load %arg9[%711, %c0_435, %c0_436] : memref<98x8x128xf32, #tpu.memory_space<vmem>>, vector<8x8x128xf32>
    %c8_437 = arith.constant 8 : index
    %c0_438 = arith.constant 0 : index
    %713 = vector.load %arg5[%c8_437, %c0_438] : memref<9x128xf32, #tpu.memory_space<vmem>>, vector<1x128xf32>
    %714 = vector.shape_cast %713 : vector<1x128xf32> to vector<1x1x128xf32>
    %715 = vector.broadcast %714 : vector<1x1x128xf32> to vector<8x8x128xf32>
    %716 = arith.mulf %712, %715 : vector<8x8x128xf32>
    %717 = arith.addf %709, %716 : vector<8x8x128xf32>
    %718 = vector.shape_cast %717 : vector<8x8x128xf32> to vector<64x128xf32>
    %c8_i32_439 = arith.constant 8 : i32
    %719 = arith.muli %32, %c8_i32_439 : i32
    %c1_i32_440 = arith.constant 1 : i32
    %720 = arith.addi %c1_i32_440, %719 : i32
    %c0_441 = arith.constant 0 : index
    %721 = arith.index_cast %720 : i32 to index
    %c0_442 = arith.constant 0 : index
    %722 = vector.load %arg7[%c0_441, %721, %c0_442] : memref<1x65x128xf32, #tpu.memory_space<vmem>>, vector<1x64x128xf32>
    %723 = vector.shape_cast %722 : vector<1x64x128xf32> to vector<64x128xf32>
    %724 = vector.shape_cast %718 : vector<64x128xf32> to vector<1x64x128xf32>
    tpu.vector_store %arg7[%c0_441, %721, %c0_442], %724 {strides = array<i32>} : memref<1x65x128xf32, #tpu.memory_space<vmem>>, vector<1x64x128xf32>,
    %c1_i32_443 = arith.constant 1 : i32
    return
  }
  func.func @transform_0(%arg0: i32, %arg1: i32) -> (i32, i32, i32) {
    %c0_i32 = arith.constant 0 : i32
    %c0_i32_0 = arith.constant 0 : i32
    return %arg0, %c0_i32, %arg1 : i32, i32, i32
  }
  func.func @transform_1(%arg0: i32, %arg1: i32) -> (i32, i32) {
    %c0_i32 = arith.constant 0 : i32
    %c0_i32_0 = arith.constant 0 : i32
    return %c0_i32, %arg1 : i32, i32
  }
  func.func @transform_2(%arg0: i32, %arg1: i32) -> (i32, i32) {
    %c0_i32 = arith.constant 0 : i32
    %c0_i32_0 = arith.constant 0 : i32
    return %c0_i32, %arg1 : i32, i32
  }
  func.func @transform_3(%arg0: i32, %arg1: i32) -> (i32, i32) {
    %c0_i32 = arith.constant 0 : i32
    %c0_i32_0 = arith.constant 0 : i32
    return %c0_i32, %arg1 : i32, i32
  }
  func.func @transform_4(%arg0: i32, %arg1: i32) -> (i32, i32) {
    %c0_i32 = arith.constant 0 : i32
    %c0_i32_0 = arith.constant 0 : i32
    return %c0_i32, %arg1 : i32, i32
  }
  func.func @transform_5(%arg0: i32, %arg1: i32) -> (i32, i32, i32) {
    %c0_i32 = arith.constant 0 : i32
    %c0_i32_0 = arith.constant 0 : i32
    return %arg0, %c0_i32, %arg1 : i32, i32, i32
  }
}

</mosaic_0001>

<bundles_post_ra>
// kernel: ppeg_forward.1
= control target key start
LH: loop header
LB: loop body
LE: loop exit
PB: predicated region body
PF: predicated region fallthrough
CT: control target
= control target key end

     0   :  { %10 = vsyncpa [#allocation5], 0  ;;  %s6774_s0 = inlined_call_operand.hbm [shape: f32[2,65,128], index: 0, kind: input, shape index: {}]   ;;  %s6775_s1 = inlined_call_operand.hbm [shape: f32[49,128], index: 1, kind: input, shape index: {}]   ;;  %s6776_s2 = inlined_call_operand.hbm [shape: f32[25,128], index: 2, kind: input, shape index: {}]   ;;  %s6777_s3 = inlined_call_operand.hbm [shape: f32[9,128], index: 3, kind: input, shape index: {}]   ;;  %s6778_s4 = inlined_call_operand.hbm [shape: f32[1,128], index: 4, kind: input, shape index: {}]   ;;  %s6779_s5 = inlined_call_operand.hbm [shape: f32[2,65,128], index: 5, kind: output, shape index: {}]  }
   0x1   :  { %12 = vsyncpa [#allocation5 + $0x1], 0 }
   0x2   :  { %13 = vsyncpa [#allocation8], 0 }
   0x3   :  { %14 = vsyncpa [#allocation11], 0 }
   0x4   :  { %15 = vsyncpa [#allocation6], 0 }
   0x5   :  { %17 = vsyncpa [#allocation6 + $0x1], 0  ;;  %s3530_s18 = smov 0   ;;  %s3532_s19 = smov 0  }
   0x6   :  { %s3534_s20 = smov 0   ;;  %s3536_s21 = smov 0  }
   0x7   :  { %s3538_s22 = smov 0   ;;  %s3540_s23 = smov 0  }
   0x8 LB: > { %6922 = sst [smem:[#allocation18_spill]] %s3467_s18  ;;  %s2940_s24 = sadd.s32 4294967295, %s3487_s23   ;;  %s3487_s23 = sphi %s3540_s23, %s23_s23   ;;  %s3483_s22 = sphi %s3538_s22, %s7828_s22   ;;  %s3479_s21 = sphi %s3536_s21, %s7827_s21   ;;  %s3475_s20 = sphi %s3534_s20, %s7826_s20   ;;  %s3471_s19 = sphi %s3532_s19, %s7825_s19   ;;  %s3467_s18 = sphi %s3530_s18, %s7824_s18  }
   0x9   : > { %s2941_s25 = sadd.s32 4294967294, %s3487_s23   ;;  %p57_p0 = scmp.ne.s32.totalorder %s3471_s19, %s3467_s18 }
   0xa   : > { %p3564_p1 = scmp.eq.s32.totalorder %s2940_s24, 0  ;;  %p3568_p2 = scmp.eq.s32.totalorder %s2940_s24, 1 }
   0xb   : > { %p193_p3 = scmp.eq.s32.totalorder %s2941_s25, 1  ;;  %p2942_p5 = scmp.ge.s32.totalorder %s3487_s23, 1 }
   0xc   : > { %s6923_s26 = scalar_select %p3564_p1, 1, 0 }
   0xd   : > { %s6924_s27 = scalar_select %p3568_p2, 1, 0 }
   0xe   : > { %p3574_p4 = por %p3564_p1, %p57_p0  ;;  %p3579_p6 = por %p193_p3, %p57_p0 }
   0xf   : > { %p200_p7 = scmp.lt.s32.totalorder %s3487_s23, 3  ;;  %s3489_s6 = smov [#allocation7]  }
  0x10   : > { %s6925_s28 = scalar_select %p3574_p4, 1, 0 }
  0x11   : > { %s6926_s29 = scalar_select %p3579_p6, 1, 0 }
  0x12   : > { %p3584_p8 = pnand %p2942_p5, %p200_p7  ;;  %s214_s7 = sshll.u32 %s3489_s6, 4  ;;  %s3588_s7 = int_to_ptr.vmem [resolvable:$true] %s214_s7 }
  0x13   : > { %6927 = sst [smem:[#allocation19_spill]] %s6926_s29  ;;  %s3490_s9 = smov [#allocation10]  }
  0x14   : > { %s6928_s30 = scalar_select %p3584_p8, 1, 0 }
  0x15   : > { %p3065_p9 = pneg %p3584_p8  ;;  %s244_s10 = sshll.u32 %s3490_s9, 4  ;;  %s3599_s10 = int_to_ptr.vmem [resolvable:$true] %s244_s10 }
  0x16   : > { %s3491_s11 = smov [#allocation9]   ;;  %s3255_s15 = scalar_lea.hbm %s6775_s1, 896 }
  0x17   : > { %p3595_p11 = pnand %p3065_p9, %p3564_p1  ;;  %s3601_s12 = sshll.u32 %s3491_s11, 4  ;;  %s230_s12 = int_to_ptr.vmem [resolvable:$true] %s3601_s12 }
  0x18   : > { %p3256_p12 = scmp.ne.s32.totalorder %s6775_s1, %s3255_s15  ;;  %p3262_p5 = scmp.lt.u32.totalorder %s3255_s15, %s6775_s1 }
  0x19   : > { %p3611_p13 = pneg %p3595_p11 }
  0x1b   : > { %p3258_p0 = pnand %p3611_p13, %p3256_p12 }
  0x1d   : > { %p3259_p3 = pneg %p3258_p0 }
  0x1f   : > { %p3264_p7 = pnand %p3262_p5, %p3259_p3 }
  0x21   : > { %3267 = shalt.err (!%p3264_p7)
}
  0x22   : > { %s3268_s9 = scalar_lea.vmem %s3588_s7, 896  ;;  %p3276_p1 = scmp.lt.s32.totalorder %s3588_s7, %s3588_s7 }
  0x23   : > { %p3269_p9 = scmp.ne.s32.totalorder %s3588_s7, %s3268_s9  ;;  %p3277_p4 = scmp.lt.s32.totalorder %s3268_s9, %s3268_s9 }
  0x25   : > { %p3271_p10 = pnand %p3269_p9, %p3611_p13  ;;  %p3278_p12 = por %p3277_p4, %p3276_p1 }
  0x27   : > { %p3272_p6 = pneg %p3271_p10 }
  0x29   : > { %p3279_p0 = pnand %p3278_p12, %p3272_p6 }
  0x2b   : > { %3282 = shalt.err (!%p3279_p0)
}
  0x2c   : > { %s3492_s11 = smov 128   ;;  %s3493_s13 = smov 8  }
  0x2d   : > { %3068 = dma.hbm_to_vmem [thread:$0]  (!%p3595_p11), %s6775_s1, 896, %s3588_s7, [#allocation8], %s3492_s11, %s3492_s11, %s3493_s13  }
  0x2e   : > { %s3283_s25 = scalar_lea.hbm %s6777_s3, 256 }
  0x2f   : > { %p3284_p1 = scmp.ne.s32.totalorder %s6777_s3, %s3283_s25  ;;  %p3290_p10 = scmp.lt.u32.totalorder %s3283_s25, %s6777_s3 }
  0x31   : > { %p3286_p4 = pnand %p3284_p1, %p3611_p13 }
  0x33   : > { %p3287_p6 = pneg %p3286_p4 }
  0x35   : > { %p3292_p3 = pnand %p3290_p10, %p3287_p6 }
  0x37   : > { %3295 = shalt.err (!%p3292_p3)
}
  0x38   : > { %s3296_s7 = scalar_lea.vmem %s3599_s10, 256  ;;  %p3304_p12 = scmp.lt.s32.totalorder %s3599_s10, %s3599_s10 }
  0x39   : > { %p3297_p5 = scmp.ne.s32.totalorder %s3599_s10, %s3296_s7  ;;  %p3305_p0 = scmp.lt.s32.totalorder %s3296_s7, %s3296_s7 }
  0x3b   : > { %p3299_p7 = pnand %p3297_p5, %p3611_p13  ;;  %p3306_p1 = por %p3305_p0, %p3304_p12 }
  0x3d   : > { %p3300_p9 = pneg %p3299_p7 }
  0x3f   : > { %p3307_p4 = pnand %p3306_p1, %p3300_p9 }
  0x41   : > { %3310 = shalt.err (!%p3307_p4)
}
  0x42   : > { %3074 = dma.hbm_to_vmem [thread:$0]  (!%p3595_p11), %s6777_s3, 256, %s3599_s10, [#allocation11], %s3492_s11, %s3492_s11, %s3493_s13  }
  0x43   : > { %s3311_s16 = scalar_lea.hbm %s6776_s2, 512 }
  0x44   : > { %p3312_p6 = scmp.ne.s32.totalorder %s6776_s2, %s3311_s16  ;;  %p3318_p5 = scmp.lt.u32.totalorder %s3311_s16, %s6776_s2 }
  0x46   : > { %p3314_p10 = pnand %p3312_p6, %p3611_p13 }
  0x48   : > { %p3315_p3 = pneg %p3314_p10 }
  0x4a   : > { %p3320_p7 = pnand %p3318_p5, %p3315_p3 }
  0x4c   : > { %3323 = shalt.err (!%p3320_p7)
}
  0x4d   : > { %s3324_s7 = scalar_lea.vmem %s230_s12, 512  ;;  %p3332_p1 = scmp.lt.s32.totalorder %s230_s12, %s230_s12 }
  0x4e   : > { %p3325_p9 = scmp.ne.s32.totalorder %s230_s12, %s3324_s7  ;;  %p3333_p4 = scmp.lt.s32.totalorder %s3324_s7, %s3324_s7 }
  0x50   : > { %p3327_p12 = pnand %p3325_p9, %p3611_p13  ;;  %p3334_p8 = por %p3333_p4, %p3332_p1 }
  0x52   : > { %p3328_p0 = pneg %p3327_p12 }
  0x54   : > { %p3335_p2 = pnand %p3334_p8, %p3328_p0 }
  0x56   : > { %3338 = shalt.err (!%p3335_p2)
}
  0x57   : > { %3071 = dma.hbm_to_vmem [thread:$0]  (!%p3595_p11), %s6776_s2, 512, %s230_s12, [#allocation8], %s3492_s11, %s3492_s11, %s3493_s13  }
  0x58   : > { %s3494_s29 = smov [#allocation12]   ;;  %s3339_s17 = scalar_lea.hbm %s6778_s4, 16 }
  0x59   : > { %s260_s14 = sshll.u32 %s3494_s29, 4  ;;  %p3340_p2 = scmp.ne.s32.totalorder %s6778_s4, %s3339_s17  ;;  %s261_s14 = int_to_ptr.vmem [resolvable:$true] %s260_s14 }
  0x5a   : > { %p3346_p10 = scmp.lt.u32.totalorder %s3339_s17, %s6778_s4 }
  0x5b   : > { %p3342_p8 = pnand %p3340_p2, %p3611_p13 }
  0x5d   : > { %p3343_p6 = pneg %p3342_p8 }
  0x5f   : > { %p3348_p3 = pnand %p3346_p10, %p3343_p6 }
  0x61   : > { %3351 = shalt.err (!%p3348_p3)
}
  0x62   : > { %s3352_s12 = scalar_lea.vmem %s261_s14, 16  ;;  %s3359_s10 = scalar_lea.vmem %s261_s14, 32 }
  0x63   : > { %p3353_p5 = scmp.ne.s32.totalorder %s261_s14, %s3352_s12  ;;  %p3360_p12 = scmp.lt.s32.totalorder %s261_s14, %s261_s14 }
  0x64   : > { %p3361_p0 = scmp.lt.s32.totalorder %s3359_s10, %s3352_s12 }
  0x65   : > { %p3355_p7 = pnand %p3353_p5, %p3611_p13 }
  0x66   : > { %p3362_p1 = por %p3361_p0, %p3360_p12 }
  0x67   : > { %p3356_p9 = pneg %p3355_p7 }
  0x69   : > { %p3363_p4 = pnand %p3362_p1, %p3356_p9 }
  0x6b   : > { %3366 = shalt.err (!%p3363_p4)
}
  0x6c   : > { %3077 = dma.hbm_to_vmem [thread:$0]  (!%p3595_p11), %s6778_s4, 16, %s261_s14, [#allocation11]  }
  0x6d   : > { %s35_s24 = sadd.s32 1, %s3483_s22  ;;  %s44_s15 = sadd.s32 1, %s3475_s20 }
  0x6e   : > { %p37_p13 = scmp.ge.s32.totalorder %s35_s24, 2  ;;  %p51_p2 = scmp.ne.s32.totalorder %s3475_s20, %s3471_s19 }
  0x6f   : > { %p52_p8 = scmp.eq.s32.totalorder %s3487_s23, 0  ;;  %p3090_p6 = scmp.lt.s32.totalorder %s3487_s23, 2 }
  0x70   : > { %s7830_s24 = smov (%p37_p13, %s35_s24), 0  ;;  %p6931_p3 = scmp.ne.s32.totalorder %s6924_s27, 0 }
  0x71   : > { %p53_p10 = por %p52_p8, %p51_p2  ;;  %s39_s16 = ssub.s32 %s3483_s22, %s7830_s24 }
  0x72   : > { %p3711_p5 = por %p6931_p3, %p51_p2  ;;  %s271_s17 = sand.u32 1, %s3475_s20  }
  0x73   : > { %p42_p7 = scmp.eq.s32.totalorder %s39_s16, 0  ;;  %s3041_s14 = smul.u32 72, %s271_s17 }
  0x74   : > { %p3718_p11 = pnand %p3090_p6, %p53_p10  ;;  %s3042_s9 = smul.u32 1152, %s3483_s22 }
  0x75   : > { %s3723_s6 = scalar_select %p42_p7, %s3475_s20, %s44_s15  }
  0x76   : > { %s275_s7 = scalar_lea.vmem [#allocation4], %s3041_s14  ;;  %s3729_s18 = scalar_lea.hbm %s6774_s0, %s3042_s9 }
  0x77   : > { %s283_s12 = sshll.u32 %s275_s7, 4  ;;  %s3733_s29 = scalar_lea.sflag [#allocation5], %s271_s17  ;;  %s3731_s12 = int_to_ptr.vmem [resolvable:$true] %s283_s12 }
  0x78   : > { %s3367_s16 = scalar_lea.hbm %s3729_s18, 1152  ;;  %p3369_p12 = pneg %p3718_p11 }
  0x79   : > { %p3368_p9 = scmp.ne.s32.totalorder %s3729_s18, %s3367_s16  ;;  %s3372_s9 = scalar_lea.hbm %s6774_s0, 2304 }
  0x7a   : > { %p3373_p4 = scmp.lt.u32.totalorder %s3729_s18, %s6774_s0  ;;  %p3374_p13 = scmp.lt.u32.totalorder %s3372_s9, %s3367_s16 }
  0x7b   : > { %p3370_p0 = pnand %p3369_p12, %p3368_p9  ;;  %p3376_p8 = scmp.lt.u32.totalorder %s3367_s16, %s3729_s18 }
  0x7c   : > { %p3375_p2 = por %p3374_p13, %p3373_p4 }
  0x7d   : > { %p3371_p1 = pneg %p3370_p0 }
  0x7e   : > { %p3377_p6 = por %p3376_p8, %p3375_p2 }
  0x80   : > { %p3378_p10 = pnand %p3377_p6, %p3371_p1 }
  0x82   : > { %3381 = shalt.err (!%p3378_p10)
}
  0x83   : > { %s3382_s17 = scalar_lea.vmem %s3731_s12, 1152  ;;  %s3495_s10 = smov [#allocation4]  }
  0x84   : > { %p3383_p3 = scmp.ne.s32.totalorder %s3731_s12, %s3382_s17  ;;  %s3387_s15 = sshll.u32 %s3495_s10, 4  ;;  %s3388_s15 = int_to_ptr.vmem [resolvable:$false] %s3387_s15 }
  0x85   : > { %s3389_s14 = scalar_lea.vmem %s3388_s15, 2304  ;;  %p3390_p0 = scmp.lt.s32.totalorder %s3731_s12, %s3388_s15 }
  0x86   : > { %p3385_p7 = pnand %p3383_p3, %p3369_p12  ;;  %p3391_p4 = scmp.lt.s32.totalorder %s3389_s14, %s3382_s17 }
  0x88   : > { %p3386_p9 = pneg %p3385_p7  ;;  %p3392_p13 = por %p3391_p4, %p3390_p0 }
  0x8a   : > { %p3393_p2 = pnand %p3392_p13, %p3386_p9 }
  0x8c   : > { %3396 = shalt.err (!%p3393_p2)
}
  0x8d   : > { %3081 = dma.hbm_to_vmem [thread:$0]  (!%p3718_p11), %s3729_s18, 1152, %s3731_s12, %s3733_s29, %s3492_s11, %s3492_s11, %s3493_s13  }
  0x8e   : > { %p6934_p12 = scmp.ne.s32.totalorder %s6928_s30, 0 }
  0x90   : > { %295 = sbr.rel (%p6934_p12) target bundleno = 632 (0x278), region = 40 }
  0x97   : > { %s3767_s16 = sand.u32 1, %s3471_s19   ;;  %p6935_p1 = scmp.ne.s32.totalorder %s6925_s28, 0 }
  0x98   : > { %s3043_s9 = smul.u32 72, %s3767_s16  ;;  %s298_s7 = scalar_lea.sflag [#allocation5], %s3767_s16 }
  0x9a   : > { %s3773_s25 = scalar_lea.vmem [#allocation4], %s3043_s9 }
  0x9b   : > { %3450 = dma.done.wait (%p6935_p1), %s298_s7, 1152  }
  0x9c   : > { %3452 = vsyncadd (%p6935_p1), %s298_s7, 4294966144  ;;  %p6936_p11 = scmp.ne.s32.totalorder %s6923_s26, 0 }
  0x9e   : > { %3454 = dma.done.wait (%p6936_p11), [#allocation8], 1408  }
  0x9f   : > { %3456 = vsyncadd (%p6936_p11), [#allocation8], 4294965888 }
  0xa0   : > { %3458 = dma.done.wait (%p6936_p11), [#allocation11], 272  }
  0xa1   : > { %3460 = vsyncadd (%p6936_p11), [#allocation11], 4294967024  ;;  %v3496_v0 = vmov 0.0   ;;  %v3787_v1 = vld [vmem:[#allocation7] ss:$0 sm:$0xff]  ;;  %s5147_s26 = scalar_lea.vmem [#allocation13], %s3043_s9 }
  0xa2   : > { %346 = vst [vmem:[#allocation2] sm:$0xff] %v3496_v0  ;;  %347 = vst [vmem:[#allocation2 + $0x8] sm:$0x3f] %v3496_v0  ;;  %v3793_v5 = vld [vmem:[#allocation7 + $0x1] ss:$0 sm:$0xff]  ;;  %v3808_v16 = vmul.f32 0.0, %v3787_v1 }
  0xa3   : > { %348 = vst [vmem:[#allocation2 + $0x10] sm:$0xff] %v3496_v0  ;;  %349 = vst [vmem:[#allocation2 + $0x18] sm:$0x3f] %v3496_v0  ;;  %v3795_v6 = vld [vmem:[#allocation7 + $0x2] ss:$0 sm:$0xff]  ;;  %v3827_v26 = vld [vmem:[%s3773_s25 + $0x1] sm:$0xff] }
  0xa4   : > { %350 = vst [vmem:[#allocation2 + $0x20] sm:$0xff] %v3496_v0  ;;  %351 = vst [vmem:[#allocation2 + $0x28] sm:$0x3f] %v3496_v0  ;;  %v3803_v14 = vld [vmem:[#allocation7 + $0x3] ss:$0 sm:$0xff]  ;;  %s2809_s28 = sshll.u32 %s5147_s26, 4  ;;  %s6717_s28 = int_to_ptr.vmem [resolvable:$true] %s2809_s28 }
  0xa5   : > { %353 = vst [vmem:[#allocation2 + $0xb0] sm:$0xff] %v3496_v0  ;;  %354 = vst [vmem:[#allocation2 + $0xb8] sm:$0x3f] %v3496_v0  ;;  %v3805_v15 = vld [vmem:[#allocation7 + $0x4] ss:$0 sm:$0xff]  ;;  %s3044_s30 = smul.u32 1152, %s3479_s21 }
  0xa6   : > { %355 = vst [vmem:[#allocation2 + $0xc0] sm:$0xff] %v3496_v0  ;;  %356 = vst [vmem:[#allocation2 + $0xc8] sm:$0x3f] %v3496_v0  ;;  %v3843_v31 = vld [vmem:[#allocation7 + $0x5] ss:$0 sm:$0xff]  ;;  %s2795_s18 = scalar_lea.sflag [#allocation6], %s3767_s16 }
  0xa7   : > { %357 = vst [vmem:[#allocation2 + $0xd0] sm:$0xff] %v3496_v0  ;;  %358 = vst [vmem:[#allocation2 + $0xd8] sm:$0x3f] %v3496_v0  ;;  %v3845_v32 = vld [vmem:[#allocation7 + $0x6] ss:$0 sm:$0xff]  ;;  %s6724_s12 = scalar_lea.hbm %s6779_s5, %s3044_s30  ;;  %s3397_s29 = scalar_lea.vmem %s6717_s28, 1152 }
  0xa8   : > { %360 = vst [vmem:[#allocation2 + $0x30] sm:$0x7] %v3496_v0  ;;  %361 = vst [vmem:[#allocation2 + $0x40] sm:$0x7] %v3496_v0  ;;  %v3848_v33 = vld [vmem:[#allocation12] ss:$0 sm:$0xff]  ;;  %p3398_p8 = scmp.ne.s32.totalorder %s6717_s28, %s3397_s29 }
  0xa9   : > { %362 = vst [vmem:[#allocation2 + $0x50] sm:$0x7] %v3496_v0  ;;  %363 = vst [vmem:[#allocation2 + $0x60] sm:$0x7] %v3496_v0  ;;  %v420_v2 = vld [vmem:[#allocation2 + $0x1] sm:$0xff]  ;;  %v610_v40 = vadd.f32 %v3848_v33, %v3827_v26  ;;  %v377_v54 = vld [vmem:[%s3773_s25 + $0x9] sm:$0xff] }
  0xaa   : > { %364 = vst [vmem:[#allocation2 + $0x70] sm:$0x7] %v3496_v0  ;;  %365 = vst [vmem:[#allocation2 + $0x80] sm:$0x7] %v3496_v0  ;;  %v3789_v3 = vld [vmem:[#allocation2 + $0x11] sm:$0xff]  ;;  %v449_v7 = vld [vmem:[#allocation2 + $0x2] sm:$0xff]  ;;  %v660_v22 = vmul.f32 %v3793_v5, %v420_v2  ;;  %p3399_p6 = pnand %p3398_p8, %p3711_p5 }
  0xab   : > { %366 = vst [vmem:[#allocation2 + $0x90] sm:$0x7] %v3496_v0  ;;  %367 = vst [vmem:[#allocation2 + $0xa0] sm:$0x7] %v3496_v0  ;;  %v3791_v4 = vld [vmem:[#allocation2 + $0x21] sm:$0xff]  ;;  %v3797_v8 = vld [vmem:[#allocation2 + $0x12] sm:$0xff]  ;;  %v3817_v23 = vmul.f32 %v3793_v5, %v3789_v3  ;;  %v3824_v25 = vmul.f32 %v3795_v6, %v449_v7  ;;  %v639_v53 = vadd.f32 %v3808_v16, %v610_v40 }
  0xac   : > { %368 = vst [vmem:[#allocation2 + $0x3b] sm:$0x7] %v3496_v0  ;;  %369 = vst [vmem:[#allocation2 + $0x4b] sm:$0x7] %v3496_v0  ;;  %v478_v9 = vld [vmem:[#allocation2 + $0x3] sm:$0xff]  ;;  %v3799_v10 = vld [vmem:[#allocation2 + $0x13] sm:$0xff]  ;;  %v3821_v24 = vmul.f32 %v3793_v5, %v3791_v4  ;;  %v3831_v27 = vmul.f32 %v3795_v6, %v3797_v8  ;;  %p3400_p10 = pneg %p3399_p6 }
  0xad   : > { %370 = vst [vmem:[#allocation2 + $0x5b] sm:$0x7] %v3496_v0  ;;  %371 = vst [vmem:[#allocation2 + $0x6b] sm:$0x7] %v3496_v0  ;;  %v507_v11 = vld [vmem:[#allocation2 + $0x4] sm:$0xff]  ;;  %v3801_v12 = vld [vmem:[#allocation2 + $0x14] sm:$0xff]  ;;  %v3834_v28 = vmul.f32 %v3803_v14, %v478_v9  ;;  %v3838_v29 = vmul.f32 %v3803_v14, %v3799_v10 }
  0xae   : > { %372 = vst [vmem:[#allocation2 + $0x7b] sm:$0x7] %v3496_v0  ;;  %373 = vst [vmem:[#allocation2 + $0x8b] sm:$0x7] %v3496_v0  ;;  %v536_v13 = vld [vmem:[#allocation2 + $0x5] sm:$0xff]  ;;  %v3810_v17 = vld [vmem:[#allocation2 + $0x15] sm:$0xff]  ;;  %v3841_v30 = vmul.f32 %v3805_v15, %v507_v11  ;;  %v3852_v34 = vmul.f32 %v3805_v15, %v3801_v12 }
  0xaf   : > { %374 = vst [vmem:[#allocation2 + $0x9b] sm:$0x7] %v3496_v0  ;;  %375 = vst [vmem:[#allocation2 + $0xab] sm:$0x7] %v3496_v0  ;;  %v3812_v18 = vld [vmem:[#allocation2 + $0x25] sm:$0xff]  ;;  %v566_v20 = vld [vmem:[#allocation2 + $0x16] sm:$0xff]  ;;  %v3855_v35 = vmul.f32 %v3843_v31, %v536_v13  ;;  %v3859_v36 = vmul.f32 %v3843_v31, %v3810_v17 }
  0xb0   : > { %6937 = vst [vmem:[#allocation20_spill] sm:$0xff] %v3795_v6  ;;  %6938 = vst [vmem:[#allocation21_spill] sm:$0xff] %v3803_v14  ;;  %v565_v19 = vld [vmem:[#allocation2 + $0x6] sm:$0xff]  ;;  %v3861_v37 = vld [vmem:[#allocation7 + $0x7] ss:$0 sm:$0xff]  ;;  %v3871_v41 = vmul.f32 %v3843_v31, %v3812_v18  ;;  %v3877_v43 = vmul.f32 %v3845_v32, %v566_v20  ;;  %s3497_s21 = smov [#allocation13]  }
  0xb1   : > { %6939 = vst [vmem:[#allocation22_spill] sm:$0xff] %v3805_v15  ;;  %6940 = vst [vmem:[#allocation23_spill] sm:$0xff] %v3808_v16  ;;  %v567_v21 = vld [vmem:[#allocation2 + $0x26] sm:$0xff]  ;;  %v3863_v38 = vld [vmem:[#allocation7 + $0x8] ss:$0 sm:$0xff]  ;;  %v3874_v42 = vmul.f32 %v3845_v32, %v565_v19  ;;  %v3889_v48 = vmul.f32 0.0, %v3861_v37 }
  0xb2   : > { %6941 = vst [vmem:[#allocation24_spill] sm:$0xff] %v3817_v23  ;;  %6942 = vst [vmem:[#allocation25_spill] sm:$0xff] %v3821_v24  ;;  %v3865_v39 = vld [vmem:[#allocation7 + $0xa] ss:$0 sm:$0xff]  ;;  %v3880_v44 = vmul.f32 %v3845_v32, %v567_v21  ;;  %v3882_v45 = vld [vmem:[#allocation7 + $0x9] ss:$0 sm:$0xff]  ;;  %v3893_v49 = vmul.f32 %v3863_v38, %v3789_v3  ;;  %v3897_v50 = vmul.f32 %v3863_v38, %v3791_v4 }
  0xb3   : > { %6943 = vst [vmem:[#allocation26_spill] sm:$0xff] %v3831_v27  ;;  %6944 = vst [vmem:[#allocation27_spill] sm:$0xff] %v3838_v29  ;;  %v3884_v46 = vld [vmem:[#allocation7 + $0xb] ss:$0 sm:$0xff]  ;;  %v3886_v47 = vld [vmem:[#allocation7 + $0xc] ss:$0 sm:$0xff]  ;;  %v3907_v55 = vmul.f32 %v3882_v45, %v3797_v8  ;;  %v3911_v56 = vmul.f32 %v3865_v39, %v3799_v10 }
  0xb4   : > { %6945 = vst [vmem:[#allocation28_spill] sm:$0xff] %v3841_v30  ;;  %384 = vst [vmem:[#allocation2 + $0x33] sm:$0xff] %v3827_v26  ;;  %v3899_v51 = vld [vmem:[#allocation7 + $0xd] ss:$0 sm:$0xff]  ;;  %v3901_v52 = vld [vmem:[#allocation7 + $0xe] ss:$0 sm:$0xff]  ;;  %v3915_v57 = vmul.f32 %v3884_v46, %v3801_v12  ;;  %v3919_v58 = vmul.f32 %v3886_v47, %v3810_v17  ;;  %v3931_v63 = vmul.f32 %v3886_v47, %v3812_v18 }
  0xb5   : > { %6946 = vst [vmem:[#allocation29_spill] sm:$0xff] %v3852_v34  ;;  %6947 = vst [vmem:[#allocation30_spill] sm:$0xff] %v3855_v35  ;;  %v3921_v59 = vld [vmem:[#allocation7 + $0xf] ss:$0 sm:$0xff]  ;;  %v3923_v60 = vld [vmem:[#allocation7 + $0x13] ss:$0 sm:$0xff]  ;;  %v3934_v0 = vmul.f32 %v3899_v51, %v566_v20  ;;  %v3937_v2 = vmul.f32 %v3899_v51, %v567_v21 }
  0xb6   : > { %6948 = vst [vmem:[#allocation31_spill] sm:$0xff] %v3859_v36  ;;  %6949 = vst [vmem:[#allocation32_spill] sm:$0xff] %v3865_v39  ;;  %v3925_v61 = vld [vmem:[#allocation9 + $0x2] ss:$0 sm:$0xff]  ;;  %v3927_v62 = vld [vmem:[#allocation2 + $0xb1] sm:$0xff]  ;;  %v3940_v7 = vmul.f32 0.0, %v3901_v52  ;;  %v3953_v20 = vmul.f32 %v3921_v59, %v3791_v4 }
  0xb7   : > { %6950 = vst [vmem:[#allocation33_spill] sm:$0xff] %v3871_v41  ;;  %6951 = vst [vmem:[#allocation34_spill] sm:$0xff] %v3874_v42  ;;  %v3942_v9 = vld [vmem:[#allocation7 + $0x14] ss:$0 sm:$0xff]  ;;  %v3944_v11 = vld [vmem:[#allocation9] ss:$0 sm:$0xff] }
  0xb8   : > { %6952 = vst [vmem:[#allocation35_spill] sm:$0xff] %v3877_v43  ;;  %6953 = vst [vmem:[#allocation36_spill] sm:$0xff] %v3880_v44  ;;  %v3947_v13 = vld [vmem:[%s3773_s25 + $0x11] sm:$0xff]  ;;  %v4052_v41 = vld [vmem:[%s3773_s25 + $0x21] sm:$0xff]  ;;  %s3401_s27 = sshll.u32 %s3497_s21, 4  ;;  %s3402_s27 = int_to_ptr.vmem [resolvable:$false] %s3401_s27 }
  0xb9   : > { %6954 = vst [vmem:[#allocation37_spill] sm:$0xff] %v3882_v45  ;;  %6955 = vst [vmem:[#allocation38_spill] sm:$0xff] %v3884_v46  ;;  %v518_v19 = vld [vmem:[#allocation2 + $0xb4] sm:$0xff]  ;;  %v3992_v44 = vld [vmem:[#allocation9 + $0x9] ss:$0 sm:$0xff]  ;;  %s3403_s17 = scalar_lea.vmem %s3402_s27, 2304  ;;  %p3404_p3 = scmp.lt.s32.totalorder %s6717_s28, %s3402_s27 }
  0xba   : > { %6956 = vst [vmem:[#allocation39_spill] sm:$0xff] %v3886_v47  ;;  %6957 = vst [vmem:[#allocation40_spill] sm:$0xff] %v3889_v48  ;;  %v547_v40 = vld [vmem:[#allocation2 + $0xb5] sm:$0xff]  ;;  %v4115_v23 = vld [vmem:[#allocation7 + $0x12] ss:$0 sm:$0xff]  ;;  %p3405_p7 = scmp.lt.s32.totalorder %s3403_s17, %s3397_s29 }
  0xbb   : > { %6958 = vst [vmem:[#allocation41_spill] sm:$0xff] %v3893_v49  ;;  %6959 = vst [vmem:[#allocation42_spill] sm:$0xff] %v3897_v50  ;;  %v3968_v50 = vld [vmem:[%s3773_s25 + $0x19] sm:$0xff] }
  0xbc   : > { %6960 = vst [vmem:[#allocation43_spill] sm:$0xff] %v3907_v55  ;;  %6961 = vst [vmem:[#allocation44_spill] sm:$0xff] %v3911_v56  ;;  %v3970_v56 = vld [vmem:[#allocation2 + $0xc6] sm:$0xff]  ;;  %v395_v55 = vld [vmem:[#allocation2 + $0x30] sm:$0xff]  ;;  %v4101_v29 = vmul.f32 %v3925_v61, %v3968_v50  ;;  %p3406_p9 = por %p3405_p7, %p3404_p3 }
  0xbd   : > { %6962 = vst [vmem:[#allocation45_spill] sm:$0xff] %v3915_v57  ;;  %6963 = vst [vmem:[#allocation46_spill] sm:$0xff] %v3919_v58  ;;  %v3949_v58 = vld [vmem:[#allocation2 + $0xb6] sm:$0xff]  ;;  %v668_v57 = vadd.f32 %v660_v22, %v639_v53  ;;  %v3986_v22 = vmul.f32 %v3925_v61, %v3799_v10  ;;  %v3988_v53 = vld [vmem:[#allocation9 + $0x4] ss:$0 sm:$0xff]  ;;  %v4089_v42 = vmul.f32 %v3787_v1, %v395_v55 }
  0xbe   : > { %6964 = vst [vmem:[#allocation47_spill] sm:$0xff] %v3925_v61  ;;  %385 = vst [vmem:[#allocation2 + $0x43] sm:$0xff] %v377_v54  ;;  %v4005_v10 = vmul.f32 %v3988_v53, %v3812_v18  ;;  %v452_v49 = vld [vmem:[#allocation2 + $0x32] sm:$0xff]  ;;  %v4113_v30 = vmul.f32 %v3861_v37, %v395_v55  ;;  %v4117_v16 = vld [vmem:[#allocation7 + $0x15] ss:$0 sm:$0xff]  ;;  %p3407_p0 = pnand %p3406_p9, %p3400_p10 }
  0xbf   : > { %6965 = vst [vmem:[#allocation48_spill] sm:$0xff] %v3927_v62  ;;  %6966 = vst [vmem:[#allocation49_spill] sm:$0xff] %v3931_v63  ;;  %v3960_v63 = vmul.f32 %v3942_v9, %v567_v21  ;;  %v510_v36 = vld [vmem:[#allocation2 + $0x34] sm:$0xff]  ;;  %v4104_v35 = vmul.f32 %v3795_v6, %v452_v49 }
  0xc0   : > { %6967 = vst [vmem:[#allocation50_spill] sm:$0xff] %v3934_v0  ;;  %6968 = vst [vmem:[#allocation51_spill] sm:$0xff] %v3937_v2  ;;  %v3957_v2 = vmul.f32 %v3923_v60, %v3812_v18  ;;  %v3964_v0 = vld [vmem:[#allocation9 + $0x3] ss:$0 sm:$0xff]  ;;  %v4110_v24 = vmul.f32 %v3805_v15, %v510_v36 }
  0xc1   : > { %6969 = vst [vmem:[#allocation52_spill] sm:$0xff] %v3940_v7  ;;  %6970 = vst [vmem:[#allocation53_spill] sm:$0xff] %v3942_v9  ;;  %v3962_v7 = vld [vmem:[#allocation9 + $0x1] ss:$0 sm:$0xff] }
  0xc2   : > { %6971 = vst [vmem:[#allocation54_spill] sm:$0xff] %v3947_v13  ;;  %6972 = vst [vmem:[#allocation55_spill] sm:$0xff] %v3949_v58  ;;  %v3982_v21 = vmul.f32 %v3962_v7, %v3797_v8  ;;  %v4001_v8 = vmul.f32 %v3988_v53, %v3810_v17  ;;  %v4023_v17 = vmul.f32 %v3803_v14, %v3827_v26 }
  0xc3   : > { %6973 = vst [vmem:[#allocation56_spill] sm:$0xff] %v3953_v20  ;;  %6974 = vst [vmem:[#allocation57_spill] sm:$0xff] %v3957_v2  ;;  %v3974_v20 = vmul.f32 %v3944_v11, %v3789_v3  ;;  %v3978_v2 = vmul.f32 %v3944_v11, %v3791_v4  ;;  %v3997_v3 = vmul.f32 %v3964_v0, %v3801_v12 }
  0xc4   : > { %6975 = vst [vmem:[#allocation58_spill] sm:$0xff] %v3960_v63  ;;  %386 = vst [vmem:[#allocation2 + $0x53] sm:$0xff] %v3947_v13  ;;  %v3990_v63 = vld [vmem:[#allocation9 + $0x5] ss:$0 sm:$0xff]  ;;  %v4019_v12 = vmul.f32 %v3992_v44, %v3812_v18  ;;  %v4038_v18 = vld [vmem:[#allocation2 + $0x31] sm:$0xff] }
  0xc5   : > { %6976 = vst [vmem:[#allocation59_spill] sm:$0xff] %v3970_v56  ;;  %6977 = vst [vmem:[#allocation60_spill] sm:$0xff] %v3974_v20  ;;  %v4015_v20 = vld [vmem:[#allocation7 + $0x20] ss:$0 sm:$0xff] }
  0xc6   : > { %6978 = vst [vmem:[#allocation61_spill] sm:$0xff] %v3978_v2  ;;  %6979 = vst [vmem:[#allocation62_spill] sm:$0xff] %v3982_v21  ;;  %v4009_v2 = vmul.f32 %v3990_v63, %v3791_v4  ;;  %v4013_v21 = vld [vmem:[#allocation7 + $0x1d] ss:$0 sm:$0xff]  ;;  %v4030_v4 = vmul.f32 %v3803_v14, %v377_v54  ;;  %v4055_v48 = vmul.f32 %v4015_v20, %v518_v19 }
  0xc7   : > { %6980 = vst [vmem:[#allocation63_spill] sm:$0xff] %v3986_v22  ;;  %6981 = vst [vmem:[#allocation64_spill] sm:$0xff] %v3988_v53  ;;  %v4011_v22 = vld [vmem:[#allocation7 + $0x1c] ss:$0 sm:$0xff]  ;;  %v4156_v14 = vmul.f32 %v4115_v23, %v510_v36 }
  0xc8   : > { %6982 = vst [vmem:[#allocation65_spill] sm:$0xff] %v3990_v63  ;;  %6983 = vst [vmem:[#allocation66_spill] sm:$0xff] %v3992_v44  ;;  %v4042_v43 = vmul.f32 0.0, %v4011_v22 }
  0xc9   : > { %387 = vst [vmem:[#allocation2 + $0x63] sm:$0xff] %v3968_v50  ;;  %6984 = vst [vmem:[#allocation67_spill] sm:$0xff] %v3997_v3  ;;  %v4036_v3 = vld [vmem:[#allocation7 + $0x23] ss:$0 sm:$0xff] }
  0xca   : > { %6985 = vst [vmem:[#allocation68_spill] sm:$0xff] %v4001_v8  ;;  %6986 = vst [vmem:[#allocation69_spill] sm:$0xff] %v4005_v10  ;;  %v4027_v10 = vmul.f32 %v3925_v61, %v3827_v26  ;;  %v4034_v8 = vld [vmem:[#allocation7 + $0x22] ss:$0 sm:$0xff]  ;;  %v4046_v26 = vmul.f32 %v4013_v21, %v3927_v62  ;;  %v4147_v61 = vmul.f32 %v3901_v52, %v395_v55 }
  0xcb   : > { %6987 = vst [vmem:[#allocation70_spill] sm:$0xff] %v4009_v2  ;;  %6988 = vst [vmem:[#allocation71_spill] sm:$0xff] %v4013_v21  ;;  %v4032_v2 = vld [vmem:[#allocation7 + $0x21] ss:$0 sm:$0xff] }
  0xcc   : > { %6989 = vst [vmem:[#allocation72_spill] sm:$0xff] %v4015_v20  ;;  %6990 = vst [vmem:[#allocation73_spill] sm:$0xff] %v4019_v12  ;;  %v697_v12 = vadd.f32 %v3824_v25, %v668_v57  ;;  %v4058_v34 = vmul.f32 %v4032_v2, %v547_v40  ;;  %v4062_v25 = vmul.f32 %v4034_v8, %v3949_v58  ;;  %v4064_v57 = vld [vmem:[#allocation7 + $0x29] ss:$0 sm:$0xff] }
  0xcd   : > { %6991 = vst [vmem:[#allocation74_spill] sm:$0xff] %v4027_v10  ;;  %6992 = vst [vmem:[#allocation75_spill] sm:$0xff] %v4030_v4  ;;  %v4049_v10 = vmul.f32 %v3865_v39, %v377_v54  ;;  %v539_v54 = vld [vmem:[#allocation2 + $0x35] sm:$0xff]  ;;  %v4072_v19 = vmul.f32 %v4064_v57, %v3949_v58  ;;  %v4076_v40 = vmul.f32 %v4064_v57, %v3970_v56  ;;  %v569_v56 = vld [vmem:[#allocation2 + $0x46] sm:$0xff] }
  0xce   : > { %6993 = vst [vmem:[#allocation76_spill] sm:$0xff] %v4032_v2  ;;  %6994 = vst [vmem:[#allocation77_spill] sm:$0xff] %v4034_v8  ;;  %v4107_v27 = vadd.f32 %v3834_v28, %v697_v12  ;;  %v4129_v28 = vmul.f32 %v3863_v38, %v4038_v18  ;;  %v4132_v12 = vmul.f32 %v3884_v46, %v510_v36 }
  0xcf   : > { %6995 = vst [vmem:[#allocation78_spill] sm:$0xff] %v4036_v3  ;;  %6996 = vst [vmem:[#allocation79_spill] sm:$0xff] %v4042_v43  ;;  %v568_v43 = vld [vmem:[#allocation2 + $0x36] sm:$0xff]  ;;  %v4207_v58 = vmul.f32 %v3990_v63, %v4038_v18 }
  0xd0   : > { %6997 = vst [vmem:[#allocation80_spill] sm:$0xff] %v4046_v26  ;;  %6998 = vst [vmem:[#allocation81_spill] sm:$0xff] %v4049_v10  ;;  %v4067_v26 = vmul.f32 0.0, %v4036_v3  ;;  %v4125_v62 = vmul.f32 %v3845_v32, %v568_v43  ;;  %v4168_v10 = vld [vmem:[%s3773_s25 + $0x29] sm:$0xff] }
  0xd1   : > { %6999 = vst [vmem:[#allocation82_spill] sm:$0xff] %v4055_v48  ;;  %7000 = vst [vmem:[#allocation83_spill] sm:$0xff] %v4058_v34  ;;  %v4082_v34 = vld [vmem:[#allocation7 + $0x11] ss:$0 sm:$0xff]  ;;  %v4086_v48 = vmul.f32 %v3865_v39, %v3947_v13  ;;  %v4138_v39 = vld [vmem:[#allocation7 + $0x1b] ss:$0 sm:$0xff] }
  0xd2   : > { %7001 = vst [vmem:[#allocation84_spill] sm:$0xff] %v4062_v25  ;;  %7002 = vst [vmem:[#allocation85_spill] sm:$0xff] %v4067_v26  ;;  %v4080_v25 = vadd.f32 %v3848_v33, %v3968_v50  ;;  %v4119_v26 = vld [vmem:[#allocation7 + $0x16] ss:$0 sm:$0xff] }
  0xd3   : > { %388 = vst [vmem:[#allocation2 + $0x73] sm:$0xff] %v4052_v41  ;;  %7003 = vst [vmem:[#allocation86_spill] sm:$0xff] %v4072_v19  ;;  %v4093_v19 = vmul.f32 %v3793_v5, %v4038_v18 }
  0xd4   : > { %7004 = vst [vmem:[#allocation87_spill] sm:$0xff] %v4076_v40  ;;  %7005 = vst [vmem:[#allocation88_spill] sm:$0xff] %v4082_v34  ;;  %v4097_v40 = vmul.f32 %v4082_v34, %v3947_v13  ;;  %v4159_v13 = vmul.f32 %v3923_v60, %v539_v54  ;;  %v3018_v34 = vld [vmem:[#allocation9 + $0xe] ss:$0 sm:$0xff] }
  0xd5   : > { %7006 = vst [vmem:[#allocation89_spill] sm:$0xff] %v4086_v48  ;;  %7008 = vst [vmem:[#allocation91_spill] sm:$0xff] %v4101_v29  ;;  %v4122_v29 = vmul.f32 %v3843_v31, %v539_v54  ;;  %v4144_v48 = vmul.f32 %v3899_v51, %v568_v43 }
  0xd6   : > { %7007 = vst [vmem:[#allocation90_spill] sm:$0xff] %v4097_v40  ;;  %7009 = vst [vmem:[#allocation92_spill] sm:$0xff] %v4107_v27  ;;  %v4136_v27 = vld [vmem:[#allocation7 + $0x1a] ss:$0 sm:$0xff]  ;;  %v4141_v40 = vmul.f32 %v3886_v47, %v539_v54 }
  0xd7   : > { %7010 = vst [vmem:[#allocation93_spill] sm:$0xff] %v4113_v30  ;;  %7011 = vst [vmem:[#allocation94_spill] sm:$0xff] %v4117_v16  ;;  %v4134_v30 = vld [vmem:[#allocation7 + $0x19] ss:$0 sm:$0xff] }
  0xd8   : > { %7012 = vst [vmem:[#allocation95_spill] sm:$0xff] %v4119_v26  ;;  %7013 = vst [vmem:[#allocation96_spill] sm:$0xff] %v4129_v28  ;;  %v4151_v28 = vmul.f32 %v3921_v59, %v4038_v18  ;;  %v4175_v4 = vmul.f32 %v4134_v30, %v510_v36 }
  0xd9   : > { %7014 = vst [vmem:[#allocation97_spill] sm:$0xff] %v4132_v12  ;;  %7015 = vst [vmem:[#allocation98_spill] sm:$0xff] %v4134_v30  ;;  %v4153_v12 = vld [vmem:[#allocation9 + $0xa] ss:$0 sm:$0xff] }
  0xda   : > { %7016 = vst [vmem:[#allocation99_spill] sm:$0xff] %v4136_v27  ;;  %7017 = vst [vmem:[#allocation100_spill] sm:$0xff] %v4138_v39 }
  0xdb   : > { %7018 = vst [vmem:[#allocation101_spill] sm:$0xff] %v4141_v40  ;;  %7019 = vst [vmem:[#allocation102_spill] sm:$0xff] %v4144_v48  ;;  %v4162_v40 = vmul.f32 %v3942_v9, %v568_v43  ;;  %v4165_v48 = vmul.f32 %v4117_v16, %v395_v55  ;;  %v4183_v55 = vld [vmem:[#allocation2 + $0x41] sm:$0xff] }
  0xdc   : > { %7020 = vst [vmem:[#allocation103_spill] sm:$0xff] %v4147_v61  ;;  %7021 = vst [vmem:[#allocation104_spill] sm:$0xff] %v4151_v28  ;;  %v396_v61 = vld [vmem:[#allocation2 + $0x40] sm:$0xff]  ;;  %v4172_v28 = vmul.f32 %v4119_v26, %v4038_v18 }
  0xdd   : > { %7022 = vst [vmem:[#allocation105_spill] sm:$0xff] %v4153_v12  ;;  %7023 = vst [vmem:[#allocation106_spill] sm:$0xff] %v4156_v14  ;;  %v4178_v14 = vmul.f32 %v4136_v27, %v539_v54 }
  0xde   : > { %7024 = vst [vmem:[#allocation107_spill] sm:$0xff] %v4159_v13  ;;  %7025 = vst [vmem:[#allocation108_spill] sm:$0xff] %v4162_v40  ;;  %v4181_v40 = vmul.f32 %v4138_v39, %v568_v43  ;;  %v4185_v13 = vld [vmem:[#allocation2 + $0x42] sm:$0xff]  ;;  %v4201_v43 = vmul.f32 %v3988_v53, %v539_v54 }
  0xdf   : > { %7026 = vst [vmem:[#allocation109_spill] sm:$0xff] %v4165_v48  ;;  %7027 = vst [vmem:[#allocation110_spill] sm:$0xff] %v4168_v10  ;;  %v4187_v48 = vld [vmem:[#allocation2 + $0x44] sm:$0xff] }
  0xe0   : > { %7028 = vst [vmem:[#allocation111_spill] sm:$0xff] %v4172_v28  ;;  %7029 = vst [vmem:[#allocation112_spill] sm:$0xff] %v4175_v4  ;;  %v4192_v28 = vmul.f32 %v3944_v11, %v4038_v18  ;;  %v4195_v4 = vmul.f32 %v3962_v7, %v452_v49  ;;  %v4214_v49 = vmul.f32 %v4153_v12, %v4038_v18 }
  0xe1   : > { %7030 = vst [vmem:[#allocation113_spill] sm:$0xff] %v4178_v14  ;;  %7031 = vst [vmem:[#allocation114_spill] sm:$0xff] %v4181_v40  ;;  %v4198_v14 = vmul.f32 %v3964_v0, %v510_v36  ;;  %v4203_v40 = vld [vmem:[#allocation2 + $0x45] sm:$0xff]  ;;  %v4216_v36 = vmul.f32 %v3018_v34, %v539_v54  ;;  %v4234_v18 = vmul.f32 %v3805_v15, %v4187_v48 }
  0xe2   : > { %7032 = vst [vmem:[#allocation115_spill] sm:$0xff] %v4183_v55  ;;  %7033 = vst [vmem:[#allocation116_spill] sm:$0xff] %v4185_v13  ;;  %v4239_v34 = vmul.f32 %v3843_v31, %v4203_v40  ;;  %v4264_v15 = vmul.f32 %v3899_v51, %v569_v56  ;;  %v4319_v53 = vmul.f32 %v4015_v20, %v4187_v48 }
  0xe3   : > { %7034 = vst [vmem:[#allocation117_spill] sm:$0xff] %v4187_v48  ;;  %389 = vst [vmem:[#allocation2 + $0x83] sm:$0xff] %v4168_v10  ;;  %v4210_v10 = vmul.f32 %v3992_v44, %v539_v54  ;;  %v4242_v54 = vmul.f32 %v3845_v32, %v569_v56 }
  0xe4   : > { %7035 = vst [vmem:[#allocation118_spill] sm:$0xff] %v4192_v28  ;;  %7036 = vst [vmem:[#allocation119_spill] sm:$0xff] %v4195_v4  ;;  %v4226_v4 = vmul.f32 %v3793_v5, %v4183_v55  ;;  %v4257_v28 = vmul.f32 %v3884_v46, %v4187_v48  ;;  %v4278_v46 = vmul.f32 %v4115_v23, %v4187_v48 }
  0xe5   : > { %7037 = vst [vmem:[#allocation120_spill] sm:$0xff] %v4198_v14  ;;  %7038 = vst [vmem:[#allocation121_spill] sm:$0xff] %v4201_v43  ;;  %v4219_v14 = vld [vmem:[%s3773_s25 + $0x31] sm:$0xff]  ;;  %v4222_v43 = vmul.f32 %v3787_v1, %v396_v61 }
  0xe6   : > { %7039 = vst [vmem:[#allocation122_spill] sm:$0xff] %v4203_v40  ;;  %7040 = vst [vmem:[#allocation123_spill] sm:$0xff] %v4207_v58  ;;  %v4230_v58 = vmul.f32 %v3795_v6, %v4185_v13 }
  0xe7   : > { %7041 = vst [vmem:[#allocation124_spill] sm:$0xff] %v4210_v10  ;;  %7042 = vst [vmem:[#allocation125_spill] sm:$0xff] %v4214_v49  ;;  %v4249_v10 = vmul.f32 %v3863_v38, %v4183_v55  ;;  %v4253_v49 = vmul.f32 %v3882_v45, %v4185_v13  ;;  %v4274_v13 = vmul.f32 %v3921_v59, %v4183_v55  ;;  %v4299_v45 = vld [vmem:[#allocation2 + $0x51] sm:$0xff] }
  0xe8   : > { %7043 = vst [vmem:[#allocation126_spill] sm:$0xff] %v4216_v36  ;;  %7044 = vst [vmem:[#allocation127_spill] sm:$0xff] %v4219_v14  ;;  %v4245_v36 = vmul.f32 %v3861_v37, %v396_v61 }
  0xe9   : > { %7045 = vst [vmem:[#allocation128_spill] sm:$0xff] %v4234_v18  ;;  %390 = vst [vmem:[#allocation2 + $0x93] sm:$0xff] %v4219_v14  ;;  %v4261_v14 = vmul.f32 %v3886_v47, %v4203_v40  ;;  %v570_v18 = vld [vmem:[#allocation2 + $0x56] sm:$0xff] }
  0xea   : > { %7046 = vst [vmem:[#allocation129_spill] sm:$0xff] %v4239_v34  ;;  %7047 = vst [vmem:[#allocation130_spill] sm:$0xff] %v4242_v54  ;;  %v4267_v54 = vld [vmem:[%s3773_s25 + $0x39] sm:$0xff]  ;;  %v4270_v34 = vmul.f32 %v3901_v52, %v396_v61 }
  0xeb   : > { %7048 = vst [vmem:[#allocation131_spill] sm:$0xff] %v4257_v28  ;;  %7049 = vst [vmem:[#allocation132_spill] sm:$0xff] %v4261_v14  ;;  %v4282_v28 = vmul.f32 %v3923_v60, %v4203_v40  ;;  %v4289_v14 = vmul.f32 %v4117_v16, %v396_v61 }
  0xec   : > { %7050 = vst [vmem:[#allocation133_spill] sm:$0xff] %v4264_v15  ;;  %7051 = vst [vmem:[#allocation134_spill] sm:$0xff] %v4267_v54  ;;  %v4286_v15 = vmul.f32 %v3942_v9, %v569_v56 }
  0xed   : > { %7052 = vst [vmem:[#allocation135_spill] sm:$0xff] %v4270_v34  ;;  %7053 = vst [vmem:[#allocation136_spill] sm:$0xff] %v4274_v13  ;;  %v4293_v34 = vmul.f32 %v4119_v26, %v4183_v55  ;;  %v4297_v13 = vmul.f32 %v4134_v30, %v4187_v48 }
  0xee   : > { %7054 = vst [vmem:[#allocation137_spill] sm:$0xff] %v4278_v46  ;;  %7055 = vst [vmem:[#allocation138_spill] sm:$0xff] %v4282_v28  ;;  %v397_v46 = vld [vmem:[#allocation2 + $0x50] sm:$0xff]  ;;  %v4303_v28 = vmul.f32 %v4136_v27, %v4203_v40 }
  0xef   : > { %391 = vst [vmem:[#allocation2 + $0xa3] sm:$0xff] %v4267_v54  ;;  %7056 = vst [vmem:[#allocation139_spill] sm:$0xff] %v4286_v15  ;;  %v4306_v15 = vmul.f32 %v4138_v39, %v569_v56  ;;  %v4315_v54 = vld [vmem:[#allocation2 + $0x52] sm:$0xff]  ;;  %v4376_v48 = vmul.f32 %v3901_v52, %v397_v46 }
  0xf0   : > { %7057 = vst [vmem:[#allocation140_spill] sm:$0xff] %v4289_v14  ;;  %7058 = vst [vmem:[#allocation141_spill] sm:$0xff] %v4293_v34  ;;  %v4309_v14 = vmul.f32 %v4011_v22, %v396_v61  ;;  %v4313_v34 = vmul.f32 %v4013_v21, %v4183_v55  ;;  %v4330_v61 = vmul.f32 %v3990_v63, %v4183_v55 }
  0xf1   : > { %7059 = vst [vmem:[#allocation142_spill] sm:$0xff] %v4297_v13  ;;  %7060 = vst [vmem:[#allocation143_spill] sm:$0xff] %v4299_v45  ;;  %v541_v13 = vld [vmem:[#allocation2 + $0x55] sm:$0xff]  ;;  %v4404_v63 = vmul.f32 %v4011_v22, %v397_v46 }
  0xf2   : > { %7061 = vst [vmem:[#allocation144_spill] sm:$0xff] %v4303_v28  ;;  %7062 = vst [vmem:[#allocation145_spill] sm:$0xff] %v4306_v15  ;;  %v4323_v28 = vmul.f32 %v4032_v2, %v4203_v40  ;;  %v4326_v15 = vmul.f32 %v4034_v8, %v569_v56  ;;  %v4345_v56 = vld [vmem:[#allocation2 + $0x54] sm:$0xff] }
  0xf3   : > { %7063 = vst [vmem:[#allocation146_spill] sm:$0xff] %v4309_v14  ;;  %7064 = vst [vmem:[#allocation147_spill] sm:$0xff] %v4313_v34  ;;  %v4334_v34 = vmul.f32 %v3992_v44, %v4203_v40  ;;  %v4338_v14 = vmul.f32 %v4153_v12, %v4183_v55  ;;  %v4362_v12 = vmul.f32 %v3861_v37, %v397_v46 }
  0xf4   : > { %7065 = vst [vmem:[#allocation148_spill] sm:$0xff] %v4315_v54  ;;  %7066 = vst [vmem:[#allocation149_spill] sm:$0xff] %v4319_v53  ;;  %v4341_v53 = vmul.f32 %v3787_v1, %v397_v46  ;;  %v4373_v40 = vmul.f32 %v3899_v51, %v570_v18  ;;  %v4379_v55 = vmul.f32 %v3942_v9, %v570_v18 }
  0xf5   : > { %7067 = vst [vmem:[#allocation150_spill] sm:$0xff] %v4323_v28  ;;  %7068 = vst [vmem:[#allocation151_spill] sm:$0xff] %v4326_v15  ;;  %v642_v28 = vadd.f32 %v4089_v42, %v4080_v25  ;;  %v4349_v15 = vmul.f32 %v3793_v5, %v4299_v45  ;;  %v4366_v42 = vmul.f32 %v3863_v38, %v4299_v45 }
  0xf6   : > { %7069 = vst [vmem:[#allocation152_spill] sm:$0xff] %v4330_v61  ;;  %7070 = vst [vmem:[#allocation153_spill] sm:$0xff] %v4334_v34  ;;  %v4353_v61 = vmul.f32 %v3795_v6, %v4315_v54  ;;  %v4356_v34 = vmul.f32 %v3843_v31, %v541_v13  ;;  %v4369_v25 = vmul.f32 %v3886_v47, %v541_v13 }
  0xf7   : > { %7071 = vst [vmem:[#allocation154_spill] sm:$0xff] %v4338_v14  ;;  %v4359_v14 = vmul.f32 %v3845_v32, %v570_v18  ;;  %v671_v44 = vadd.f32 %v4093_v19, %v642_v28  ;;  %7076 = vst [vmem:[#allocation159_spill] sm:$0xff] %v4373_v40  ;;  %v4382_v6 = vmul.f32 %v4117_v16, %v397_v46  ;;  %v4395_v40 = vld [vmem:[#allocation2 + $0x61] sm:$0xff] }
  0xf8   : > { %7072 = vst [vmem:[#allocation155_spill] sm:$0xff] %v4353_v61  ;;  %7073 = vst [vmem:[#allocation156_spill] sm:$0xff] %v4356_v34  ;;  %v4386_v34 = vmul.f32 %v4119_v26, %v4299_v45  ;;  %v4390_v19 = vmul.f32 %v4134_v30, %v4345_v56  ;;  %v4393_v28 = vmul.f32 %v4136_v27, %v541_v13 }
  0xf9   : > { %7074 = vst [vmem:[#allocation157_spill] sm:$0xff] %v4359_v14  ;;  %7075 = vst [vmem:[#allocation158_spill] sm:$0xff] %v4369_v25  ;;  %v398_v14 = vld [vmem:[#allocation2 + $0x60] sm:$0xff]  ;;  %v700_v47 = vadd.f32 %v4104_v35, %v671_v44  ;;  %v4417_v61 = vmul.f32 %v4036_v3, %v397_v46  ;;  %v4420_v35 = vmul.f32 %v4064_v57, %v570_v18 }
  0xfa   : > { %7077 = vst [vmem:[#allocation160_spill] sm:$0xff] %v4379_v55  ;;  %7078 = vst [vmem:[#allocation161_spill] sm:$0xff] %v4382_v6  ;;  %v4397_v25 = vld [vmem:[#allocation2 + $0x65] sm:$0xff]  ;;  %v4401_v6 = vmul.f32 %v4138_v39, %v570_v18 }
  0xfb   : > { %7079 = vst [vmem:[#allocation162_spill] sm:$0xff] %v4386_v34  ;;  %7080 = vst [vmem:[#allocation163_spill] sm:$0xff] %v4390_v19  ;;  %v571_v55 = vld [vmem:[#allocation2 + $0x66] sm:$0xff]  ;;  %v4408_v34 = vmul.f32 %v4013_v21, %v4299_v45  ;;  %v4411_v19 = vmul.f32 %v4032_v2, %v541_v13  ;;  %v729_v44 = vadd.f32 %v4023_v17, %v700_v47 }
  0xfc   : > { %7081 = vst [vmem:[#allocation164_spill] sm:$0xff] %v4393_v28  ;;  %7082 = vst [vmem:[#allocation165_spill] sm:$0xff] %v4401_v6  ;;  %v4414_v28 = vmul.f32 %v4034_v8, %v570_v18  ;;  %v4423_v6 = vld [vmem:[#allocation7 + $0x10] ss:$0 sm:$0xff]  ;;  %v4437_v46 = vmul.f32 %v3845_v32, %v571_v55  ;;  %v4439_v18 = vld [vmem:[#allocation2 + $0x62] sm:$0xff]  ;;  %v4443_v17 = vmul.f32 %v3861_v37, %v398_v14 }
  0xfd   : > { %7083 = vst [vmem:[#allocation166_spill] sm:$0xff] %v4404_v63  ;;  %7084 = vst [vmem:[#allocation167_spill] sm:$0xff] %v4408_v34  ;;  %v4426_v63 = vmul.f32 %v3787_v1, %v398_v14  ;;  %v4430_v34 = vmul.f32 %v3793_v5, %v4395_v40  ;;  %v758_v47 = vadd.f32 %v4110_v24, %v729_v44 }
  0xfe   : > { %7085 = vst [vmem:[#allocation168_spill] sm:$0xff] %v4411_v19  ;;  %7086 = vst [vmem:[#allocation169_spill] sm:$0xff] %v4414_v28  ;;  %v4434_v28 = vmul.f32 %v3843_v31, %v4397_v25  ;;  %v4450_v5 = vmul.f32 %v3899_v51, %v571_v55  ;;  %v4452_v19 = vld [vmem:[#allocation7 + $0x17] ss:$0 sm:$0xff]  ;;  %v4461_v24 = vmul.f32 %v3921_v59, %v4299_v45  ;;  %v4481_v45 = vld [vmem:[#allocation7 + $0x18] ss:$0 sm:$0xff] }
  0xff   : > { %7087 = vst [vmem:[#allocation170_spill] sm:$0xff] %v4417_v61  ;;  %7088 = vst [vmem:[#allocation171_spill] sm:$0xff] %v4420_v35  ;;  %v4447_v35 = vmul.f32 %v3863_v38, %v4395_v40  ;;  %v4454_v61 = vld [vmem:[#allocation2 + $0x64] sm:$0xff]  ;;  %v4465_v44 = vmul.f32 %v4423_v6, %v4315_v54 }
 0x100   : > { %7089 = vst [vmem:[#allocation172_spill] sm:$0xff] %v4423_v6  ;;  %7090 = vst [vmem:[#allocation173_spill] sm:$0xff] %v4426_v63  ;;  %v4476_v63 = vmul.f32 %v3942_v9, %v571_v55 }
 0x101   : > { %7091 = vst [vmem:[#allocation174_spill] sm:$0xff] %v4430_v34  ;;  %7092 = vst [vmem:[#allocation175_spill] sm:$0xff] %v4434_v28  ;;  %v4469_v28 = vmul.f32 %v4115_v23, %v4345_v56  ;;  %v4473_v34 = vmul.f32 %v3923_v60, %v541_v13  ;;  %v4495_v13 = vmul.f32 %v4481_v45, %v3968_v50 }
 0x102   : > { %7093 = vst [vmem:[#allocation176_spill] sm:$0xff] %v4437_v46  ;;  %7094 = vst [vmem:[#allocation177_spill] sm:$0xff] %v4443_v17  ;;  %v4457_v46 = vmul.f32 %v3901_v52, %v398_v14  ;;  %v4487_v17 = vmul.f32 %v4119_v26, %v4395_v40 }
 0x103   : > { %7095 = vst [vmem:[#allocation178_spill] sm:$0xff] %v4447_v35  ;;  %7096 = vst [vmem:[#allocation179_spill] sm:$0xff] %v4450_v5  ;;  %v787_v5 = vadd.f32 %v4122_v29, %v758_v47  ;;  %v4479_v35 = vmul.f32 %v4117_v16, %v398_v14  ;;  %v4491_v29 = vmul.f32 %v4452_v19, %v4439_v18 }
 0x104   : > { %7097 = vst [vmem:[#allocation180_spill] sm:$0xff] %v4452_v19  ;;  %7098 = vst [vmem:[#allocation181_spill] sm:$0xff] %v4457_v46  ;;  %v4483_v46 = vld [vmem:[#allocation7 + $0x1e] ss:$0 sm:$0xff]  ;;  %v614_v47 = vadd.f32 %v3848_v33, %v4052_v41 }
 0x105   : > { %7099 = vst [vmem:[#allocation182_spill] sm:$0xff] %v4469_v28  ;;  %7100 = vst [vmem:[#allocation183_spill] sm:$0xff] %v4473_v34  ;;  %v4509_v34 = vmul.f32 %v4138_v39, %v571_v55  ;;  %v4545_v28 = vmul.f32 %v4064_v57, %v571_v55 }
 0x106   : > { %7101 = vst [vmem:[#allocation184_spill] sm:$0xff] %v4476_v63  ;;  %7102 = vst [vmem:[#allocation185_spill] sm:$0xff] %v4479_v35  ;;  %v816_v63 = vadd.f32 %v4125_v62, %v787_v5  ;;  %v4502_v35 = vmul.f32 %v4134_v30, %v4454_v61  ;;  %v4520_v62 = vmul.f32 %v4013_v21, %v4395_v40 }
 0x107   : > { %7103 = vst [vmem:[#allocation186_spill] sm:$0xff] %v4481_v45  ;;  %7104 = vst [vmem:[#allocation187_spill] sm:$0xff] %v4483_v46  ;;  %v4513_v45 = vld [vmem:[#allocation2 + $0xb2] sm:$0xff]  ;;  %v4524_v5 = vmul.f32 %v4483_v46, %v4439_v18  ;;  %v4532_v30 = vmul.f32 %v4015_v20, %v4454_v61 }
 0x108   : > { %7105 = vst [vmem:[#allocation188_spill] sm:$0xff] %v4487_v17  ;;  %7106 = vst [vmem:[#allocation189_spill] sm:$0xff] %v4491_v29  ;;  %v4506_v17 = vmul.f32 %v4136_v27, %v4397_v25  ;;  %v4511_v29 = vld [vmem:[#allocation7 + $0x2a] ss:$0 sm:$0xff]  ;;  %v846_v27 = vadd.f32 %v4245_v36, %v816_v63 }
 0x109   : > { %7107 = vst [vmem:[#allocation190_spill] sm:$0xff] %v4495_v13  ;;  %7108 = vst [vmem:[#allocation191_spill] sm:$0xff] %v4502_v35  ;;  %v4516_v13 = vmul.f32 %v4011_v22, %v398_v14  ;;  %v4526_v35 = vld [vmem:[#allocation7 + $0x30] ss:$0 sm:$0xff] }
 0x10a   : > { %7109 = vst [vmem:[#allocation192_spill] sm:$0xff] %v4506_v17  ;;  %7110 = vst [vmem:[#allocation193_spill] sm:$0xff] %v4509_v34  ;;  %v643_v17 = vadd.f32 %v4222_v43, %v614_v47  ;;  %v578_v34 = vld [vmem:[#allocation2 + $0xd6] sm:$0xff]  ;;  %v4548_v43 = vmul.f32 %v4511_v29, %v398_v14  ;;  %v876_v36 = vadd.f32 %v4249_v10, %v846_v27 }
 0x10b   : > { %7111 = vst [vmem:[#allocation194_spill] sm:$0xff] %v4511_v29  ;;  %7112 = vst [vmem:[#allocation195_spill] sm:$0xff] %v4513_v45  ;;  %v4553_v47 = vmul.f32 %v4526_v35, %v571_v55  ;;  %v4573_v10 = vmul.f32 %v4526_v35, %v578_v34  ;;  %v7134_v34 = vld [vmem:[#allocation64_spill] sm:$0xff] }
 0x10c   : > { %7113 = vst [vmem:[#allocation196_spill] sm:$0xff] %v4516_v13  ;;  %7114 = vst [vmem:[#allocation197_spill] sm:$0xff] %v4520_v62  ;;  %v4536_v13 = vmul.f32 %v4032_v2, %v4397_v25  ;;  %v4539_v62 = vmul.f32 %v4034_v8, %v571_v55  ;;  %v672_v63 = vadd.f32 %v4226_v4, %v643_v17  ;;  %v7128_v4 = vld [vmem:[#allocation59_spill] sm:$0xff]  ;;  %v4575_v55 = vld [vmem:[#allocation2 + $0x71] sm:$0xff] }
 0x10d   : > { %7115 = vst [vmem:[#allocation198_spill] sm:$0xff] %v4524_v5  ;;  %7116 = vst [vmem:[#allocation199_spill] sm:$0xff] %v4526_v35  ;;  %v4542_v5 = vmul.f32 %v4036_v3, %v398_v14  ;;  %v4570_v27 = vmul.f32 %v4526_v35, %v7128_v4  ;;  %v572_v17 = vld [vmem:[#allocation2 + $0x76] sm:$0xff]  ;;  %v4589_v4 = vmul.f32 %v3964_v0, %v4454_v61 }
 0x10e   : > { %7117 = vst [vmem:[#allocation200_spill] sm:$0xff] %v4532_v30  ;;  %7118 = vst [vmem:[#allocation201_spill] sm:$0xff] %v4536_v13  ;;  %v4557_v13 = vmul.f32 %v4483_v46, %v4513_v45  ;;  %v4562_v30 = vld [vmem:[#allocation2 + $0x75] sm:$0xff]  ;;  %v4650_v45 = vmul.f32 %v3923_v60, %v4397_v25  ;;  %v4670_v2 = vmul.f32 %v4138_v39, %v572_v17 }
 0x10f   : > { %7119 = vst [vmem:[#allocation202_spill] sm:$0xff] %v4539_v62  ;;  %7120 = vst [vmem:[#allocation203_spill] sm:$0xff] %v4542_v5  ;;  %v4560_v62 = vmul.f32 0.0, %v4511_v29  ;;  %v399_v5 = vld [vmem:[#allocation2 + $0x70] sm:$0xff] }
 0x110   : > { %7121 = vst [vmem:[#allocation204_spill] sm:$0xff] %v4545_v28  ;;  %7122 = vst [vmem:[#allocation205_spill] sm:$0xff] %v4548_v43  ;;  %v7126_v28 = vld [vmem:[#allocation55_spill] sm:$0xff]  ;;  %v906_v43 = vadd.f32 %v4253_v49, %v876_v36  ;;  %v4601_v36 = vmul.f32 %v3843_v31, %v4562_v30  ;;  %v7145_v31 = vld [vmem:[#allocation38_spill] sm:$0xff] }
 0x111   : > { %7123 = vst [vmem:[#allocation206_spill] sm:$0xff] %v4553_v47  ;;  %7124 = vst [vmem:[#allocation207_spill] sm:$0xff] %v4557_v13  ;;  %v4566_v14 = vmul.f32 %v4526_v35, %v7126_v28  ;;  %v701_v47 = vadd.f32 %v4230_v58, %v672_v63  ;;  %v4581_v13 = vmul.f32 %v3944_v11, %v4395_v40  ;;  %v7137_v49 = vld [vmem:[#allocation75_spill] sm:$0xff] }
 0x112   : > { %7125 = vst [vmem:[#allocation208_spill] sm:$0xff] %v4560_v62  ;;  %7129 = vst [vmem:[#allocation59_spill] sm:$0xff] %v4570_v27  ;;  %v4585_v28 = vmul.f32 %v3962_v7, %v4439_v18  ;;  %v4596_v58 = vmul.f32 %v3787_v1, %v399_v5  ;;  %v7139_v27 = vld [vmem:[#allocation81_spill] sm:$0xff]  ;;  %v7143_v1 = vld [vmem:[#allocation128_spill] sm:$0xff]  ;;  %v959_v62 = vmul.f32 %v7145_v31, %v4345_v56 }
 0x113   : > { %7127 = vst [vmem:[#allocation55_spill] sm:$0xff] %v4566_v14  ;;  %7130 = vst [vmem:[#allocation209_spill] sm:$0xff] %v4573_v10  ;;  %v4593_v10 = vmul.f32 %v7134_v34, %v4397_v25  ;;  %v730_v63 = vadd.f32 %v7137_v49, %v701_v47  ;;  %v7144_v47 = vld [vmem:[#allocation37_spill] sm:$0xff] }
 0x114   : > { %7131 = vst [vmem:[#allocation210_spill] sm:$0xff] %v4581_v13  ;;  %7132 = vst [vmem:[#allocation211_spill] sm:$0xff] %v4585_v28  ;;  %v936_v13 = vadd.f32 %v7139_v27, %v906_v43  ;;  %v4605_v28 = vmul.f32 %v3845_v32, %v572_v17  ;;  %v899_v49 = vmul.f32 %v7144_v47, %v4315_v54  ;;  %v7147_v32 = vld [vmem:[#allocation131_spill] sm:$0xff] }
 0x115   : > { %7133 = vst [vmem:[#allocation212_spill] sm:$0xff] %v4589_v4  ;;  %7135 = vst [vmem:[#allocation64_spill] sm:$0xff] %v4593_v10  ;;  %v4608_v4 = vmul.f32 %v3861_v37, %v399_v5  ;;  %v4612_v10 = vmul.f32 %v3863_v38, %v4575_v55  ;;  %v759_v14 = vadd.f32 %v7143_v1, %v730_v63  ;;  %v7150_v1 = vld [vmem:[#allocation129_spill] sm:$0xff] }
 0x116   : > { %7136 = vst [vmem:[#allocation213_spill] sm:$0xff] %v4596_v58  ;;  %7138 = vst [vmem:[#allocation75_spill] sm:$0xff] %v4601_v36  ;;  %v4620_v43 = vmul.f32 %v3899_v51, %v572_v17  ;;  %v966_v27 = vadd.f32 %v7147_v32, %v936_v13  ;;  %v4626_v36 = vmul.f32 %v3901_v52, %v399_v5  ;;  %v7154_v32 = vld [vmem:[#allocation110_spill] sm:$0xff] }
 0x117   : > { %7140 = vst [vmem:[#allocation81_spill] sm:$0xff] %v4605_v28  ;;  %7141 = vst [vmem:[#allocation214_spill] sm:$0xff] %v4608_v4  ;;  %v4623_v28 = vld [vmem:[#allocation2 + $0x72] sm:$0xff]  ;;  %v4630_v58 = vmul.f32 %v3921_v59, %v4395_v40  ;;  %v4634_v63 = vmul.f32 %v4423_v6, %v4439_v18  ;;  %v788_v54 = vadd.f32 %v7150_v1, %v759_v14  ;;  %v7158_v1 = vld [vmem:[#allocation130_spill] sm:$0xff] }
 0x118   : > { %7142 = vst [vmem:[#allocation215_spill] sm:$0xff] %v4612_v10  ;;  %7146 = vst [vmem:[#allocation128_spill] sm:$0xff] %v4620_v43  ;;  %v7151_v10 = vld [vmem:[#allocation88_spill] sm:$0xff]  ;;  %v4643_v13 = vmul.f32 %v4115_v23, %v4454_v61  ;;  %v615_v4 = vadd.f32 %v3848_v33, %v7154_v32  ;;  %v4656_v14 = vmul.f32 %v4117_v16, %v399_v5 }
 0x119   : > { %7148 = vst [vmem:[#allocation37_spill] sm:$0xff] %v4626_v36  ;;  %7149 = vst [vmem:[#allocation131_spill] sm:$0xff] %v4634_v63  ;;  %v4639_v43 = vmul.f32 %v7151_v10, %v3968_v50  ;;  %v7155_v36 = vld [vmem:[#allocation132_spill] sm:$0xff]  ;;  %v4653_v63 = vmul.f32 %v3942_v9, %v572_v17  ;;  %v4665_v32 = vmul.f32 %v4452_v19, %v4623_v28 }
 0x11a   : > { %7153 = vst [vmem:[#allocation216_spill] sm:$0xff] %v4643_v13  ;;  %v996_v40 = vadd.f32 %v7155_v36, %v966_v27  ;;  %7156 = vst [vmem:[#allocation132_spill] sm:$0xff] %v4650_v45  ;;  %v4661_v13 = vmul.f32 %v4119_v26, %v4575_v55  ;;  %v644_v36 = vadd.f32 %v4341_v53, %v615_v4  ;;  %v7161_v27 = vld [vmem:[#allocation133_spill] sm:$0xff]  ;;  %v7166_v4 = vld [vmem:[#allocation54_spill] sm:$0xff] }
 0x11b   : > { %7152 = vst [vmem:[#allocation129_spill] sm:$0xff] %v4639_v43  ;;  %7157 = vst [vmem:[#allocation217_spill] sm:$0xff] %v4653_v63  ;;  %v817_v43 = vadd.f32 %v7158_v1, %v788_v54  ;;  %v4673_v63 = vmul.f32 %v4011_v22, %v399_v5  ;;  %v4677_v54 = vmul.f32 %v4013_v21, %v4575_v55 }
 0x11c   : > { %7159 = vst [vmem:[#allocation130_spill] sm:$0xff] %v4661_v13  ;;  %7160 = vst [vmem:[#allocation218_spill] sm:$0xff] %v4665_v32  ;;  %v1026_v45 = vadd.f32 %v7161_v27, %v996_v40  ;;  %v4682_v13 = vmul.f32 %v4483_v46, %v4623_v28  ;;  %v673_v53 = vadd.f32 %v4349_v15, %v644_v36  ;;  %v7167_v40 = vld [vmem:[#allocation21_spill] sm:$0xff] }
 0x11d   : > { %7162 = vst [vmem:[#allocation133_spill] sm:$0xff] %v4670_v2  ;;  %7163 = vst [vmem:[#allocation219_spill] sm:$0xff] %v4673_v63  ;;  %v847_v1 = vadd.f32 %v4362_v12, %v817_v43  ;;  %v723_v27 = vmul.f32 %v7167_v40, %v7166_v4  ;;  %v4688_v32 = vld [vmem:[#allocation2 + $0x74] sm:$0xff]  ;;  %v4691_v63 = vmul.f32 %v4034_v8, %v572_v17 }
 0x11e   : > { %7164 = vst [vmem:[#allocation220_spill] sm:$0xff] %v4677_v54  ;;  %7165 = vst [vmem:[#allocation221_spill] sm:$0xff] %v4682_v13  ;;  %v1056_v2 = vadd.f32 %v4376_v48, %v1026_v45  ;;  %v4694_v54 = vmul.f32 %v4036_v3, %v399_v5  ;;  %v4697_v12 = vmul.f32 %v4064_v57, %v572_v17  ;;  %v4706_v45 = vld [vmem:[#allocation2 + $0x80] sm:$0xff] }
 0x11f   : > { %7168 = vst [vmem:[#allocation54_spill] sm:$0xff] %v4688_v32  ;;  %7169 = vst [vmem:[#allocation21_spill] sm:$0xff] %v4691_v63  ;;  %v877_v43 = vadd.f32 %v4366_v42, %v847_v1  ;;  %v4701_v15 = vmul.f32 %v4511_v29, %v399_v5  ;;  %v4704_v36 = vmul.f32 %v4526_v35, %v572_v17  ;;  %v7174_v48 = vld [vmem:[#allocation155_spill] sm:$0xff] }
 0x120   : > { %7170 = vst [vmem:[#allocation222_spill] sm:$0xff] %v4694_v54  ;;  %7171 = vst [vmem:[#allocation223_spill] sm:$0xff] %v4697_v12  ;;  %v702_v4 = vadd.f32 %v7174_v48, %v673_v53  ;;  %v1086_v63 = vadd.f32 %v4461_v24, %v1056_v2  ;;  %v4712_v54 = vmul.f32 %v3944_v11, %v4575_v55  ;;  %v7177_v42 = vld [vmem:[#allocation47_spill] sm:$0xff]  ;;  %v7180_v24 = vld [vmem:[#allocation22_spill] sm:$0xff] }
 0x121   : > { %7172 = vst [vmem:[#allocation224_spill] sm:$0xff] %v4701_v15  ;;  %7173 = vst [vmem:[#allocation225_spill] sm:$0xff] %v4704_v36  ;;  %v4716_v12 = vmul.f32 %v3962_v7, %v4623_v28  ;;  %v4720_v5 = vmul.f32 %v7177_v42, %v4052_v41  ;;  %v4722_v17 = vld [vmem:[#allocation2 + $0x81] sm:$0xff]  ;;  %v907_v1 = vadd.f32 %v899_v49, %v877_v43 }
 0x122   : > { %7175 = vst [vmem:[#allocation155_spill] sm:$0xff] %v4712_v54  ;;  %v4726_v53 = vmul.f32 %v3964_v0, %v4688_v32  ;;  %v731_v2 = vadd.f32 %v723_v27, %v702_v4  ;;  %v752_v48 = vmul.f32 %v7180_v24, %v4345_v56  ;;  %v1116_v36 = vadd.f32 %v4465_v44, %v1086_v63  ;;  %v4739_v54 = vld [vmem:[#allocation2 + $0x86] sm:$0xff]  ;;  %v7185_v27 = vld [vmem:[#allocation89_spill] sm:$0xff]  ;;  %v7187_v63 = vld [vmem:[#allocation90_spill] sm:$0xff] }
 0x123   : > { %7176 = vst [vmem:[#allocation226_spill] sm:$0xff] %v4716_v12  ;;  %7178 = vst [vmem:[#allocation47_spill] sm:$0xff] %v4720_v5  ;;  %v4733_v15 = vmul.f32 %v7134_v34, %v4562_v30  ;;  %v7182_v12 = vld [vmem:[#allocation65_spill] sm:$0xff]  ;;  %v4743_v49 = vmul.f32 %v3861_v37, %v4706_v45  ;;  %v937_v43 = vadd.f32 %v7185_v27, %v907_v1  ;;  %v7189_v37 = vld [vmem:[#allocation39_spill] sm:$0xff] }
 0x124   : > { %7179 = vst [vmem:[#allocation227_spill] sm:$0xff] %v4726_v53  ;;  %v4737_v5 = vmul.f32 %v7182_v12, %v4575_v55  ;;  %v760_v4 = vadd.f32 %v752_v48, %v731_v2  ;;  %v4748_v56 = vmul.f32 %v3863_v38, %v4722_v17  ;;  %v900_v44 = vmul.f32 %v7144_v47, %v4439_v18  ;;  %v7188_v53 = vld [vmem:[#allocation32_spill] sm:$0xff]  ;;  %v7193_v27 = vld [vmem:[#allocation182_spill] sm:$0xff] }
 0x125   : > { %7181 = vst [vmem:[#allocation22_spill] sm:$0xff] %v4733_v15  ;;  %7184 = vst [vmem:[#allocation228_spill] sm:$0xff] %v4743_v49  ;;  %v1146_v15 = vadd.f32 %v7187_v63, %v1116_v36  ;;  %v960_v13 = vmul.f32 %v7145_v31, %v4454_v61  ;;  %v4759_v49 = vmul.f32 %v7189_v37, %v4397_v25  ;;  %v7190_v2 = vld [vmem:[#allocation156_spill] sm:$0xff] }
 0x126   : > { %7183 = vst [vmem:[#allocation65_spill] sm:$0xff] %v4737_v5  ;;  %7186 = vst [vmem:[#allocation89_spill] sm:$0xff] %v4748_v56  ;;  %v930_v5 = vmul.f32 %v7188_v53, %v3968_v50  ;;  %v967_v1 = vadd.f32 %v959_v62, %v937_v43  ;;  %v789_v48 = vadd.f32 %v7190_v2, %v760_v4  ;;  %v4771_v56 = vld [vmem:[#allocation2 + $0x82] sm:$0xff]  ;;  %v7195_v62 = vld [vmem:[#allocation158_spill] sm:$0xff] }
 0x127   : > { %v4764_v38 = vmul.f32 %v3899_v51, %v4739_v54  ;;  %v4768_v36 = vmul.f32 %v3901_v52, %v4706_v45  ;;  %v1176_v63 = vadd.f32 %v7193_v27, %v1146_v15  ;;  %7194 = vst [vmem:[#allocation39_spill] sm:$0xff] %v4771_v56  ;;  %v4775_v31 = vmul.f32 %v3921_v59, %v4575_v55  ;;  %v7196_v4 = vld [vmem:[#allocation157_spill] sm:$0xff] }
 0x128   : > { %v4779_v25 = vmul.f32 %v4423_v6, %v4623_v28  ;;  %v4783_v51 = vmul.f32 %v7151_v10, %v4052_v41  ;;  %v997_v43 = vadd.f32 %v7195_v62, %v967_v1  ;;  %v818_v2 = vadd.f32 %v7196_v4, %v789_v48  ;;  %v7203_v48 = vld [vmem:[#allocation159_spill] sm:$0xff]  ;;  %v7204_v4 = vld [vmem:[#allocation177_spill] sm:$0xff] }
 0x129   : > { %7191 = vst [vmem:[#allocation90_spill] sm:$0xff] %v4764_v38  ;;  %7192 = vst [vmem:[#allocation32_spill] sm:$0xff] %v4768_v36  ;;  %v4789_v15 = vmul.f32 %v4115_v23, %v4688_v32  ;;  %v4793_v27 = vmul.f32 %v3923_v60, %v4562_v30  ;;  %v7199_v38 = vld [vmem:[#allocation183_spill] sm:$0xff]  ;;  %v4798_v6 = vmul.f32 %v3942_v9, %v4739_v54 }
 0x12a   : > { %v1206_v36 = vadd.f32 %v7199_v38, %v1176_v63  ;;  %v4802_v10 = vmul.f32 %v4117_v16, %v4706_v45  ;;  %v4806_v1 = vmul.f32 %v4119_v26, %v4722_v17  ;;  %v1027_v62 = vadd.f32 %v7203_v48, %v997_v43  ;;  %v7206_v38 = vld [vmem:[#allocation186_spill] sm:$0xff] }
 0x12b   : > { %7197 = vst [vmem:[#allocation156_spill] sm:$0xff] %v4789_v15  ;;  %7198 = vst [vmem:[#allocation182_spill] sm:$0xff] %v4793_v27  ;;  %v848_v15 = vadd.f32 %v7204_v4, %v818_v2  ;;  %v4812_v27 = vmul.f32 %v4452_v19, %v4771_v56  ;;  %v4816_v63 = vmul.f32 %v7206_v38, %v4052_v41  ;;  %v7212_v2 = vld [vmem:[#allocation181_spill] sm:$0xff]  ;;  %v7213_v4 = vld [vmem:[#allocation178_spill] sm:$0xff] }
 0x12c   : > { %7200 = vst [vmem:[#allocation158_spill] sm:$0xff] %v4798_v6  ;;  %7201 = vst [vmem:[#allocation157_spill] sm:$0xff] %v4802_v10  ;;  %v7207_v6 = vld [vmem:[#allocation160_spill] sm:$0xff]  ;;  %v7208_v10 = vld [vmem:[#allocation98_spill] sm:$0xff]  ;;  %v4829_v43 = vmul.f32 %v4138_v39, %v4739_v54  ;;  %v1057_v48 = vadd.f32 %v7212_v2, %v1027_v62  ;;  %v4835_v38 = vmul.f32 %v4011_v22, %v4706_v45 }
 0x12d   : > { %7202 = vst [vmem:[#allocation183_spill] sm:$0xff] %v4806_v1  ;;  %7205 = vst [vmem:[#allocation159_spill] sm:$0xff] %v4812_v27  ;;  %v1236_v9 = vadd.f32 %v7207_v6, %v1206_v36  ;;  %v4821_v16 = vmul.f32 %v7208_v10, %v4688_v32  ;;  %v7209_v1 = vld [vmem:[#allocation99_spill] sm:$0xff]  ;;  %v878_v27 = vadd.f32 %v7213_v4, %v848_v15  ;;  %v4841_v36 = vld [vmem:[#allocation7 + $0x1f] ss:$0 sm:$0xff] }
 0x12e   : > { %v4825_v26 = vmul.f32 %v7209_v1, %v4562_v30  ;;  %7211 = vst [vmem:[#allocation160_spill] sm:$0xff] %v4829_v43  ;;  %7214 = vst [vmem:[#allocation181_spill] sm:$0xff] %v4835_v38  ;;  %v4839_v6 = vmul.f32 %v4013_v21, %v4722_v17  ;;  %v7217_v1 = vld [vmem:[#allocation185_spill] sm:$0xff]  ;;  %v4846_v39 = vmul.f32 %v4483_v46, %v4771_v56  ;;  %v7220_v2 = vld [vmem:[#allocation127_spill] sm:$0xff] }
 0x12f   : > { %7216 = vst [vmem:[#allocation229_spill] sm:$0xff] %v4841_v36  ;;  %v4850_v62 = vmul.f32 %v4841_v36, %v4052_v41  ;;  %v4852_v15 = vld [vmem:[#allocation7 + $0x24] ss:$0 sm:$0xff]  ;;  %v616_v4 = vadd.f32 %v3848_v33, %v7220_v2  ;;  %v1087_v43 = vadd.f32 %v4630_v58, %v1057_v48  ;;  %v4859_v38 = vmul.f32 %v4015_v20, %v4688_v32  ;;  %v4874_v58 = vld [vmem:[#allocation7 + $0x25] ss:$0 sm:$0xff]  ;;  %v7228_v48 = vld [vmem:[#allocation131_spill] sm:$0xff] }
 0x130   : > { %7210 = vst [vmem:[#allocation177_spill] sm:$0xff] %v4825_v26  ;;  %7215 = vst [vmem:[#allocation178_spill] sm:$0xff] %v4839_v6  ;;  %v1266_v26 = vadd.f32 %v7217_v1, %v1236_v9  ;;  %v908_v6 = vadd.f32 %v900_v44, %v878_v27  ;;  %v7221_v9 = vld [vmem:[#allocation76_spill] sm:$0xff]  ;;  %v4868_v21 = vmul.f32 %v4034_v8, %v4739_v54  ;;  %v7227_v44 = vld [vmem:[#allocation173_spill] sm:$0xff] }
 0x131   : > { %7218 = vst [vmem:[#allocation185_spill] sm:$0xff] %v4846_v39  ;;  %7219 = vst [vmem:[#allocation230_spill] sm:$0xff] %v4852_v15  ;;  %v4863_v1 = vmul.f32 %v7221_v9, %v4562_v30  ;;  %v7223_v39 = vld [vmem:[#allocation188_spill] sm:$0xff]  ;;  %v4872_v33 = vmul.f32 %v4036_v3, %v4706_v45  ;;  %v645_v27 = vadd.f32 %v7227_v44, %v616_v4 }
 0x132   : > { %v1296_v46 = vadd.f32 %v7223_v39, %v1266_v26  ;;  %7224 = vst [vmem:[#allocation188_spill] sm:$0xff] %v4868_v21  ;;  %7226 = vst [vmem:[#allocation233_spill] sm:$0xff] %v4874_v58  ;;  %v1117_v2 = vadd.f32 %v7228_v48, %v1087_v43  ;;  %v938_v20 = vadd.f32 %v930_v5, %v908_v6  ;;  %v4886_v26 = vld [vmem:[#allocation2 + $0xb3] sm:$0xff] }
 0x133   : > { %7222 = vst [vmem:[#allocation231_spill] sm:$0xff] %v4863_v1  ;;  %7225 = vst [vmem:[#allocation232_spill] sm:$0xff] %v4872_v33  ;;  %v4880_v9 = vmul.f32 %v4852_v15, %v4575_v55  ;;  %v4884_v39 = vmul.f32 %v4852_v15, %v4722_v17  ;;  %v7230_v21 = vld [vmem:[#allocation189_spill] sm:$0xff]  ;;  %v7231_v33 = vld [vmem:[#allocation174_spill] sm:$0xff]  ;;  %v724_v5 = vmul.f32 %v7167_v40, %v3968_v50 }
 0x134   : > { %v1326_v3 = vadd.f32 %v7230_v21, %v1296_v46  ;;  %v674_v8 = vadd.f32 %v7231_v33, %v645_v27  ;;  %v7232_v1 = vld [vmem:[#allocation20_spill] sm:$0xff]  ;;  %v7233_v43 = vld [vmem:[#allocation129_spill] sm:$0xff]  ;;  %v968_v44 = vadd.f32 %v960_v13, %v938_v20  ;;  %v4897_v48 = vmul.f32 %v4874_v58, %v4623_v28  ;;  %v4903_v21 = vld [vmem:[#allocation2 + $0xc1] sm:$0xff] }
 0x135   : > { %7229 = vst [vmem:[#allocation173_spill] sm:$0xff] %v4880_v9  ;;  %v695_v4 = vmul.f32 %v7232_v1, %v4439_v18  ;;  %v1147_v6 = vadd.f32 %v7233_v43, %v1117_v2  ;;  %v4901_v9 = vmul.f32 %v4874_v58, %v4771_v56  ;;  %v7235_v46 = vld [vmem:[#allocation190_spill] sm:$0xff]  ;;  %v4908_v18 = vmul.f32 %v4064_v57, %v4739_v54  ;;  %v4914_v13 = vld [vmem:[#allocation2 + $0xc2] sm:$0xff]  ;;  %v7237_v40 = vld [vmem:[#allocation216_spill] sm:$0xff] }
 0x136   : > { %7234 = vst [vmem:[#allocation131_spill] sm:$0xff] %v4897_v48  ;;  %v1347_v33 = vadd.f32 %v7235_v46, %v1326_v3  ;;  %v4912_v50 = vmul.f32 %v4511_v29, %v4706_v45  ;;  %v998_v1 = vadd.f32 %v4759_v49, %v968_v44  ;;  %v4920_v27 = vmul.f32 %v4526_v35, %v4739_v54  ;;  %v7240_v43 = vld [vmem:[#allocation191_spill] sm:$0xff]  ;;  %v7241_v48 = vld [vmem:[#allocation48_spill] sm:$0xff] }
 0x137   : > { %v703_v20 = vadd.f32 %v695_v4, %v674_v8  ;;  %v1177_v2 = vadd.f32 %v7237_v40, %v1147_v6  ;;  %v4924_v3 = vmul.f32 %v4841_v36, %v4886_v26  ;;  %v4929_v45 = vmul.f32 %v4852_v15, %v7241_v48  ;;  %v7243_v6 = vld [vmem:[#allocation132_spill] sm:$0xff]  ;;  %v7244_v40 = vld [vmem:[#allocation179_spill] sm:$0xff] }
 0x138   : > { %7236 = vst [vmem:[#allocation189_spill] sm:$0xff] %v4912_v50  ;;  %7238 = vst [vmem:[#allocation174_spill] sm:$0xff] %v4920_v27  ;;  %v1377_v46 = vadd.f32 %v7240_v43, %v1347_v33  ;;  %v753_v4 = vmul.f32 %v7180_v24, %v4454_v61  ;;  %v4934_v44 = vld [vmem:[#allocation2 + $0x84] sm:$0xff]  ;;  %v1028_v27 = vadd.f32 %v7244_v40, %v998_v1 }
 0x139   : > { %7239 = vst [vmem:[#allocation20_spill] sm:$0xff] %v4924_v3  ;;  %7242 = vst [vmem:[#allocation129_spill] sm:$0xff] %v4929_v45  ;;  %v732_v8 = vadd.f32 %v724_v5, %v703_v20  ;;  %v1207_v49 = vadd.f32 %v7243_v6, %v1177_v2  ;;  %v4936_v54 = vld [vmem:[#allocation2 + $0x85] sm:$0xff]  ;;  %v4941_v50 = vmul.f32 %v4852_v15, %v4903_v21  ;;  %v7252_v6 = vld [vmem:[#allocation37_spill] sm:$0xff] }
 0x13a   : > { %v7246_v33 = vld [vmem:[#allocation195_spill] sm:$0xff]  ;;  %v7248_v5 = vld [vmem:[#allocation192_spill] sm:$0xff]  ;;  %v4950_v61 = vmul.f32 %v4874_v58, %v4914_v13  ;;  %v4954_v24 = vmul.f32 %v3944_v11, %v4722_v17  ;;  %v1058_v40 = vadd.f32 %v7252_v6, %v1028_v27  ;;  %v7254_v3 = vld [vmem:[#allocation110_spill] sm:$0xff] }
 0x13b   : > { %7245 = vst [vmem:[#allocation190_spill] sm:$0xff] %v4941_v50  ;;  %v4945_v48 = vmul.f32 %v4874_v58, %v7246_v33  ;;  %v1407_v20 = vadd.f32 %v7248_v5, %v1377_v46  ;;  %v761_v2 = vadd.f32 %v753_v4, %v732_v8  ;;  %v7251_v1 = vld [vmem:[#allocation184_spill] sm:$0xff]  ;;  %v4960_v50 = vmul.f32 %v3962_v7, %v4771_v56  ;;  %v7256_v5 = vld [vmem:[#allocation193_spill] sm:$0xff]  ;;  %v7259_v27 = vld [vmem:[#allocation175_spill] sm:$0xff] }
 0x13c   : > { %7249 = vst [vmem:[#allocation191_spill] sm:$0xff] %v4950_v61  ;;  %7250 = vst [vmem:[#allocation48_spill] sm:$0xff] %v4954_v24  ;;  %v1237_v43 = vadd.f32 %v7251_v1, %v1207_v49  ;;  %v4964_v46 = vmul.f32 %v7177_v42, %v7254_v3  ;;  %v4969_v61 = vmul.f32 %v3964_v0, %v4934_v44  ;;  %v4975_v4 = vld [vmem:[#allocation2 + $0x90] sm:$0xff] }
 0x13d   : > { %7247 = vst [vmem:[#allocation216_spill] sm:$0xff] %v4945_v48  ;;  %7253 = vst [vmem:[#allocation132_spill] sm:$0xff] %v4960_v50  ;;  %v1437_v48 = vadd.f32 %v7256_v5, %v1407_v20  ;;  %v4973_v8 = vmul.f32 %v7134_v34, %v4936_v54  ;;  %v790_v49 = vadd.f32 %v7259_v27, %v761_v2  ;;  %v7261_v5 = vld [vmem:[#allocation219_spill] sm:$0xff]  ;;  %v7263_v2 = vld [vmem:[#allocation38_spill] sm:$0xff] }
 0x13e   : > { %7255 = vst [vmem:[#allocation179_spill] sm:$0xff] %v4964_v46  ;;  %7257 = vst [vmem:[#allocation195_spill] sm:$0xff] %v4969_v61  ;;  %v1267_v1 = vadd.f32 %v4656_v14, %v1237_v43  ;;  %v1088_v6 = vadd.f32 %v4775_v31, %v1058_v40  ;;  %v4982_v42 = vmul.f32 %v7182_v12, %v4722_v17  ;;  %v7262_v46 = vld [vmem:[#allocation176_spill] sm:$0xff]  ;;  %v7264_v14 = vld [vmem:[#allocation130_spill] sm:$0xff] }
 0x13f   : > { %7258 = vst [vmem:[#allocation192_spill] sm:$0xff] %v4973_v8  ;;  %v901_v20 = vmul.f32 %v7144_v47, %v4623_v28  ;;  %v1467_v61 = vadd.f32 %v7261_v5, %v1437_v48  ;;  %v819_v50 = vadd.f32 %v7262_v46, %v790_v49  ;;  %v931_v8 = vmul.f32 %v7188_v53, %v4052_v41  ;;  %v4994_v40 = vld [vmem:[#allocation2 + $0x96] sm:$0xff]  ;;  %v7266_v48 = vld [vmem:[#allocation220_spill] sm:$0xff] }
 0x140   : > { %7260 = vst [vmem:[#allocation184_spill] sm:$0xff] %v4982_v42  ;;  %v961_v27 = vmul.f32 %v7263_v2, %v4688_v32  ;;  %v1297_v43 = vadd.f32 %v7264_v14, %v1267_v1  ;;  %v1118_v31 = vadd.f32 %v4779_v25, %v1088_v6  ;;  %v991_v24 = vmul.f32 %v7189_v37, %v4562_v30  ;;  %v5003_v49 = vld [vmem:[#allocation2 + $0x91] sm:$0xff]  ;;  %v7267_v53 = vld [vmem:[#allocation214_spill] sm:$0xff]  ;;  %v7273_v42 = vld [vmem:[#allocation215_spill] sm:$0xff] }
 0x141   : > { %v5000_v47 = vmul.f32 %v3901_v52, %v4975_v4  ;;  %v1497_v46 = vadd.f32 %v7266_v48, %v1467_v61  ;;  %v849_v5 = vadd.f32 %v7267_v53, %v819_v50  ;;  %v5008_v1 = vmul.f32 %v3921_v59, %v4722_v17  ;;  %v7268_v25 = vld [vmem:[#allocation172_spill] sm:$0xff]  ;;  %v7269_v2 = vld [vmem:[#allocation218_spill] sm:$0xff]  ;;  %v5016_v52 = vld [vmem:[#allocation2 + $0x92] sm:$0xff] }
 0x142   : > { %v5012_v6 = vmul.f32 %v7268_v25, %v4771_v56  ;;  %v1327_v37 = vadd.f32 %v7269_v2, %v1297_v43  ;;  %v1148_v14 = vadd.f32 %v4783_v51, %v1118_v31  ;;  %7270 = vst [vmem:[#allocation110_spill] sm:$0xff] %v5016_v52  ;;  %v7271_v61 = vld [vmem:[#allocation88_spill] sm:$0xff]  ;;  %v5024_v50 = vmul.f32 %v4115_v23, %v4934_v44  ;;  %v7272_v59 = vld [vmem:[#allocation221_spill] sm:$0xff]  ;;  %v7277_v25 = vld [vmem:[#allocation94_spill] sm:$0xff] }
 0x143   : > { %7265 = vst [vmem:[#allocation37_spill] sm:$0xff] %v5000_v47  ;;  %v5020_v48 = vmul.f32 %v7271_v61, %v7254_v3  ;;  %v1527_v53 = vadd.f32 %v7272_v59, %v1497_v46  ;;  %v879_v45 = vadd.f32 %v7273_v42, %v849_v5  ;;  %v5030_v47 = vmul.f32 %v3923_v60, %v4936_v54  ;;  %v7274_v51 = vld [vmem:[#allocation53_spill] sm:$0xff]  ;;  %v7276_v31 = vld [vmem:[#allocation156_spill] sm:$0xff]  ;;  %v7278_v46 = vld [vmem:[#allocation95_spill] sm:$0xff] }
 0x144   : > { %v5034_v43 = vmul.f32 %v7274_v51, %v4994_v40  ;;  %v1178_v2 = vadd.f32 %v7276_v31, %v1148_v14  ;;  %v1348_v61 = vadd.f32 %v4816_v63, %v1327_v37  ;;  %v5040_v23 = vmul.f32 %v7277_v25, %v4975_v4  ;;  %v7280_v51 = vld [vmem:[#allocation186_spill] sm:$0xff] }
 0x145   : > { %v5044_v59 = vmul.f32 %v7278_v46, %v5003_v49  ;;  %v1557_v42 = vadd.f32 %v4850_v62, %v1527_v53  ;;  %v909_v60 = vadd.f32 %v901_v20, %v879_v45  ;;  %v5049_v5 = vmul.f32 %v4452_v19, %v5016_v52  ;;  %v7281_v31 = vld [vmem:[#allocation182_spill] sm:$0xff]  ;;  %v7282_v46 = vld [vmem:[#allocation99_spill] sm:$0xff]  ;;  %v7283_v20 = vld [vmem:[#allocation100_spill] sm:$0xff] }
 0x146   : > { %7275 = vst [vmem:[#allocation193_spill] sm:$0xff] %v5034_v43  ;;  %v1341_v14 = vmul.f32 %v7280_v51, %v7254_v3  ;;  %v1208_v63 = vadd.f32 %v7281_v31, %v1178_v2  ;;  %v1378_v37 = vadd.f32 %v4821_v16, %v1348_v61  ;;  %v1371_v25 = vmul.f32 %v7208_v10, %v4934_v44  ;;  %v7285_v2 = vld [vmem:[#allocation217_spill] sm:$0xff]  ;;  %v7287_v10 = vld [vmem:[#allocation71_spill] sm:$0xff] }
 0x147   : > { %7279 = vst [vmem:[#allocation175_spill] sm:$0xff] %v5049_v5  ;;  %v5059_v43 = vmul.f32 %v7282_v46, %v4936_v54  ;;  %v1587_v62 = vadd.f32 %v4859_v38, %v1557_v42  ;;  %v939_v45 = vadd.f32 %v931_v8, %v909_v60  ;;  %v5064_v53 = vmul.f32 %v7283_v20, %v4994_v40  ;;  %v7286_v61 = vld [vmem:[#allocation177_spill] sm:$0xff]  ;;  %v7289_v46 = vld [vmem:[#allocation187_spill] sm:$0xff] }
 0x148   : > { %v5068_v19 = vmul.f32 %v4011_v22, %v4975_v4  ;;  %v1238_v16 = vadd.f32 %v7285_v2, %v1208_v63  ;;  %v1408_v31 = vadd.f32 %v7286_v61, %v1378_v37  ;;  %v5074_v51 = vmul.f32 %v7287_v10, %v5003_v49  ;;  %v7291_v8 = vld [vmem:[#allocation231_spill] sm:$0xff]  ;;  %v7292_v22 = vld [vmem:[#allocation72_spill] sm:$0xff]  ;;  %v7293_v63 = vld [vmem:[#allocation157_spill] sm:$0xff] }
 0x149   : > { %7284 = vst [vmem:[#allocation219_spill] sm:$0xff] %v5064_v53  ;;  %v5078_v38 = vmul.f32 %v7289_v46, %v5016_v52  ;;  %v1617_v42 = vadd.f32 %v7291_v8, %v1587_v62  ;;  %v969_v60 = vadd.f32 %v961_v27, %v939_v45  ;;  %v1550_v20 = vmul.f32 %v4841_v36, %v7254_v3  ;;  %v7294_v37 = vld [vmem:[#allocation133_spill] sm:$0xff]  ;;  %v7295_v10 = vld [vmem:[#allocation76_spill] sm:$0xff]  ;;  %v7299_v8 = vld [vmem:[#allocation78_spill] sm:$0xff] }
 0x14a   : > { %7288 = vst [vmem:[#allocation176_spill] sm:$0xff] %v5074_v51  ;;  %v1580_v53 = vmul.f32 %v7292_v22, %v4934_v44  ;;  %v1268_v2 = vadd.f32 %v7293_v63, %v1238_v16  ;;  %v1438_v61 = vadd.f32 %v7294_v37, %v1408_v31  ;;  %v1610_v51 = vmul.f32 %v7295_v10, %v4936_v54  ;;  %v7296_v5 = vld [vmem:[#allocation77_spill] sm:$0xff] }
 0x14b   : > { %7290 = vst [vmem:[#allocation38_spill] sm:$0xff] %v5078_v38  ;;  %v5091_v46 = vmul.f32 %v7296_v5, %v4994_v40  ;;  %v5093_v38 = vld [vmem:[#allocation7 + $0x27] ss:$0 sm:$0xff]  ;;  %v999_v45 = vadd.f32 %v991_v24, %v969_v60  ;;  %v5098_v36 = vmul.f32 %v7299_v8, %v4975_v4  ;;  %v5102_v16 = vmul.f32 %v4852_v15, %v5003_v49  ;;  %v5104_v31 = vld [vmem:[#allocation7 + $0x26] ss:$0 sm:$0xff]  ;;  %v7300_v5 = vld [vmem:[#allocation183_spill] sm:$0xff] }
 0x14c   : > { %v7298_v27 = vld [vmem:[#allocation21_spill] sm:$0xff]  ;;  %v1298_v63 = vadd.f32 %v7300_v5, %v1268_v2  ;;  %v5112_v24 = vmul.f32 %v4874_v58, %v5016_v52  ;;  %v7304_v60 = vld [vmem:[#allocation232_spill] sm:$0xff]  ;;  %v5124_v2 = vmul.f32 %v5093_v38, %v4688_v32 }
 0x14d   : > { %7297 = vst [vmem:[#allocation130_spill] sm:$0xff] %v5091_v46  ;;  %v1647_v62 = vadd.f32 %v7298_v27, %v1617_v42  ;;  %v5106_v22 = vld [vmem:[#allocation7 + $0x28] ss:$0 sm:$0xff]  ;;  %v5116_v42 = vmul.f32 %v5104_v31, %v4052_v41  ;;  %v7305_v8 = vld [vmem:[#allocation128_spill] sm:$0xff]  ;;  %v1759_v46 = vmul.f32 %v5104_v31, %v7254_v3 }
 0x14e   : > { %v7301_v37 = vld [vmem:[#allocation181_spill] sm:$0xff]  ;;  %7302 = vst [vmem:[#allocation220_spill] sm:$0xff] %v5112_v24  ;;  %v1029_v15 = vadd.f32 %v7305_v8, %v999_v45  ;;  %7306 = vst [vmem:[#allocation218_spill] sm:$0xff] %v5124_v2  ;;  %v1789_v24 = vmul.f32 %v5093_v38, %v4934_v44  ;;  %v1819_v32 = vmul.f32 %v5106_v22, %v4936_v54  ;;  %v7321_v2 = vld [vmem:[#allocation115_spill] sm:$0xff] }
 0x14f   : > { %v1468_v10 = vadd.f32 %v7301_v37, %v1438_v61  ;;  %7303 = vst [vmem:[#allocation214_spill] sm:$0xff] %v5116_v42  ;;  %v1677_v27 = vadd.f32 %v7304_v60, %v1647_v62  ;;  %v7307_v61 = vld [vmem:[#allocation159_spill] sm:$0xff]  ;;  %v7308_v37 = vld [vmem:[#allocation178_spill] sm:$0xff]  ;;  %v5132_v42 = vmul.f32 %v5106_v22, %v4562_v30  ;;  %v7310_v60 = vld [vmem:[#allocation32_spill] sm:$0xff] }
 0x150   : > { %v1328_v5 = vadd.f32 %v7307_v61, %v1298_v63  ;;  %v344_v62 = vld [vmem:[%s3773_s25] sm:$0x1]  ;;  %v1059_v8 = vadd.f32 %v7310_v60, %v1029_v15  ;;  %v5141_v63 = vmul.f32 %v4064_v57, %v4994_v40  ;;  %v7312_v30 = vld [vmem:[#allocation185_spill] sm:$0xff]  ;;  %v1879_v15 = vmul.f32 %v4511_v29, %v4975_v4 }
 0x151   : > { %v1498_v58 = vadd.f32 %v7308_v37, %v1468_v10  ;;  %7309 = vst [vmem:[#allocation88_spill] sm:$0xff] %v5132_v42  ;;  %v1707_v45 = vadd.f32 %v4884_v39, %v1677_v27  ;;  %v5143_v10 = vld [vmem:[#allocation7 + $0x2b] ss:$0 sm:$0xff]  ;;  %345 = vst [vmem:[%s5147_s26] sm:$0x1] %v344_v62  ;;  %v5157_v27 = vld [vmem:[#allocation7 + $0x2c] ss:$0 sm:$0xff]  ;;  %v5218_v29 = vmul.f32 %v3944_v11, %v7321_v2 }
 0x152   : > { %7311 = vst [vmem:[#allocation221_spill] sm:$0xff] %v5141_v63  ;;  %v1349_v37 = vadd.f32 %v1341_v14, %v1328_v5  ;;  %v5155_v39 = vmul.f32 %v5143_v10, %v4722_v17  ;;  %v5160_v60 = vld [vmem:[#allocation2 + $0x94] sm:$0xff]  ;;  %v1089_v62 = vadd.f32 %v5008_v1, %v1059_v8  ;;  %v5171_v4 = vmul.f32 %v5157_v27, %v4771_v56  ;;  %v5173_v17 = vld [vmem:[#allocation7 + $0x2d] ss:$0 sm:$0xff]  ;;  %v5183_v1 = vld [vmem:[#allocation7 + $0x2e] ss:$0 sm:$0xff] }
 0x153   : > { %v1528_v61 = vadd.f32 %v7312_v30, %v1498_v58  ;;  %v1737_v57 = vadd.f32 %v4901_v9, %v1707_v45  ;;  %v5162_v42 = vld [vmem:[#allocation2 + $0x95] sm:$0xff]  ;;  %v5167_v58 = vmul.f32 %v5143_v10, %v5003_v49  ;;  %v5177_v9 = vmul.f32 %v5157_v27, %v5016_v52 }
 0x154   : > { %7313 = vst [vmem:[#allocation215_spill] sm:$0xff] %v5155_v39  ;;  %7314 = vst [vmem:[#allocation53_spill] sm:$0xff] %v5171_v4  ;;  %v1379_v14 = vadd.f32 %v1371_v25, %v1349_v37  ;;  %v5181_v45 = vmul.f32 %v5173_v17, %v7254_v3  ;;  %v1119_v8 = vadd.f32 %v5012_v6, %v1089_v62  ;;  %v7316_v39 = vld [vmem:[#allocation127_spill] sm:$0xff]  ;;  %v7326_v2 = vld [vmem:[#allocation122_spill] sm:$0xff] }
 0x155   : > { %v1558_v5 = vadd.f32 %v1550_v20, %v1528_v61  ;;  %v1767_v30 = vadd.f32 %v1759_v46, %v1737_v57  ;;  %v5188_v4 = vmul.f32 %v5173_v17, %v7316_v39  ;;  %v5192_v25 = vmul.f32 %v5183_v1, %v4934_v44  ;;  %v5194_v20 = vld [vmem:[#allocation7 + $0x2f] ss:$0 sm:$0xff] }
 0x156   : > { %7315 = vst [vmem:[#allocation156_spill] sm:$0xff] %v5181_v45  ;;  %v5198_v37 = vmul.f32 %v5183_v1, %v5160_v60  ;;  %v5202_v45 = vmul.f32 %v5194_v20, %v4936_v54  ;;  %v5206_v6 = vmul.f32 %v5194_v20, %v5162_v42  ;;  %v1149_v46 = vadd.f32 %v5020_v48, %v1119_v8  ;;  %v5226_v48 = vld [vmem:[#allocation2 + $0x43] sm:$0xff]  ;;  %v7324_v8 = vld [vmem:[#allocation117_spill] sm:$0xff] }
 0x157   : > { %7317 = vst [vmem:[#allocation94_spill] sm:$0xff] %v5192_v25  ;;  %v1588_v61 = vadd.f32 %v1580_v53, %v1558_v5  ;;  %v1409_v57 = vadd.f32 %v5059_v43, %v1379_v14  ;;  %v1797_v62 = vadd.f32 %v1789_v24, %v1767_v30  ;;  %v5212_v53 = vmul.f32 %v4526_v35, %v4994_v40  ;;  %v5214_v5 = vld [vmem:[#allocation9 + $0x6] ss:$0 sm:$0xff]  ;;  %v490_v40 = vld [vmem:[#allocation2 + $0xc3] sm:$0xff] }
 0x158   : > { %7318 = vst [vmem:[#allocation95_spill] sm:$0xff] %v5202_v45  ;;  %7319 = vst [vmem:[#allocation182_spill] sm:$0xff] %v5206_v6  ;;  %v7322_v45 = vld [vmem:[#allocation116_spill] sm:$0xff]  ;;  %v5235_v11 = vmul.f32 %v3964_v0, %v7324_v8  ;;  %v7328_v30 = vld [vmem:[#allocation143_spill] sm:$0xff] }
 0x159   : > { %7320 = vst [vmem:[#allocation99_spill] sm:$0xff] %v5214_v5  ;;  %v1618_v25 = vadd.f32 %v1610_v51, %v1588_v61  ;;  %v5222_v63 = vmul.f32 %v3962_v7, %v7322_v45  ;;  %v5224_v6 = vld [vmem:[#allocation9 + $0x2] ss:$0 sm:$0xff]  ;;  %v1179_v51 = vadd.f32 %v5024_v50, %v1149_v46  ;;  %v1827_v14 = vadd.f32 %v1819_v32, %v1797_v62  ;;  %v7332_v50 = vld [vmem:[#allocation66_spill] sm:$0xff]  ;;  %v7334_v0 = vld [vmem:[#allocation105_spill] sm:$0xff] }
 0x15a   : > { %7323 = vst [vmem:[#allocation100_spill] sm:$0xff] %v5224_v6  ;;  %v5230_v43 = vmul.f32 %v5226_v48, %v5224_v6  ;;  %v519_v24 = vld [vmem:[#allocation2 + $0xc4] sm:$0xff]  ;;  %7325 = vst [vmem:[#allocation217_spill] sm:$0xff] %v5235_v11  ;;  %v5239_v7 = vmul.f32 %v7134_v34, %v7326_v2  ;;  %v5243_v61 = vmul.f32 %v7182_v12, %v7328_v30  ;;  %v433_v62 = vld [vmem:[#allocation2 + $0xd1] sm:$0xff] }
 0x15b   : > { %v548_v45 = vld [vmem:[#allocation2 + $0xc5] sm:$0xff]  ;;  %v5251_v32 = vmul.f32 %v7332_v50, %v5162_v42  ;;  %v5255_v46 = vmul.f32 %v7334_v0, %v5003_v49  ;;  %v1209_v34 = vadd.f32 %v5030_v47, %v1179_v51  ;;  %v1857_v12 = vadd.f32 %v4908_v18, %v1827_v14  ;;  %v7340_v47 = vld [vmem:[#allocation158_spill] sm:$0xff] }
 0x15c   : > { %7327 = vst [vmem:[#allocation177_spill] sm:$0xff] %v5239_v7  ;;  %7329 = vst [vmem:[#allocation71_spill] sm:$0xff] %v5243_v61  ;;  %v7330_v6 = vld [vmem:[#allocation148_spill] sm:$0xff]  ;;  %v5262_v30 = vmul.f32 %v5104_v31, %v4886_v26  ;;  %v5266_v50 = vmul.f32 %v5104_v31, %v490_v40  ;;  %v3156_v18 = vld [vmem:[#allocation2 + $0xb5] sm:$0xff]  ;;  %v5286_v61 = vmul.f32 %v5143_v10, %v4903_v21 }
 0x15d   : > { %v5247_v35 = vmul.f32 %v5214_v5, %v7330_v6  ;;  %7333 = vst [vmem:[#allocation72_spill] sm:$0xff] %v5251_v32  ;;  %7335 = vst [vmem:[#allocation157_spill] sm:$0xff] %v5255_v46  ;;  %v7336_v8 = vld [vmem:[#allocation160_spill] sm:$0xff]  ;;  %v3155_v32 = vld [vmem:[#allocation2 + $0xb4] sm:$0xff]  ;;  %v5272_v46 = vmul.f32 %v5093_v38, %v519_v24  ;;  %v1887_v51 = vadd.f32 %v1879_v15, %v1857_v12 }
 0x15e   : > { %v1439_v2 = vadd.f32 %v7336_v8, %v1409_v57  ;;  %v7337_v6 = vld [vmem:[#allocation188_spill] sm:$0xff]  ;;  %7338 = vst [vmem:[#allocation133_spill] sm:$0xff] %v5266_v50  ;;  %v5269_v0 = vmul.f32 %v3155_v32, %v5093_v38  ;;  %v1239_v57 = vadd.f32 %v7340_v47, %v1209_v34  ;;  %v5276_v14 = vmul.f32 %v3156_v18, %v5106_v22  ;;  %v5291_v15 = vld [vmem:[#allocation12] ss:$0 sm:$0xff]  ;;  %v7345_v34 = vld [vmem:[#allocation134_spill] sm:$0xff] }
 0x15f   : > { %7331 = vst [vmem:[#allocation231_spill] sm:$0xff] %v5247_v35  ;;  %v1648_v35 = vadd.f32 %v7337_v6, %v1618_v25  ;;  %7339 = vst [vmem:[#allocation76_spill] sm:$0xff] %v5272_v46  ;;  %v5279_v8 = vmul.f32 %v5106_v22, %v548_v45  ;;  %v462_v25 = vld [vmem:[#allocation2 + $0xd2] sm:$0xff]  ;;  %v5289_v46 = vmul.f32 %v5143_v10, %v433_v62 }
 0x160   : > { %7341 = vst [vmem:[#allocation77_spill] sm:$0xff] %v5276_v14  ;;  %v3157_v6 = vld [vmem:[#allocation2 + $0xb1] sm:$0xff]  ;;  %7343 = vst [vmem:[#allocation78_spill] sm:$0xff] %v5286_v61  ;;  %v617_v12 = vadd.f32 %v5291_v15, %v7345_v34  ;;  %v1269_v47 = vadd.f32 %v5040_v23, %v1239_v57  ;;  %v1917_v7 = vadd.f32 %v5167_v58, %v1887_v51  ;;  %v7351_v57 = vld [vmem:[#allocation175_spill] sm:$0xff] }
 0x161   : > { %7342 = vst [vmem:[#allocation21_spill] sm:$0xff] %v5279_v8  ;;  %v5282_v50 = vmul.f32 %v3157_v6, %v5143_v10  ;;  %7344 = vst [vmem:[#allocation183_spill] sm:$0xff] %v5289_v46  ;;  %v1469_v8 = vadd.f32 %v5068_v19, %v1439_v2  ;;  %v5300_v6 = vmul.f32 %v5157_v27, %v7246_v33  ;;  %v491_v21 = vld [vmem:[#allocation2 + $0xd3] sm:$0xff]  ;;  %v3159_v14 = vld [vmem:[#allocation7 + $0x1] ss:$0 sm:$0xff] }
 0x162   : > { %v1678_v61 = vadd.f32 %v5098_v36, %v1648_v35  ;;  %v5305_v62 = vmul.f32 %v5157_v27, %v4914_v13  ;;  %v7347_v46 = vld [vmem:[#allocation213_spill] sm:$0xff]  ;;  %v667_v23 = vmul.f32 %v3159_v14, %v4575_v55  ;;  %v1299_v19 = vadd.f32 %v5044_v59, %v1269_v47 }
 0x163   : > { %v646_v11 = vadd.f32 %v7347_v46, %v617_v12  ;;  %v1947_v58 = vadd.f32 %v5177_v9, %v1917_v7  ;;  %v5312_v2 = vmul.f32 %v5157_v27, %v462_v25  ;;  %v5316_v33 = vmul.f32 %v5173_v17, %v4886_v26  ;;  %v520_v35 = vld [vmem:[#allocation2 + $0xd4] sm:$0xff]  ;;  %v5321_v46 = vld [vmem:[#allocation7 + $0x2] ss:$0 sm:$0xff]  ;;  %v5325_v59 = vld [vmem:[#allocation7 + $0x3] ss:$0 sm:$0xff] }
 0x164   : > { %7346 = vst [vmem:[#allocation181_spill] sm:$0xff] %v5305_v62  ;;  %v5319_v36 = vmul.f32 %v5173_v17, %v490_v40  ;;  %v696_v55 = vmul.f32 %v5321_v46, %v4623_v28  ;;  %v725_v9 = vmul.f32 %v5325_v59, %v4052_v41  ;;  %v549_v7 = vld [vmem:[#allocation2 + $0xd5] sm:$0xff]  ;;  %v1329_v51 = vadd.f32 %v7351_v57, %v1299_v19  ;;  %v7352_v26 = vld [vmem:[#allocation176_spill] sm:$0xff]  ;;  %v3176_v62 = vld [vmem:[#allocation7 + $0x15] ss:$0 sm:$0xff] }
 0x165   : > { %7348 = vst [vmem:[#allocation232_spill] sm:$0xff] %v5312_v2  ;;  %7349 = vst [vmem:[#allocation128_spill] sm:$0xff] %v5316_v33  ;;  %v675_v13 = vadd.f32 %v667_v23, %v646_v11  ;;  %v1499_v14 = vadd.f32 %v7352_v26, %v1469_v8  ;;  %v5332_v25 = vmul.f32 %v5173_v17, %v491_v21  ;;  %v7366_v57 = vld [vmem:[#allocation98_spill] sm:$0xff]  ;;  %v7373_v2 = vld [vmem:[#allocation172_spill] sm:$0xff] }
 0x166   : > { %7350 = vst [vmem:[#allocation159_spill] sm:$0xff] %v5319_v36  ;;  %v5335_v40 = vmul.f32 %v3155_v32, %v5183_v1  ;;  %v1708_v11 = vadd.f32 %v5102_v16, %v1678_v61  ;;  %v1977_v12 = vadd.f32 %v5188_v4, %v1947_v58  ;;  %v5340_v47 = vmul.f32 %v5183_v1, %v519_v24  ;;  %v7359_v32 = vld [vmem:[#allocation186_spill] sm:$0xff]  ;;  %v5356_v4 = vld [vmem:[#allocation9 + $0x5] ss:$0 sm:$0xff]  ;;  %v5362_v58 = vld [vmem:[#allocation7 + $0x4] ss:$0 sm:$0xff] }
 0x167   : > { %7353 = vst [vmem:[#allocation178_spill] sm:$0xff] %v5332_v25  ;;  %v704_v23 = vadd.f32 %v696_v55, %v675_v13  ;;  %v5343_v41 = vmul.f32 %v5183_v1, %v520_v35  ;;  %v5346_v19 = vmul.f32 %v3156_v18, %v5194_v20  ;;  %v5349_v8 = vmul.f32 %v5194_v20, %v548_v45  ;;  %v7363_v18 = vld [vmem:[#allocation54_spill] sm:$0xff]  ;;  %v3175_v36 = vld [vmem:[#allocation7 + $0x13] ss:$0 sm:$0xff] }
 0x168   : > { %7354 = vst [vmem:[#allocation32_spill] sm:$0xff] %v5335_v40  ;;  %7355 = vst [vmem:[#allocation185_spill] sm:$0xff] %v5340_v47  ;;  %v1342_v21 = vmul.f32 %v7359_v32, %v7316_v39  ;;  %v5354_v16 = vmul.f32 %v5194_v20, %v549_v7  ;;  %v5360_v24 = vmul.f32 %v5356_v4, %v5003_v49  ;;  %v7364_v45 = vld [vmem:[#allocation38_spill] sm:$0xff] }
 0x169   : > { %7356 = vst [vmem:[#allocation127_spill] sm:$0xff] %v5343_v41  ;;  %7357 = vst [vmem:[#allocation115_spill] sm:$0xff] %v5346_v19  ;;  %v733_v61 = vadd.f32 %v725_v9, %v704_v23  ;;  %v754_v35 = vmul.f32 %v5362_v58, %v7363_v18  ;;  %v1529_v13 = vadd.f32 %v7364_v45, %v1499_v14  ;;  %v5375_v23 = vld [vmem:[#allocation7 + $0x9] ss:$0 sm:$0xff]  ;;  %v5379_v25 = vld [vmem:[#allocation7 + $0xa] ss:$0 sm:$0xff] }
 0x16a   : > { %7358 = vst [vmem:[#allocation116_spill] sm:$0xff] %v5349_v8  ;;  %7360 = vst [vmem:[#allocation117_spill] sm:$0xff] %v5354_v16  ;;  %v5369_v55 = vmul.f32 %v5214_v5, %v4623_v28  ;;  %v1350_v7 = vadd.f32 %v1342_v21, %v1329_v51  ;;  %v1372_v26 = vmul.f32 %v7366_v57, %v5160_v60  ;;  %v7367_v16 = vld [vmem:[#allocation220_spill] sm:$0xff]  ;;  %v5391_v21 = vld [vmem:[#allocation2 + $0xa0] sm:$0xff] }
 0x16b   : > { %7361 = vst [vmem:[#allocation122_spill] sm:$0xff] %v5356_v4  ;;  %7362 = vst [vmem:[#allocation143_spill] sm:$0xff] %v5360_v24  ;;  %v1738_v41 = vadd.f32 %v7367_v16, %v1708_v11  ;;  %v2007_v24 = vadd.f32 %v5198_v37, %v1977_v12  ;;  %v762_v9 = vadd.f32 %v754_v35, %v733_v61  ;;  %v5385_v14 = vld [vmem:[#allocation7 + $0x1a] ss:$0 sm:$0xff]  ;;  %v7370_v37 = vld [vmem:[#allocation229_spill] sm:$0xff] }
 0x16c   : > { %7365 = vst [vmem:[#allocation148_spill] sm:$0xff] %v5369_v55  ;;  %7368 = vst [vmem:[#allocation66_spill] sm:$0xff] %v5375_v23  ;;  %v902_v18 = vmul.f32 %v5375_v23, %v4771_v56  ;;  %v5383_v28 = vmul.f32 %v5379_v25, %v7254_v3  ;;  %v1380_v51 = vadd.f32 %v1372_v26, %v1350_v7  ;;  %v7371_v16 = vld [vmem:[#allocation75_spill] sm:$0xff]  ;;  %v5394_v35 = vld [vmem:[#allocation7 + $0xb] ss:$0 sm:$0xff] }
 0x16d   : > { %7369 = vst [vmem:[#allocation105_spill] sm:$0xff] %v5379_v25  ;;  %v1402_v11 = vmul.f32 %v5385_v14, %v5162_v42  ;;  %v1551_v12 = vmul.f32 %v7370_v37, %v7316_v39  ;;  %v791_v61 = vadd.f32 %v7371_v16, %v762_v9  ;;  %7372 = vst [vmem:[#allocation160_spill] sm:$0xff] %v5394_v35  ;;  %v3168_v3 = vld [vmem:[#allocation7 + $0xc] ss:$0 sm:$0xff]  ;;  %v3169_v57 = vld [vmem:[#allocation7 + $0xf] ss:$0 sm:$0xff] }
 0x16e   : > { %v5398_v45 = vmul.f32 %v5394_v35, %v4934_v44  ;;  %v5401_v7 = vmul.f32 %v3168_v3, %v4936_v54  ;;  %v5404_v26 = vmul.f32 %v3169_v57, %v5003_v49  ;;  %v5408_v55 = vmul.f32 %v7373_v2, %v5016_v52  ;;  %v5410_v16 = vld [vmem:[#allocation7 + $0x20] ss:$0 sm:$0xff]  ;;  %v7374_v8 = vld [vmem:[#allocation182_spill] sm:$0xff]  ;;  %v5417_v54 = vld [vmem:[#allocation2 + $0xa2] sm:$0xff] }
 0x16f   : > { %v1410_v4 = vadd.f32 %v1402_v11, %v1380_v51  ;;  %v1559_v9 = vadd.f32 %v1551_v12, %v1529_v13  ;;  %v1581_v44 = vmul.f32 %v5410_v16, %v5160_v60  ;;  %v2037_v5 = vadd.f32 %v7374_v8, %v2007_v24  ;;  %v5415_v56 = vld [vmem:[#allocation2 + $0xa1] sm:$0xff]  ;;  %v7375_v3 = vld [vmem:[#allocation81_spill] sm:$0xff]  ;;  %v3173_v24 = vld [vmem:[#allocation7 + $0x1c] ss:$0 sm:$0xff] }
 0x170   : > { %v820_v49 = vadd.f32 %v7375_v3, %v791_v61  ;;  %v5420_v57 = vld [vmem:[#allocation7 + $0x11] ss:$0 sm:$0xff]  ;;  %v5426_v13 = vld [vmem:[#allocation7 + $0x12] ss:$0 sm:$0xff]  ;;  %v1462_v12 = vmul.f32 %v3173_v24, %v5391_v21  ;;  %v3174_v35 = vld [vmem:[#allocation7 + $0x21] ss:$0 sm:$0xff]  ;;  %v5440_v25 = vmul.f32 %v3176_v62, %v5391_v21  ;;  %v1790_v62 = vmul.f32 %v5093_v38, %v5160_v60 }
 0x171   : > { %7376 = vst [vmem:[#allocation188_spill] sm:$0xff] %v5420_v57  ;;  %v5424_v2 = vmul.f32 %v5420_v57, %v7316_v39  ;;  %7377 = vst [vmem:[#allocation158_spill] sm:$0xff] %v5426_v13  ;;  %v5430_v51 = vmul.f32 %v5426_v13, %v5160_v60  ;;  %v7378_v11 = vld [vmem:[#allocation219_spill] sm:$0xff]  ;;  %v1589_v52 = vadd.f32 %v1581_v44, %v1559_v9  ;;  %v7379_v3 = vld [vmem:[#allocation228_spill] sm:$0xff] }
 0x172   : > { %v1440_v8 = vadd.f32 %v7378_v11, %v1410_v4  ;;  %v1611_v61 = vmul.f32 %v3174_v35, %v5162_v42  ;;  %v850_v47 = vadd.f32 %v7379_v3, %v820_v49  ;;  %v5437_v57 = vmul.f32 %v3175_v36, %v5162_v42  ;;  %7380 = vst [vmem:[#allocation134_spill] sm:$0xff] %v5440_v25  ;;  %v3177_v13 = vld [vmem:[#allocation7 + $0x1d] ss:$0 sm:$0xff]  ;;  %v7381_v44 = vld [vmem:[#allocation187_spill] sm:$0xff]  ;;  %v7382_v3 = vld [vmem:[#allocation89_spill] sm:$0xff] }
 0x173   : > { %v1760_v4 = vmul.f32 %v5104_v31, %v7316_v39  ;;  %v1492_v9 = vmul.f32 %v3177_v13, %v5415_v56  ;;  %v1522_v24 = vmul.f32 %v7381_v44, %v5417_v54  ;;  %v2067_v49 = vadd.f32 %v5212_v53, %v2037_v5  ;;  %v517_v25 = vld [vmem:[#allocation2 + $0xa4] sm:$0xff]  ;;  %v3178_v13 = vld [vmem:[#allocation7 + $0x23] ss:$0 sm:$0xff] }
 0x174   : > { %v1470_v11 = vadd.f32 %v1462_v12, %v1440_v8  ;;  %v1619_v23 = vadd.f32 %v1611_v61, %v1589_v52  ;;  %v880_v36 = vadd.f32 %v7382_v3, %v850_v47  ;;  %v1552_v39 = vmul.f32 %v7370_v37, %v7345_v34  ;;  %v7383_v8 = vld [vmem:[#allocation130_spill] sm:$0xff]  ;;  %v3179_v52 = vld [vmem:[#allocation7 + $0x16] ss:$0 sm:$0xff]  ;;  %v7384_v60 = vld [vmem:[#allocation180_spill] sm:$0xff] }
 0x175   : > { %v1768_v19 = vadd.f32 %v1760_v4, %v1738_v41  ;;  %v1671_v33 = vmul.f32 %v3178_v13, %v5391_v21  ;;  %v5456_v53 = vmul.f32 %v3179_v52, %v5415_v56  ;;  %v1820_v47 = vmul.f32 %v5106_v22, %v5162_v42  ;;  %v7386_v42 = vld [vmem:[#allocation233_spill] sm:$0xff] }
 0x176   : > { %v1500_v40 = vadd.f32 %v1492_v9, %v1470_v11  ;;  %v1649_v12 = vadd.f32 %v7383_v8, %v1619_v23  ;;  %v910_v44 = vadd.f32 %v902_v18, %v880_v36  ;;  %v5462_v41 = vmul.f32 %v7384_v60, %v5417_v54  ;;  %v7385_v23 = vld [vmem:[#allocation230_spill] sm:$0xff]  ;;  %v546_v18 = vld [vmem:[#allocation2 + $0xa5] sm:$0xff] }
 0x177   : > { %v1798_v5 = vadd.f32 %v1790_v62, %v1768_v19  ;;  %v1701_v37 = vmul.f32 %v7385_v23, %v5415_v56  ;;  %v2088_v4 = vadd.f32 %v5218_v29, %v2067_v49  ;;  %v1582_v9 = vmul.f32 %v5410_v16, %v517_v25  ;;  %v3180_v8 = vld [vmem:[#allocation2 + $0xa3] sm:$0xff]  ;;  %v7387_v49 = vld [vmem:[#allocation221_spill] sm:$0xff] }
 0x178   : > { %v1530_v61 = vadd.f32 %v1522_v24, %v1500_v40  ;;  %v1679_v34 = vadd.f32 %v1671_v33, %v1649_v12  ;;  %v940_v11 = vadd.f32 %v5383_v28, %v910_v44  ;;  %v1731_v62 = vmul.f32 %v7386_v42, %v5417_v54  ;;  %v5472_v33 = vld [vmem:[#allocation2 + $0xa6] sm:$0xff]  ;;  %v7388_v12 = vld [vmem:[#allocation194_spill] sm:$0xff]  ;;  %v3182_v23 = vld [vmem:[#allocation7 + $0x22] ss:$0 sm:$0xff] }
 0x179   : > { %v1828_v19 = vadd.f32 %v1820_v47, %v1798_v5  ;;  %v1761_v40 = vmul.f32 %v3180_v8, %v5104_v31  ;;  %v5476_v29 = vmul.f32 %v3180_v8, %v7359_v32  ;;  %v1880_v13 = vmul.f32 %v7388_v12, %v5391_v21 }
 0x17a   : > { %v1560_v3 = vadd.f32 %v1552_v39, %v1530_v61  ;;  %v1709_v36 = vadd.f32 %v1701_v37, %v1679_v34  ;;  %v970_v24 = vadd.f32 %v5398_v45, %v940_v11  ;;  %v3181_v39 = vld [vmem:[#allocation7 + $0x19] ss:$0 sm:$0xff]  ;;  %v1612_v5 = vmul.f32 %v3174_v35, %v546_v18 }
 0x17b   : > { %v1858_v28 = vadd.f32 %v7387_v49, %v1828_v19  ;;  %v5481_v44 = vmul.f32 %v3181_v39, %v517_v25  ;;  %v2109_v60 = vadd.f32 %v5222_v63, %v2088_v4  ;;  %v1910_v32 = vmul.f32 %v5143_v10, %v5415_v56  ;;  %v7389_v19 = vld [vmem:[#allocation90_spill] sm:$0xff]  ;;  %v5502_v39 = vld [vmem:[#allocation2 + $0x22] sm:$0xff] }
 0x17c   : > { %v1590_v52 = vadd.f32 %v1582_v9, %v1560_v3  ;;  %v1739_v47 = vadd.f32 %v1731_v62, %v1709_v36  ;;  %v1000_v61 = vadd.f32 %v5401_v7, %v970_v24  ;;  %v1642_v37 = vmul.f32 %v3182_v23, %v5472_v33  ;;  %v7390_v62 = vld [vmem:[#allocation37_spill] sm:$0xff]  ;;  %v5515_v23 = vld [vmem:[#allocation2 + $0x23] sm:$0xff] }
 0x17d   : > { %v1888_v34 = vadd.f32 %v1880_v13, %v1858_v28  ;;  %v1791_v21 = vmul.f32 %v5093_v38, %v517_v25  ;;  %v1940_v35 = vmul.f32 %v5157_v27, %v5417_v54  ;;  %v1970_v63 = vmul.f32 %v3180_v8, %v5173_v17  ;;  %v3183_v24 = vld [vmem:[#allocation7 + $0x29] ss:$0 sm:$0xff] }
 0x17e   : > { %v1620_v45 = vadd.f32 %v1612_v5, %v1590_v52  ;;  %v1769_v11 = vadd.f32 %v1761_v40, %v1739_v47  ;;  %v1030_v42 = vadd.f32 %v7389_v19, %v1000_v61  ;;  %v5494_v7 = vmul.f32 %v5385_v14, %v546_v18  ;;  %v7391_v13 = vld [vmem:[#allocation85_spill] sm:$0xff] }
 0x17f   : > { %v1918_v9 = vadd.f32 %v1910_v32, %v1888_v34  ;;  %v1821_v3 = vmul.f32 %v5106_v22, %v546_v18  ;;  %v2130_v36 = vadd.f32 %v5230_v43, %v2109_v60  ;;  %v1851_v49 = vmul.f32 %v3183_v24, %v5472_v33  ;;  %v5508_v47 = vld [vmem:[#allocation2 + $0x53] sm:$0xff] }
 0x180   : > { %v1650_v4 = vadd.f32 %v1642_v37, %v1620_v45  ;;  %v1799_v56 = vadd.f32 %v1791_v21, %v1769_v11  ;;  %v1060_v40 = vadd.f32 %v7390_v62, %v1030_v42  ;;  %v2000_v54 = vmul.f32 %v5183_v1, %v517_v25  ;;  %v7392_v25 = vld [vmem:[#allocation199_spill] sm:$0xff]  ;;  %v7393_v32 = vld [vmem:[#allocation129_spill] sm:$0xff]  ;;  %v7395_v42 = vld [vmem:[#allocation208_spill] sm:$0xff] }
 0x181   : > { %v1948_v28 = vadd.f32 %v1940_v35, %v1918_v9  ;;  %v611_v14 = vadd.f32 %v5291_v15, %v5226_v48  ;;  %v2030_v43 = vmul.f32 %v5194_v20, %v546_v18  ;;  %v612_v60 = vadd.f32 %v5508_v47, %v5291_v15  ;;  %v7394_v37 = vld [vmem:[#allocation23_spill] sm:$0xff]  ;;  %v7396_v9 = vld [vmem:[#allocation216_spill] sm:$0xff] }
 0x182   : > { %v1829_v12 = vadd.f32 %v1821_v3, %v1799_v56  ;;  %v1680_v8 = vadd.f32 %v7391_v13, %v1650_v4  ;;  %v1090_v52 = vadd.f32 %v5404_v26, %v1060_v40  ;;  %v2060_v34 = vmul.f32 %v7392_v25, %v5472_v33  ;;  %v7397_v4 = vld [vmem:[#allocation24_spill] sm:$0xff] }
 0x183   : > { %v1978_v5 = vadd.f32 %v1970_v63, %v1948_v28  ;;  %v640_v11 = vadd.f32 %v7394_v37, %v611_v14  ;;  %v641_v18 = vadd.f32 %v7394_v37, %v612_v60  ;;  %v691_v19 = vmul.f32 %v5321_v46, %v5502_v39  ;;  %v5524_v63 = vld [vmem:[#allocation2 + $0x24] sm:$0xff] }
 0x184   : > { %v1859_v61 = vadd.f32 %v1851_v49, %v1829_v12  ;;  %v1710_v45 = vadd.f32 %v7393_v32, %v1680_v8  ;;  %v1120_v26 = vadd.f32 %v5408_v55, %v1090_v52  ;;  %v7398_v3 = vld [vmem:[#allocation92_spill] sm:$0xff]  ;;  %v7400_v49 = vld [vmem:[#allocation25_spill] sm:$0xff]  ;;  %v720_v12 = vmul.f32 %v5325_v59, %v5515_v23  ;;  %v7401_v8 = vld [vmem:[#allocation26_spill] sm:$0xff] }
 0x185   : > { %v2008_v21 = vadd.f32 %v2000_v54, %v1978_v5  ;;  %v669_v56 = vadd.f32 %v7397_v4, %v640_v11  ;;  %v7399_v62 = vld [vmem:[#allocation28_spill] sm:$0xff]  ;;  %v670_v28 = vadd.f32 %v7400_v49, %v641_v18  ;;  %v7402_v52 = vld [vmem:[#allocation30_spill] sm:$0xff]  ;;  %v7403_v59 = vld [vmem:[#allocation27_spill] sm:$0xff] }
 0x186   : > { %v1889_v15 = vadd.f32 %v7395_v42, %v1859_v61  ;;  %v1740_v35 = vadd.f32 %v7396_v9, %v1710_v45  ;;  %v755_v40 = vadd.f32 %v7399_v62, %v7398_v3  ;;  %v1150_v24 = vadd.f32 %v5424_v2, %v1120_v26  ;;  %v3185_v11 = vld [vmem:[#allocation7 + $0x1b] ss:$0 sm:$0xff]  ;;  %v7405_v18 = vld [vmem:[#allocation77_spill] sm:$0xff] }
 0x187   : > { %v2038_v55 = vadd.f32 %v2030_v43, %v2008_v21  ;;  %v698_v14 = vadd.f32 %v7401_v8, %v669_v56  ;;  %v699_v25 = vadd.f32 %v691_v19, %v670_v28  ;;  %v749_v2 = vmul.f32 %v5362_v58, %v5524_v63  ;;  %v7406_v19 = vld [vmem:[#allocation128_spill] sm:$0xff]  ;;  %v7409_v56 = vld [vmem:[#allocation217_spill] sm:$0xff] }
 0x188   : > { %v1770_v46 = vadd.f32 %v5262_v30, %v1740_v35  ;;  %v1919_v54 = vadd.f32 %v5282_v50, %v1889_v15  ;;  %v784_v5 = vadd.f32 %v7402_v52, %v755_v40  ;;  %v1180_v60 = vadd.f32 %v5430_v51, %v1150_v24  ;;  %v7404_v30 = vld [vmem:[#allocation34_spill] sm:$0xff]  ;;  %v3186_v51 = vld [vmem:[#allocation9] ss:$0 sm:$0xff]  ;;  %v7407_v15 = vld [vmem:[#allocation29_spill] sm:$0xff] }
 0x189   : > { %v2068_v61 = vadd.f32 %v2060_v34, %v2038_v55  ;;  %v727_v45 = vadd.f32 %v7403_v59, %v698_v14  ;;  %v5546_v26 = vmul.f32 %v3185_v11, %v5472_v33  ;;  %v5548_v34 = vld [vmem:[#allocation2 + $0x51] sm:$0xff]  ;;  %v728_v58 = vadd.f32 %v720_v12, %v699_v25  ;;  %v7411_v24 = vld [vmem:[#allocation86_spill] sm:$0xff]  ;;  %v7418_v59 = vld [vmem:[#allocation115_spill] sm:$0xff] }
 0x18a   : > { %v1800_v43 = vadd.f32 %v5269_v0, %v1770_v46  ;;  %v1949_v32 = vadd.f32 %v5300_v6, %v1919_v54  ;;  %v813_v37 = vadd.f32 %v7404_v30, %v784_v5  ;;  %v1210_v50 = vadd.f32 %v5437_v57, %v1180_v60  ;;  %v7408_v35 = vld [vmem:[#allocation40_spill] sm:$0xff]  ;;  %v7410_v3 = vld [vmem:[#allocation193_spill] sm:$0xff]  ;;  %v7413_v46 = vld [vmem:[#allocation31_spill] sm:$0xff] }
 0x18b   : > { %v2081_v21 = vmul.f32 %v5548_v34, %v3186_v51  ;;  %v756_v9 = vadd.f32 %v7407_v15, %v727_v45  ;;  %v2151_v57 = vadd.f32 %v7409_v56, %v2130_v36  ;;  %v757_v40 = vadd.f32 %v749_v2, %v728_v58  ;;  %v7412_v49 = vld [vmem:[#allocation32_spill] sm:$0xff]  ;;  %v7414_v54 = vld [vmem:[#allocation41_spill] sm:$0xff]  ;;  %v7415_v14 = vld [vmem:[#allocation134_spill] sm:$0xff] }
 0x18c   : > { %v1830_v0 = vadd.f32 %v7405_v18, %v1800_v43  ;;  %v1979_v6 = vadd.f32 %v7406_v19, %v1949_v32  ;;  %v843_v4 = vadd.f32 %v7408_v35, %v813_v37  ;;  %v1240_v62 = vadd.f32 %v7410_v3, %v1210_v50  ;;  %v5562_v5 = vld [vmem:[#allocation9 + $0x1] ss:$0 sm:$0xff]  ;;  %v5564_v60 = vld [vmem:[#allocation2 + $0x52] sm:$0xff]  ;;  %v7416_v25 = vld [vmem:[#allocation100_spill] sm:$0xff] }
 0x18d   : > { %v2089_v33 = vadd.f32 %v2081_v21, %v2068_v61  ;;  %v785_v12 = vadd.f32 %v7413_v46, %v756_v9  ;;  %v2102_v36 = vmul.f32 %v5564_v60, %v5562_v5  ;;  %v2123_v61 = vmul.f32 %v5508_v47, %v7416_v25  ;;  %v7417_v2 = vld [vmem:[#allocation33_spill] sm:$0xff]  ;;  %v7419_v30 = vld [vmem:[#allocation35_spill] sm:$0xff]  ;;  %v7421_v58 = vld [vmem:[#allocation36_spill] sm:$0xff] }
 0x18e   : > { %v1860_v55 = vadd.f32 %v7411_v24, %v1830_v0  ;;  %v2009_v28 = vadd.f32 %v7412_v49, %v1979_v6  ;;  %v873_v8 = vadd.f32 %v7414_v54, %v843_v4  ;;  %v1270_v52 = vadd.f32 %v7415_v14, %v1240_v62  ;;  %v7420_v50 = vld [vmem:[#allocation43_spill] sm:$0xff]  ;;  %v7422_v0 = vld [vmem:[#allocation66_spill] sm:$0xff]  ;;  %v7425_v3 = vld [vmem:[#allocation44_spill] sm:$0xff] }
 0x18f   : > { %v786_v43 = vadd.f32 %v7417_v2, %v757_v40  ;;  %v814_v37 = vadd.f32 %v7419_v30, %v785_v12  ;;  %v2110_v21 = vadd.f32 %v2102_v36, %v2089_v33  ;;  %v896_v19 = vmul.f32 %v7422_v0, %v5502_v39  ;;  %v7423_v6 = vld [vmem:[#allocation78_spill] sm:$0xff]  ;;  %v7424_v9 = vld [vmem:[#allocation55_spill] sm:$0xff]  ;;  %v7426_v24 = vld [vmem:[#allocation93_spill] sm:$0xff] }
 0x190   : > { %v1890_v32 = vadd.f32 %v7395_v42, %v1860_v55  ;;  %v2039_v45 = vadd.f32 %v7418_v59, %v2009_v28  ;;  %v903_v11 = vadd.f32 %v7420_v50, %v873_v8  ;;  %v1300_v51 = vadd.f32 %v5456_v53, %v1270_v52  ;;  %v5585_v49 = vld [vmem:[#allocation2 + $0x32] sm:$0xff]  ;;  %v7429_v54 = vld [vmem:[#allocation210_spill] sm:$0xff]  ;;  %v7433_v30 = vld [vmem:[#allocation159_spill] sm:$0xff] }
 0x191   : > { %v815_v18 = vadd.f32 %v7421_v58, %v786_v43  ;;  %v844_v56 = vadd.f32 %v7408_v35, %v814_v37  ;;  %v897_v53 = vmul.f32 %v5585_v49, %v7422_v0  ;;  %v7427_v33 = vld [vmem:[#allocation105_spill] sm:$0xff]  ;;  %v7430_v14 = vld [vmem:[#allocation42_spill] sm:$0xff]  ;;  %v2131_v2 = vadd.f32 %v2123_v61, %v2110_v21  ;;  %v7432_v43 = vld [vmem:[#allocation96_spill] sm:$0xff] }
 0x192   : > { %v1920_v15 = vadd.f32 %v7423_v6, %v1890_v32  ;;  %v2069_v4 = vadd.f32 %v7424_v9, %v2039_v45  ;;  %v933_v62 = vadd.f32 %v7425_v3, %v903_v11  ;;  %v1330_v40 = vadd.f32 %v5462_v41, %v1300_v51  ;;  %v7428_v46 = vld [vmem:[#allocation181_spill] sm:$0xff]  ;;  %v7434_v50 = vld [vmem:[#allocation211_spill] sm:$0xff]  ;;  %v7435_v58 = vld [vmem:[#allocation46_spill] sm:$0xff] }
 0x193   : > { %v845_v55 = vadd.f32 %v7426_v24, %v815_v18  ;;  %v926_v28 = vmul.f32 %v7427_v33, %v5515_v23  ;;  %v874_v35 = vadd.f32 %v7430_v14, %v844_v56  ;;  %v7431_v52 = vld [vmem:[#allocation45_spill] sm:$0xff]  ;;  %v7443_v14 = vld [vmem:[#allocation116_spill] sm:$0xff] }
 0x194   : > { %v1950_v12 = vadd.f32 %v7428_v46, %v1920_v15  ;;  %v2090_v8 = vadd.f32 %v7429_v54, %v2069_v4  ;;  %v963_v36 = vadd.f32 %v7431_v52, %v933_v62  ;;  %v1351_v41 = vadd.f32 %v5476_v29, %v1330_v40  ;;  %v5597_v59 = vld [vmem:[#allocation2 + $0x33] sm:$0xff]  ;;  %v5606_v29 = vld [vmem:[#allocation9 + $0x3] ss:$0 sm:$0xff]  ;;  %v7442_v54 = vld [vmem:[#allocation99_spill] sm:$0xff] }
 0x195   : > { %v875_v32 = vadd.f32 %v7432_v43, %v845_v55  ;;  %v927_v45 = vmul.f32 %v5597_v59, %v7427_v33  ;;  %v904_v51 = vadd.f32 %v896_v19, %v874_v35  ;;  %v7436_v0 = vld [vmem:[#allocation177_spill] sm:$0xff]  ;;  %v7438_v62 = vld [vmem:[#allocation160_spill] sm:$0xff]  ;;  %v7439_v40 = vld [vmem:[#allocation50_spill] sm:$0xff] }
 0x196   : > { %v1980_v37 = vadd.f32 %v7433_v30, %v1950_v12  ;;  %v2111_v11 = vadd.f32 %v7434_v50, %v2090_v8  ;;  %v993_v18 = vadd.f32 %v7435_v58, %v963_v36  ;;  %v2172_v6 = vadd.f32 %v7436_v0, %v2151_v57  ;;  %v5608_v61 = vld [vmem:[#allocation2 + $0x54] sm:$0xff]  ;;  %v7441_v12 = vld [vmem:[#allocation39_spill] sm:$0xff]  ;;  %v7444_v52 = vld [vmem:[#allocation52_spill] sm:$0xff] }
 0x197   : > { %v1381_v15 = vadd.f32 %v5481_v44, %v1351_v41  ;;  %v2144_v21 = vmul.f32 %v5608_v61, %v5606_v29  ;;  %v905_v9 = vadd.f32 %v897_v53, %v875_v32  ;;  %v7437_v4 = vld [vmem:[#allocation185_spill] sm:$0xff]  ;;  %v934_v3 = vadd.f32 %v926_v28, %v904_v51  ;;  %v7440_v44 = vld [vmem:[#allocation91_spill] sm:$0xff]  ;;  %v3194_v32 = vld [vmem:[#allocation9 + $0x4] ss:$0 sm:$0xff] }
 0x198   : > { %v2010_v56 = vadd.f32 %v7437_v4, %v1980_v37  ;;  %v956_v19 = vmul.f32 %v7438_v62, %v5524_v63  ;;  %v1023_v24 = vadd.f32 %v7439_v40, %v993_v18  ;;  %v2132_v33 = vadd.f32 %v7440_v44, %v2111_v11  ;;  %v7445_v36 = vld [vmem:[#allocation71_spill] sm:$0xff]  ;;  %v5626_v30 = vld [vmem:[#allocation2 + $0x55] sm:$0xff]  ;;  %v7449_v58 = vld [vmem:[#allocation56_spill] sm:$0xff] }
 0x199   : > { %v1411_v57 = vadd.f32 %v5494_v7, %v1381_v15  ;;  %v2152_v55 = vadd.f32 %v2144_v21, %v2131_v2  ;;  %v935_v46 = vadd.f32 %v927_v45, %v905_v9  ;;  %v5620_v8 = vmul.f32 %v7442_v54, %v7441_v12  ;;  %v7446_v2 = vld [vmem:[#allocation97_spill] sm:$0xff]  ;;  %v7447_v37 = vld [vmem:[#allocation59_spill] sm:$0xff]  ;;  %v3196_v0 = vld [vmem:[#allocation7 + $0x10] ss:$0 sm:$0xff] }
 0x19a   : > { %v2040_v53 = vadd.f32 %v7443_v14, %v2010_v56  ;;  %v964_v35 = vadd.f32 %v956_v19, %v934_v3  ;;  %v1053_v28 = vadd.f32 %v7444_v52, %v1023_v24  ;;  %v2193_v41 = vadd.f32 %v7445_v36, %v2172_v6  ;;  %v7448_v11 = vld [vmem:[#allocation49_spill] sm:$0xff]  ;;  %v7450_v6 = vld [vmem:[#allocation79_spill] sm:$0xff]  ;;  %v7455_v44 = vld [vmem:[#allocation188_spill] sm:$0xff] }
 0x19b   : > { %v1441_v43 = vadd.f32 %v5546_v26, %v1411_v57  ;;  %v2165_v7 = vmul.f32 %v5626_v30, %v3194_v32  ;;  %v965_v45 = vadd.f32 %v7446_v2, %v935_v46  ;;  %v1105_v15 = vmul.f32 %v3196_v0, %v5502_v39  ;;  %v7451_v26 = vld [vmem:[#allocation212_spill] sm:$0xff]  ;;  %v7452_v56 = vld [vmem:[#allocation101_spill] sm:$0xff]  ;;  %v7453_v62 = vld [vmem:[#allocation155_spill] sm:$0xff] }
 0x19c   : > { %v2070_v50 = vadd.f32 %v7447_v37, %v2040_v53  ;;  %v994_v51 = vadd.f32 %v7448_v11, %v964_v35  ;;  %v1083_v18 = vadd.f32 %v7449_v58, %v1053_v28  ;;  %v2153_v4 = vadd.f32 %v7451_v26, %v2132_v33  ;;  %v7454_v40 = vld [vmem:[#allocation51_spill] sm:$0xff]  ;;  %v7456_v14 = vld [vmem:[#allocation122_spill] sm:$0xff]  ;;  %v7463_v58 = vld [vmem:[#allocation64_spill] sm:$0xff] }
 0x19d   : > { %v2173_v21 = vadd.f32 %v2165_v7, %v2152_v55  ;;  %v1471_v9 = vadd.f32 %v7450_v6, %v1441_v43  ;;  %v995_v3 = vadd.f32 %v7452_v56, %v965_v45  ;;  %v1135_v46 = vmul.f32 %v7455_v44, %v5515_v23  ;;  %v5641_v12 = vld [vmem:[#allocation2 + $0x61] sm:$0xff]  ;;  %v7457_v55 = vld [vmem:[#allocation80_spill] sm:$0xff] }
 0x19e   : > { %v2091_v19 = vadd.f32 %v7453_v62, %v2070_v50  ;;  %v1024_v24 = vadd.f32 %v7454_v40, %v994_v51  ;;  %v1113_v57 = vadd.f32 %v1105_v15, %v1083_v18  ;;  %v2186_v53 = vmul.f32 %v5641_v12, %v7456_v14  ;;  %v7458_v52 = vld [vmem:[#allocation102_spill] sm:$0xff]  ;;  %v7460_v32 = vld [vmem:[#allocation103_spill] sm:$0xff]  ;;  %v7466_v56 = vld [vmem:[#allocation104_spill] sm:$0xff] }
 0x19f   : > { %v1501_v35 = vadd.f32 %v7457_v55, %v1471_v9  ;;  %v1025_v28 = vadd.f32 %v7458_v52, %v995_v3  ;;  %v1106_v33 = vmul.f32 %v3196_v0, %v5585_v49  ;;  %v7459_v36 = vld [vmem:[#allocation226_spill] sm:$0xff]  ;;  %v7462_v11 = vld [vmem:[#allocation207_spill] sm:$0xff]  ;;  %v2174_v18 = vadd.f32 %v7463_v58, %v2153_v4  ;;  %v7467_v40 = vld [vmem:[#allocation20_spill] sm:$0xff] }
 0x1a0   : > { %v2112_v43 = vadd.f32 %v7459_v36, %v2091_v19  ;;  %v1054_v7 = vadd.f32 %v7460_v32, %v1024_v24  ;;  %v1143_v2 = vadd.f32 %v1135_v46, %v1113_v57  ;;  %v7461_v45 = vld [vmem:[#allocation158_spill] sm:$0xff]  ;;  %v2194_v50 = vadd.f32 %v2186_v53, %v2173_v21  ;;  %v7464_v15 = vld [vmem:[#allocation135_spill] sm:$0xff]  ;;  %v7468_v57 = vld [vmem:[#allocation136_spill] sm:$0xff] }
 0x1a1   : > { %v1165_v37 = vmul.f32 %v7461_v45, %v5524_v63  ;;  %v1531_v51 = vadd.f32 %v7462_v11, %v1501_v35  ;;  %v1055_v6 = vadd.f32 %v7464_v15, %v1025_v28  ;;  %v7465_v9 = vld [vmem:[#allocation47_spill] sm:$0xff]  ;;  %v1136_v62 = vmul.f32 %v5597_v59, %v7455_v44  ;;  %v7471_v35 = vld [vmem:[#allocation110_spill] sm:$0xff]  ;;  %v7473_v36 = vld [vmem:[#allocation57_spill] sm:$0xff] }
 0x1a2   : > { %v2133_v26 = vadd.f32 %v7465_v9, %v2112_v43  ;;  %v1084_v3 = vadd.f32 %v7466_v56, %v1054_v7  ;;  %v5661_v14 = vld [vmem:[#allocation2 + $0x42] sm:$0xff]  ;;  %v1137_v4 = vmul.f32 %v7455_v44, %v5226_v48  ;;  %v5671_v52 = vmul.f32 %v7442_v54, %v7471_v35  ;;  %v7476_v44 = vld [vmem:[#allocation65_spill] sm:$0xff] }
 0x1a3   : > { %v1173_v19 = vadd.f32 %v1165_v37, %v1143_v2  ;;  %v1561_v24 = vadd.f32 %v7467_v40, %v1531_v51  ;;  %v1085_v46 = vadd.f32 %v7468_v57, %v1055_v6  ;;  %v1107_v21 = vmul.f32 %v5661_v14, %v3196_v0  ;;  %v7469_v53 = vld [vmem:[#allocation231_spill] sm:$0xff]  ;;  %v5678_v2 = vld [vmem:[#allocation9 + $0x7] ss:$0 sm:$0xff]  ;;  %v7475_v0 = vld [vmem:[#allocation82_spill] sm:$0xff] }
 0x1a4   : > { %v5667_v55 = vadd.f32 %v7469_v53, %v2193_v41  ;;  %7472 = vst [vmem:[#allocation175_spill] sm:$0xff] %v5671_v52  ;;  %v1114_v28 = vadd.f32 %v1106_v33, %v1084_v3  ;;  %v5674_v32 = vld [vmem:[#allocation2 + $0x62] sm:$0xff]  ;;  %7474 = vst [vmem:[#allocation176_spill] sm:$0xff] %v5678_v2  ;;  %v2195_v37 = vadd.f32 %v7476_v44, %v2174_v18  ;;  %v7478_v6 = vld [vmem:[#allocation58_spill] sm:$0xff] }
 0x1a5   : > { %v1203_v43 = vadd.f32 %v7473_v36, %v1173_v19  ;;  %v2207_v7 = vmul.f32 %v5674_v32, %v7442_v54  ;;  %v1591_v45 = vadd.f32 %v7475_v0, %v1561_v24  ;;  %v1115_v41 = vadd.f32 %v1107_v21, %v1085_v46  ;;  %v5682_v11 = vld [vmem:[#allocation2 + $0x63] sm:$0xff]  ;;  %v5688_v3 = vld [vmem:[#allocation2 + $0x73] sm:$0xff] }
 0x1a6   : > { %7470 = vst [vmem:[#allocation213_spill] sm:$0xff] %v5667_v55  ;;  %v2228_v51 = vmul.f32 %v5682_v11, %v5678_v2  ;;  %v7477_v33 = vld [vmem:[#allocation227_spill] sm:$0xff]  ;;  %v1144_v15 = vadd.f32 %v1136_v62, %v1114_v28  ;;  %7479 = vst [vmem:[#allocation186_spill] sm:$0xff] %v5688_v3  ;;  %v2229_v19 = vmul.f32 %v5688_v3, %v5678_v2  ;;  %v5699_v21 = vld [vmem:[#allocation2 + $0x93] sm:$0xff] }
 0x1a7   : > { %v2154_v58 = vadd.f32 %v7477_v33, %v2133_v26  ;;  %v1233_v9 = vadd.f32 %v7478_v6, %v1203_v43  ;;  %v2215_v56 = vadd.f32 %v2207_v7, %v2194_v50  ;;  %v7480_v40 = vld [vmem:[#allocation83_spill] sm:$0xff]  ;;  %v1145_v18 = vadd.f32 %v1137_v4, %v1115_v41  ;;  %7482 = vst [vmem:[#allocation38_spill] sm:$0xff] %v5699_v21  ;;  %v7484_v50 = vld [vmem:[#allocation106_spill] sm:$0xff]  ;;  %v7485_v53 = vld [vmem:[#allocation109_spill] sm:$0xff] }
 0x1a8   : > { %v1621_v24 = vadd.f32 %v7480_v40, %v1591_v45  ;;  %v5693_v57 = vld [vmem:[#allocation2 + $0x83] sm:$0xff]  ;;  %v5703_v26 = vmul.f32 %v5699_v21, %v5678_v2  ;;  %v1174_v62 = vadd.f32 %v7484_v50, %v1144_v15  ;;  %v7488_v7 = vld [vmem:[#allocation137_spill] sm:$0xff]  ;;  %v7489_v41 = vld [vmem:[#allocation22_spill] sm:$0xff] }
 0x1a9   : > { %7481 = vst [vmem:[#allocation54_spill] sm:$0xff] %v5693_v57  ;;  %v5697_v46 = vmul.f32 %v5693_v57, %v5678_v2  ;;  %v1263_v35 = vadd.f32 %v7485_v53, %v1233_v9  ;;  %v7486_v28 = vld [vmem:[#allocation84_spill] sm:$0xff]  ;;  %v1175_v0 = vadd.f32 %v7488_v7, %v1145_v18  ;;  %v3204_v45 = vld [vmem:[#allocation7 + $0x17] ss:$0 sm:$0xff]  ;;  %v2175_v33 = vadd.f32 %v7489_v41, %v2154_v58  ;;  %v7495_v7 = vld [vmem:[#allocation190_spill] sm:$0xff] }
 0x1aa   : > { %7483 = vst [vmem:[#allocation98_spill] sm:$0xff] %v5703_v26  ;;  %v1651_v36 = vadd.f32 %v7486_v28, %v1621_v24  ;;  %v7487_v43 = vld [vmem:[#allocation148_spill] sm:$0xff]  ;;  %v1315_v44 = vmul.f32 %v3204_v45, %v5585_v49  ;;  %v7490_v6 = vld [vmem:[#allocation107_spill] sm:$0xff]  ;;  %v5715_v50 = vadd.f32 %v2228_v51, %v2215_v56  ;;  %v7493_v24 = vld [vmem:[#allocation138_spill] sm:$0xff]  ;;  %v1316_v18 = vmul.f32 %v3204_v45, %v5661_v14 }
 0x1ab   : > { %v2216_v4 = vadd.f32 %v7487_v43, %v2195_v37  ;;  %v1204_v40 = vadd.f32 %v7490_v6, %v1174_v62  ;;  %v7491_v57 = vld [vmem:[#allocation111_spill] sm:$0xff]  ;;  %v1205_v37 = vadd.f32 %v7493_v24, %v1175_v0  ;;  %v7494_v53 = vld [vmem:[#allocation108_spill] sm:$0xff]  ;;  %v1317_v43 = vmul.f32 %v3204_v45, %v5564_v60 }
 0x1ac   : > { %v1293_v21 = vadd.f32 %v7491_v57, %v1263_v35  ;;  %v3205_v26 = vld [vmem:[#allocation7 + $0x18] ss:$0 sm:$0xff]  ;;  %7492 = vst [vmem:[#allocation220_spill] sm:$0xff] %v5715_v50  ;;  %v1681_v9 = vadd.f32 %v7391_v13, %v1651_v36  ;;  %v7498_v13 = vld [vmem:[#allocation184_spill] sm:$0xff] }
 0x1ad   : > { %v1336_v15 = vmul.f32 %v3205_v26, %v5597_v59  ;;  %v1234_v28 = vadd.f32 %v7494_v53, %v1204_v40  ;;  %v1337_v62 = vmul.f32 %v3205_v26, %v5226_v48  ;;  %v5724_v35 = vadd.f32 %v2229_v19, %v2216_v4  ;;  %v7497_v41 = vld [vmem:[#allocation139_spill] sm:$0xff]  ;;  %v7499_v0 = vld [vmem:[#allocation140_spill] sm:$0xff] }
 0x1ae   : > { %v1323_v58 = vadd.f32 %v1315_v44, %v1293_v21  ;;  %v1711_v57 = vadd.f32 %v7495_v7, %v1681_v9  ;;  %v1235_v51 = vadd.f32 %v7497_v41, %v1205_v37  ;;  %v1338_v56 = vmul.f32 %v3205_v26, %v5508_v47  ;;  %v3206_v50 = vld [vmem:[#allocation7 + $0x1e] ss:$0 sm:$0xff]  ;;  %v7500_v45 = vld [vmem:[#allocation191_spill] sm:$0xff]  ;;  %v7501_v44 = vld [vmem:[#allocation161_spill] sm:$0xff] }
 0x1af   : > { %7496 = vst [vmem:[#allocation229_spill] sm:$0xff] %v5724_v35  ;;  %v2196_v36 = vadd.f32 %v7498_v13, %v2175_v33  ;;  %v1264_v6 = vadd.f32 %v7499_v0, %v1234_v28  ;;  %v1516_v40 = vmul.f32 %v3206_v50, %v5661_v14  ;;  %v5734_v9 = vmul.f32 %v3206_v50, %v5564_v60  ;;  %v3207_v19 = vld [vmem:[#allocation7 + $0x1f] ss:$0 sm:$0xff]  ;;  %v7502_v37 = vld [vmem:[#allocation141_spill] sm:$0xff]  ;;  %v7505_v41 = vld [vmem:[#allocation162_spill] sm:$0xff] }
 0x1b0   : > { %v1344_v24 = vadd.f32 %v1336_v15, %v1323_v58  ;;  %v1741_v21 = vadd.f32 %v7500_v45, %v1711_v57  ;;  %v1265_v53 = vadd.f32 %v7501_v44, %v1235_v51  ;;  %v1546_v4 = vmul.f32 %v3207_v19, %v5226_v48  ;;  %v7503_v7 = vld [vmem:[#allocation112_spill] sm:$0xff]  ;;  %v7504_v58 = vld [vmem:[#allocation133_spill] sm:$0xff]  ;;  %v7508_v35 = vld [vmem:[#allocation114_spill] sm:$0xff] }
 0x1b1   : > { %v1294_v26 = vadd.f32 %v7502_v37, %v1264_v6  ;;  %v5740_v28 = vmul.f32 %v3207_v19, %v5508_v47  ;;  %v5743_v15 = vmul.f32 %v3207_v19, %v5682_v11  ;;  %v5749_v50 = vmul.f32 %v5608_v61, %v5410_v16  ;;  %v3208_v13 = vld [vmem:[#allocation7 + $0x24] ss:$0 sm:$0xff]  ;;  %v7507_v37 = vld [vmem:[#allocation76_spill] sm:$0xff] }
 0x1b2   : > { %v1374_v33 = vadd.f32 %v7503_v7, %v1344_v24  ;;  %v1771_v57 = vadd.f32 %v7504_v58, %v1741_v21  ;;  %v1295_v51 = vadd.f32 %v7505_v41, %v1265_v53  ;;  %v5752_v0 = vmul.f32 %v3208_v13, %v5548_v34  ;;  %v7506_v45 = vld [vmem:[#allocation113_spill] sm:$0xff] }
 0x1b3   : > { %v2217_v6 = vadd.f32 %v5620_v8, %v2196_v36  ;;  %v1324_v24 = vadd.f32 %v1316_v18, %v1294_v26  ;;  %v5757_v19 = vmul.f32 %v3208_v13, %v5641_v12  ;;  %v3209_v53 = vld [vmem:[#allocation7 + $0x25] ss:$0 sm:$0xff]  ;;  %v5769_v8 = vmul.f32 %v5508_v47, %v5104_v31 }
 0x1b4   : > { %v1404_v44 = vadd.f32 %v7506_v45, %v1374_v33  ;;  %v1801_v21 = vadd.f32 %v7507_v37, %v1771_v57  ;;  %v1325_v7 = vadd.f32 %v1317_v43, %v1295_v51  ;;  %v5761_v58 = vmul.f32 %v3209_v53, %v5564_v60  ;;  %v7509_v36 = vld [vmem:[#allocation21_spill] sm:$0xff]  ;;  %v5780_v57 = vld [vmem:[#allocation2 + $0x64] sm:$0xff]  ;;  %v7512_v51 = vld [vmem:[#allocation142_spill] sm:$0xff] }
 0x1b5   : > { %v5764_v16 = vmul.f32 %v3209_v53, %v5674_v32  ;;  %v1345_v41 = vadd.f32 %v1337_v62, %v1324_v24  ;;  %v5773_v18 = vmul.f32 %v5682_v11, %v5104_v31  ;;  %v5778_v33 = vmul.f32 %v5608_v61, %v5093_v38  ;;  %7510 = vst [vmem:[#allocation75_spill] sm:$0xff] %v5780_v57  ;;  %v7513_v31 = vld [vmem:[#allocation146_spill] sm:$0xff]  ;;  %v7514_v45 = vld [vmem:[#allocation87_spill] sm:$0xff] }
 0x1b6   : > { %v1434_v55 = vadd.f32 %v7508_v35, %v1404_v44  ;;  %v1831_v43 = vadd.f32 %v7509_v36, %v1801_v21  ;;  %v1346_v26 = vadd.f32 %v1338_v56, %v1325_v7  ;;  %v5784_v62 = vmul.f32 %v5780_v57, %v5093_v38  ;;  %v7515_v37 = vld [vmem:[#allocation163_spill] sm:$0xff]  ;;  %v5809_v36 = vld [vmem:[#allocation2 + $0x71] sm:$0xff] }
 0x1b7   : > { %v5787_v35 = vadd.f32 %v5697_v46, %v2217_v6  ;;  %v1375_v13 = vadd.f32 %v7512_v51, %v1345_v41  ;;  %v5793_v56 = vmul.f32 %v5626_v30, %v5106_v22  ;;  %v5797_v7 = vld [vmem:[#allocation2 + $0x65] sm:$0xff]  ;;  %v5805_v46 = vmul.f32 %v5641_v12, %v5143_v10  ;;  %7518 = vst [vmem:[#allocation182_spill] sm:$0xff] %v5809_v36 }
 0x1b8   : > { %v1464_v24 = vadd.f32 %v7513_v31, %v1434_v55  ;;  %v1861_v44 = vadd.f32 %v7514_v45, %v1831_v43  ;;  %v1376_v21 = vadd.f32 %v7515_v37, %v1346_v26  ;;  %v5801_v38 = vmul.f32 %v5797_v7, %v5106_v22  ;;  %v7516_v6 = vld [vmem:[#allocation144_spill] sm:$0xff]  ;;  %v7517_v53 = vld [vmem:[#allocation147_spill] sm:$0xff]  ;;  %v5821_v45 = vld [vmem:[#allocation2 + $0x72] sm:$0xff] }
 0x1b9   : > { %7511 = vst [vmem:[#allocation172_spill] sm:$0xff] %v5787_v35  ;;  %v1405_v55 = vadd.f32 %v7516_v6, %v1375_v13  ;;  %v5813_v43 = vmul.f32 %v5809_v36, %v5143_v10  ;;  %v5817_v26 = vmul.f32 %v5674_v32, %v5157_v27  ;;  %v7521_v51 = vld [vmem:[#allocation164_spill] sm:$0xff]  ;;  %7522 = vst [vmem:[#allocation228_spill] sm:$0xff] %v5821_v45  ;;  %v7525_v10 = vld [vmem:[#allocation145_spill] sm:$0xff] }
 0x1ba   : > { %v1494_v41 = vadd.f32 %v7517_v53, %v1464_v24  ;;  %v1891_v22 = vadd.f32 %v7395_v42, %v1861_v44  ;;  %v1406_v31 = vadd.f32 %v7521_v51, %v1376_v21  ;;  %v5825_v13 = vmul.f32 %v5821_v45, %v5157_v27  ;;  %v7528_v44 = vld [vmem:[#allocation183_spill] sm:$0xff]  ;;  %v7529_v51 = vld [vmem:[#allocation165_spill] sm:$0xff] }
 0x1bb   : > { %7519 = vst [vmem:[#allocation81_spill] sm:$0xff] %v5813_v43  ;;  %7520 = vst [vmem:[#allocation219_spill] sm:$0xff] %v5817_v26  ;;  %v5829_v24 = vmul.f32 %v5682_v11, %v5173_v17  ;;  %v1435_v37 = vadd.f32 %v7525_v10, %v1405_v55  ;;  %v5834_v53 = vmul.f32 %v5688_v3, %v5173_v17  ;;  %v5842_v35 = vld [vmem:[#allocation2 + $0x74] sm:$0xff]  ;;  %v5960_v36 = vld [vmem:[#allocation2 + $0x44] sm:$0xff] }
 0x1bc   : > { %7523 = vst [vmem:[#allocation187_spill] sm:$0xff] %v5825_v13  ;;  %v1524_v6 = vadd.f32 %v1516_v40, %v1494_v41  ;;  %v5838_v42 = vmul.f32 %v5780_v57, %v5183_v1  ;;  %v1921_v21 = vadd.f32 %v7528_v44, %v1891_v22  ;;  %v1436_v27 = vadd.f32 %v7529_v51, %v1406_v31  ;;  %v7533_v17 = vld [vmem:[#allocation166_spill] sm:$0xff]  ;;  %v7537_v44 = vld [vmem:[#allocation232_spill] sm:$0xff]  ;;  %v7564_v3 = vld [vmem:[#allocation117_spill] sm:$0xff] }
 0x1bd   : > { %7524 = vst [vmem:[#allocation89_spill] sm:$0xff] %v5829_v24  ;;  %7526 = vst [vmem:[#allocation130_spill] sm:$0xff] %v5834_v53  ;;  %v5846_v45 = vmul.f32 %v5842_v35, %v5183_v1  ;;  %v5850_v40 = vmul.f32 %v5797_v7, %v5194_v20  ;;  %v1465_v55 = vadd.f32 %v7533_v17, %v1435_v37  ;;  %v5853_v10 = vld [vmem:[#allocation2 + $0x75] sm:$0xff]  ;;  %v7538_v51 = vld [vmem:[#allocation196_spill] sm:$0xff] }
 0x1be   : > { %7527 = vst [vmem:[#allocation180_spill] sm:$0xff] %v5838_v42  ;;  %7530 = vst [vmem:[#allocation230_spill] sm:$0xff] %v5842_v35  ;;  %v1554_v41 = vadd.f32 %v1546_v4, %v1524_v6  ;;  %v5857_v22 = vmul.f32 %v5853_v10, %v5194_v20  ;;  %v5861_v31 = vmul.f32 %v5562_v5, %v5502_v39  ;;  %v5873_v37 = vld [vmem:[#allocation9 + $0x8] ss:$0 sm:$0xff]  ;;  %v7542_v20 = vld [vmem:[#allocation167_spill] sm:$0xff] }
 0x1bf   : > { %7531 = vst [vmem:[#allocation233_spill] sm:$0xff] %v5846_v45  ;;  %7532 = vst [vmem:[#allocation221_spill] sm:$0xff] %v5850_v40  ;;  %v1951_v1 = vadd.f32 %v7537_v44, %v1921_v21  ;;  %v1466_v35 = vadd.f32 %v7538_v51, %v1436_v27  ;;  %v5867_v45 = vmul.f32 %v7416_v25, %v5515_v23  ;;  %v7543_v17 = vld [vmem:[#allocation149_spill] sm:$0xff]  ;;  %v7546_v44 = vld [vmem:[#allocation178_spill] sm:$0xff] }
 0x1c0   : > { %7534 = vst [vmem:[#allocation194_spill] sm:$0xff] %v5853_v10  ;;  %7535 = vst [vmem:[#allocation90_spill] sm:$0xff] %v5857_v22  ;;  %v5871_v4 = vmul.f32 %v5606_v29, %v5524_v63  ;;  %v1495_v6 = vadd.f32 %v7542_v20, %v1465_v55  ;;  %v1584_v22 = vadd.f32 %v7543_v17, %v1554_v41  ;;  %v5885_v25 = vld [vmem:[#allocation9 + $0xb] ss:$0 sm:$0xff]  ;;  %v5887_v27 = vld [vmem:[#allocation9 + $0xc] ss:$0 sm:$0xff] }
 0x1c1   : > { %7536 = vst [vmem:[#allocation37_spill] sm:$0xff] %v5861_v31  ;;  %7539 = vst [vmem:[#allocation85_spill] sm:$0xff] %v5867_v45  ;;  %v5879_v5 = vmul.f32 %v7442_v54, %v5502_v39  ;;  %v5883_v21 = vmul.f32 %v5585_v49, %v7442_v54  ;;  %v5889_v29 = vld [vmem:[#allocation9 + $0xf] ss:$0 sm:$0xff]  ;;  %v1981_v51 = vadd.f32 %v7546_v44, %v1951_v1  ;;  %v5901_v54 = vld [vmem:[#allocation9 + $0xd] ss:$0 sm:$0xff] }
 0x1c2   : > { %7540 = vst [vmem:[#allocation199_spill] sm:$0xff] %v5871_v4  ;;  %7541 = vst [vmem:[#allocation129_spill] sm:$0xff] %v5873_v37  ;;  %v7547_v4 = vld [vmem:[#allocation197_spill] sm:$0xff]  ;;  %v5895_v41 = vmul.f32 %v5678_v2, %v5515_v23  ;;  %v5899_v20 = vmul.f32 %v5597_v59, %v5678_v2  ;;  %v1525_v17 = vadd.f32 %v5734_v9, %v1495_v6  ;;  %v7553_v44 = vld [vmem:[#allocation127_spill] sm:$0xff] }
 0x1c3   : > { %7544 = vst [vmem:[#allocation23_spill] sm:$0xff] %v5879_v5  ;;  %7545 = vst [vmem:[#allocation208_spill] sm:$0xff] %v5883_v21  ;;  %v1496_v55 = vadd.f32 %v7547_v4, %v1466_v35  ;;  %v7550_v21 = vld [vmem:[#allocation150_spill] sm:$0xff]  ;;  %v5907_v45 = vmul.f32 %v5873_v37, %v5524_v63  ;;  %v5915_v4 = vld [vmem:[#allocation9 + $0x10] ss:$0 sm:$0xff]  ;;  %v5921_v9 = vmul.f32 %v5585_v49, %v5885_v25 }
 0x1c4   : > { %7548 = vst [vmem:[#allocation216_spill] sm:$0xff] %v5895_v41  ;;  %7549 = vst [vmem:[#allocation24_spill] sm:$0xff] %v5899_v20  ;;  %v1614_v5 = vadd.f32 %v7550_v21, %v1584_v22  ;;  %v5909_v1 = vld [vmem:[#allocation2 + $0x34] sm:$0xff]  ;;  %v2011_v20 = vadd.f32 %v7553_v44, %v1981_v51  ;;  %v5925_v22 = vmul.f32 %v5597_v59, %v5887_v27  ;;  %v7573_v40 = vld [vmem:[#allocation200_spill] sm:$0xff] }
 0x1c5   : > { %7551 = vst [vmem:[#allocation92_spill] sm:$0xff] %v5907_v45  ;;  %v5913_v35 = vmul.f32 %v5909_v1, %v5873_v37  ;;  %v7554_v41 = vld [vmem:[#allocation198_spill] sm:$0xff]  ;;  %7555 = vst [vmem:[#allocation25_spill] sm:$0xff] %v5921_v9  ;;  %v7559_v45 = vld [vmem:[#allocation151_spill] sm:$0xff]  ;;  %v5935_v51 = vmul.f32 %v5909_v1, %v5901_v54 }
 0x1c6   : > { %v1526_v31 = vadd.f32 %v7554_v41, %v1496_v55  ;;  %7556 = vst [vmem:[#allocation26_spill] sm:$0xff] %v5925_v22  ;;  %v5927_v6 = vld [vmem:[#allocation9 + $0x12] ss:$0 sm:$0xff]  ;;  %v5929_v21 = vld [vmem:[#allocation9 + $0x13] ss:$0 sm:$0xff]  ;;  %v1644_v10 = vadd.f32 %v7559_v45, %v1614_v5  ;;  %v3217_v55 = vld [vmem:[#allocation2 + $0x41] sm:$0xff]  ;;  %v2041_v53 = vadd.f32 %v7564_v3, %v2011_v20  ;;  %v5950_v45 = vmul.f32 %v5661_v14, %v5915_v4 }
 0x1c7   : > { %7552 = vst [vmem:[#allocation28_spill] sm:$0xff] %v5913_v35  ;;  %7557 = vst [vmem:[#allocation30_spill] sm:$0xff] %v5927_v6  ;;  %v1555_v35 = vadd.f32 %v5740_v28, %v1525_v17  ;;  %v5938_v41 = vmul.f32 %v3217_v55, %v5889_v29  ;;  %v5940_v44 = vld [vmem:[#allocation9 + $0x11] ss:$0 sm:$0xff]  ;;  %v5942_v9 = vld [vmem:[#allocation9 + $0x14] ss:$0 sm:$0xff]  ;;  %v5964_v3 = vmul.f32 %v5960_v36, %v5927_v6 }
 0x1c8   : > { %7558 = vst [vmem:[#allocation27_spill] sm:$0xff] %v5929_v21  ;;  %7560 = vst [vmem:[#allocation34_spill] sm:$0xff] %v5935_v51  ;;  %v5944_v22 = vld [vmem:[#allocation9 + $0x15] ss:$0 sm:$0xff]  ;;  %v1556_v28 = vadd.f32 %v5743_v15, %v1526_v31  ;;  %v5954_v5 = vmul.f32 %v5226_v48, %v5940_v44  ;;  %v5956_v17 = vld [vmem:[#allocation9 + $0x17] ss:$0 sm:$0xff] }
 0x1c9   : > { %7561 = vst [vmem:[#allocation77_spill] sm:$0xff] %v5938_v41  ;;  %7562 = vst [vmem:[#allocation128_spill] sm:$0xff] %v5942_v9  ;;  %v1585_v55 = vadd.f32 %v5749_v50, %v1555_v35  ;;  %v7568_v41 = vld [vmem:[#allocation170_spill] sm:$0xff]  ;;  %v3219_v15 = vld [vmem:[#allocation2 + $0x45] sm:$0xff]  ;;  %v5975_v50 = vmul.f32 %v5548_v34, %v5942_v9 }
 0x1ca   : > { %7563 = vst [vmem:[#allocation29_spill] sm:$0xff] %v5944_v22  ;;  %7565 = vst [vmem:[#allocation40_spill] sm:$0xff] %v5950_v45  ;;  %v1674_v51 = vadd.f32 %v7568_v41, %v1644_v10  ;;  %v5967_v31 = vmul.f32 %v3219_v15, %v5929_v21  ;;  %v5969_v20 = vld [vmem:[#allocation9 + $0x18] ss:$0 sm:$0xff]  ;;  %v7572_v45 = vld [vmem:[#allocation209_spill] sm:$0xff]  ;;  %v1586_v13 = vadd.f32 %v7573_v40, %v1556_v28 }
 0x1cb   : > { %7566 = vst [vmem:[#allocation217_spill] sm:$0xff] %v5954_v5  ;;  %7567 = vst [vmem:[#allocation193_spill] sm:$0xff] %v5956_v17  ;;  %v2071_v5 = vadd.f32 %v7572_v45, %v2041_v53  ;;  %v5979_v10 = vmul.f32 %v5564_v60, %v5944_v22  ;;  %v5981_v35 = vld [vmem:[#allocation9 + $0x16] ss:$0 sm:$0xff]  ;;  %v5983_v41 = vld [vmem:[#allocation10 + $0x1] ss:$0 sm:$0xff]  ;;  %v5993_v40 = vmul.f32 %v5608_v61, %v5956_v17 }
 0x1cc   : > { %7569 = vst [vmem:[#allocation86_spill] sm:$0xff] %v5964_v3  ;;  %7570 = vst [vmem:[#allocation32_spill] sm:$0xff] %v5967_v31  ;;  %v7577_v3 = vld [vmem:[#allocation168_spill] sm:$0xff]  ;;  %v1704_v52 = vadd.f32 %v5752_v0, %v1674_v51  ;;  %v5989_v53 = vmul.f32 %v5508_v47, %v5981_v35  ;;  %v5995_v28 = vld [vmem:[#allocation10] ss:$0 sm:$0xff]  ;;  %v6005_v0 = vmul.f32 %v5626_v30, %v5969_v20 }
 0x1cd   : > { %7571 = vst [vmem:[#allocation31_spill] sm:$0xff] %v5969_v20  ;;  %7574 = vst [vmem:[#allocation41_spill] sm:$0xff] %v5975_v50  ;;  %v1615_v31 = vadd.f32 %v7577_v3, %v1585_v55  ;;  %v5997_v45 = vld [vmem:[#allocation10 + $0x3] ss:$0 sm:$0xff]  ;;  %v7581_v43 = vld [vmem:[#allocation201_spill] sm:$0xff]  ;;  %v6009_v51 = vmul.f32 %v5995_v28, %v5502_v39 }
 0x1ce   : > { %7575 = vst [vmem:[#allocation134_spill] sm:$0xff] %v5979_v10  ;;  %7576 = vst [vmem:[#allocation100_spill] sm:$0xff] %v5981_v35  ;;  %v5999_v10 = vld [vmem:[#allocation10 + $0x4] ss:$0 sm:$0xff]  ;;  %v1616_v55 = vadd.f32 %v7581_v43, %v1586_v13  ;;  %v6011_v3 = vld [vmem:[#allocation10 + $0x2] ss:$0 sm:$0xff]  ;;  %v6021_v43 = vmul.f32 %v5983_v41, %v5515_v23  ;;  %v6033_v26 = vmul.f32 %v5585_v49, %v5997_v45 }
 0x1cf   : > { %7578 = vst [vmem:[#allocation33_spill] sm:$0xff] %v5989_v53  ;;  %7579 = vst [vmem:[#allocation115_spill] sm:$0xff] %v5993_v40  ;;  %v7580_v50 = vld [vmem:[#allocation48_spill] sm:$0xff]  ;;  %v7586_v24 = vld [vmem:[#allocation169_spill] sm:$0xff]  ;;  %v6025_v13 = vmul.f32 %v6011_v3, %v5524_v63 }
 0x1d0   : > { %v2092_v42 = vadd.f32 %v7580_v50, %v2071_v5  ;;  %7582 = vst [vmem:[#allocation35_spill] sm:$0xff] %v6005_v0  ;;  %7583 = vst [vmem:[#allocation43_spill] sm:$0xff] %v6009_v51  ;;  %v6013_v40 = vld [vmem:[#allocation10 + $0x5] ss:$0 sm:$0xff]  ;;  %v6015_v53 = vld [vmem:[#allocation10 + $0x6] ss:$0 sm:$0xff]  ;;  %v1645_v37 = vadd.f32 %v7586_v24, %v1615_v31  ;;  %v1734_v5 = vadd.f32 %v5761_v58, %v1704_v52 }
 0x1d1   : > { %7584 = vst [vmem:[#allocation36_spill] sm:$0xff] %v6013_v40  ;;  %7585 = vst [vmem:[#allocation66_spill] sm:$0xff] %v6015_v53  ;;  %v6027_v39 = vld [vmem:[#allocation10 + $0x8] ss:$0 sm:$0xff]  ;;  %v7591_v0 = vld [vmem:[#allocation202_spill] sm:$0xff]  ;;  %v6037_v52 = vmul.f32 %v5597_v59, %v5999_v10  ;;  %v6043_v63 = vmul.f32 %v5909_v1, %v6013_v40 }
 0x1d2   : > { %7587 = vst [vmem:[#allocation78_spill] sm:$0xff] %v6021_v43  ;;  %7588 = vst [vmem:[#allocation55_spill] sm:$0xff] %v6025_v13  ;;  %v7590_v50 = vld [vmem:[#allocation132_spill] sm:$0xff]  ;;  %v1646_v2 = vadd.f32 %v7591_v0, %v1616_v55  ;;  %v7594_v23 = vld [vmem:[#allocation203_spill] sm:$0xff]  ;;  %v1764_v24 = vadd.f32 %v5769_v8, %v1734_v5  ;;  %v6062_v8 = vmul.f32 %v5661_v14, %v5885_v25 }
 0x1d3   : > { %7589 = vst [vmem:[#allocation44_spill] sm:$0xff] %v6027_v39  ;;  %v2113_v51 = vadd.f32 %v7590_v50, %v2092_v42  ;;  %7592 = vst [vmem:[#allocation93_spill] sm:$0xff] %v6033_v26  ;;  %v1675_v58 = vadd.f32 %v7594_v23, %v1645_v37  ;;  %v6047_v42 = vmul.f32 %v5661_v14, %v6015_v53  ;;  %v6049_v31 = vld [vmem:[#allocation10 + $0x7] ss:$0 sm:$0xff]  ;;  %v7598_v55 = vld [vmem:[#allocation179_spill] sm:$0xff] }
 0x1d4   : > { %7593 = vst [vmem:[#allocation105_spill] sm:$0xff] %v6037_v52  ;;  %7595 = vst [vmem:[#allocation181_spill] sm:$0xff] %v6043_v63  ;;  %v6054_v50 = vmul.f32 %v5226_v48, %v6049_v31  ;;  %v6058_v37 = vmul.f32 %v5960_v36, %v6027_v39  ;;  %v1794_v23 = vadd.f32 %v5778_v33, %v1764_v24  ;;  %v7607_v33 = vld [vmem:[#allocation222_spill] sm:$0xff]  ;;  %v7610_v52 = vld [vmem:[#allocation195_spill] sm:$0xff] }
 0x1d5   : > { %7596 = vst [vmem:[#allocation210_spill] sm:$0xff] %v6047_v42  ;;  %7597 = vst [vmem:[#allocation42_spill] sm:$0xff] %v6049_v31  ;;  %v2134_v0 = vadd.f32 %v7598_v55, %v2113_v51  ;;  %v1705_v5 = vadd.f32 %v5757_v19, %v1675_v58  ;;  %v6068_v42 = vmul.f32 %v5226_v48, %v5887_v27  ;;  %v6074_v55 = vld [vmem:[#allocation9 + $0xe] ss:$0 sm:$0xff] }
 0x1d6   : > { %7599 = vst [vmem:[#allocation45_spill] sm:$0xff] %v6054_v50  ;;  %7600 = vst [vmem:[#allocation96_spill] sm:$0xff] %v6058_v37  ;;  %v6072_v51 = vmul.f32 %v5960_v36, %v5901_v54  ;;  %v6077_v37 = vmul.f32 %v6074_v55, %v3219_v15  ;;  %v6081_v50 = vmul.f32 %v5548_v34, %v5889_v29 }
 0x1d7   : > { %7601 = vst [vmem:[#allocation159_spill] sm:$0xff] %v6062_v8  ;;  %7602 = vst [vmem:[#allocation211_spill] sm:$0xff] %v6068_v42  ;;  %v6085_v19 = vmul.f32 %v5564_v60, %v5915_v4  ;;  %v1676_v48 = vadd.f32 %v7607_v33, %v1646_v2  ;;  %v1735_v58 = vadd.f32 %v5764_v16, %v1705_v5  ;;  %v7613_v16 = vld [vmem:[#allocation173_spill] sm:$0xff]  ;;  %v7675_v42 = vld [vmem:[#allocation230_spill] sm:$0xff] }
 0x1d8   : > { %7603 = vst [vmem:[#allocation46_spill] sm:$0xff] %v6072_v51  ;;  %7604 = vst [vmem:[#allocation177_spill] sm:$0xff] %v6077_v37  ;;  %v1824_v24 = vadd.f32 %v5793_v56, %v1794_v23  ;;  %v6092_v63 = vmul.f32 %v5508_v47, %v5940_v44  ;;  %v6096_v15 = vmul.f32 %v5608_v61, %v5927_v6  ;;  %v7614_v23 = vld [vmem:[#allocation171_spill] sm:$0xff] }
 0x1d9   : > { %7605 = vst [vmem:[#allocation185_spill] sm:$0xff] %v6081_v50  ;;  %7606 = vst [vmem:[#allocation160_spill] sm:$0xff] %v6085_v19  ;;  %v2155_v26 = vadd.f32 %v7610_v52, %v2134_v0  ;;  %v6101_v13 = vmul.f32 %v5626_v30, %v5929_v21  ;;  %v6105_v2 = vmul.f32 %v5641_v12, %v5942_v9  ;;  %v7655_v50 = vld [vmem:[#allocation189_spill] sm:$0xff] }
 0x1da   : > { %7608 = vst [vmem:[#allocation50_spill] sm:$0xff] %v6092_v63  ;;  %7609 = vst [vmem:[#allocation91_spill] sm:$0xff] %v6096_v15  ;;  %v1706_v56 = vadd.f32 %v7613_v16, %v1676_v48  ;;  %v1765_v5 = vadd.f32 %v5773_v18, %v1735_v58  ;;  %v1854_v33 = vadd.f32 %v7614_v23, %v1824_v24  ;;  %v7620_v48 = vld [vmem:[#allocation131_spill] sm:$0xff]  ;;  %v7621_v16 = vld [vmem:[#allocation205_spill] sm:$0xff] }
 0x1db   : > { %7611 = vst [vmem:[#allocation39_spill] sm:$0xff] %v6101_v13  ;;  %7612 = vst [vmem:[#allocation99_spill] sm:$0xff] %v6105_v2  ;;  %v6112_v43 = vmul.f32 %v5674_v32, %v5944_v22  ;;  %v6116_v52 = vmul.f32 %v5682_v11, %v5981_v35  ;;  %v6120_v0 = vmul.f32 %v5780_v57, %v5956_v17 }
 0x1dc   : > { %v6124_v2 = vmul.f32 %v5797_v7, %v5969_v20  ;;  %v6128_v18 = vmul.f32 %v5585_v49, %v5995_v28  ;;  %v1736_v58 = vadd.f32 %v7620_v48, %v1706_v56  ;;  %v1795_v24 = vadd.f32 %v5784_v62, %v1765_v5  ;;  %v7627_v56 = vld [vmem:[#allocation214_spill] sm:$0xff] }
 0x1dd   : > { %7615 = vst [vmem:[#allocation116_spill] sm:$0xff] %v6112_v43  ;;  %7616 = vst [vmem:[#allocation52_spill] sm:$0xff] %v6116_v52  ;;  %v1884_v23 = vadd.f32 %v7621_v16, %v1854_v33  ;;  %v6135_v52 = vmul.f32 %v5597_v59, %v5983_v41  ;;  %v7624_v43 = vld [vmem:[#allocation192_spill] sm:$0xff]  ;;  %v6144_v49 = vmul.f32 %v5661_v14, %v5997_v45 }
 0x1de   : > { %7617 = vst [vmem:[#allocation71_spill] sm:$0xff] %v6120_v0  ;;  %7618 = vst [vmem:[#allocation97_spill] sm:$0xff] %v6124_v2  ;;  %v6139_v0 = vmul.f32 %v5909_v1, %v6011_v3  ;;  %v2176_v2 = vadd.f32 %v7624_v43, %v2155_v26  ;;  %v1766_v5 = vadd.f32 %v7627_v56, %v1736_v58  ;;  %v7632_v58 = vld [vmem:[#allocation218_spill] sm:$0xff]  ;;  %v7633_v16 = vld [vmem:[#allocation204_spill] sm:$0xff] }
 0x1df   : > { %7619 = vst [vmem:[#allocation59_spill] sm:$0xff] %v6128_v18  ;;  %7622 = vst [vmem:[#allocation49_spill] sm:$0xff] %v6135_v52  ;;  %v6146_v18 = vld [vmem:[#allocation2 + $0x43] sm:$0xff]  ;;  %v1825_v59 = vadd.f32 %v5801_v38, %v1795_v24  ;;  %v1914_v33 = vadd.f32 %v5805_v46, %v1884_v23  ;;  %v6157_v1 = vmul.f32 %v5960_v36, %v6013_v40  ;;  %v3222_v24 = vld [vmem:[#allocation9 + $0x6] ss:$0 sm:$0xff] }
 0x1e0   : > { %7623 = vst [vmem:[#allocation56_spill] sm:$0xff] %v6139_v0  ;;  %7625 = vst [vmem:[#allocation79_spill] sm:$0xff] %v6144_v49  ;;  %v6150_v62 = vmul.f32 %v6146_v18, %v5999_v10  ;;  %v6161_v26 = vmul.f32 %v5564_v60, %v6015_v53  ;;  %v6165_v43 = vmul.f32 %v5508_v47, %v6049_v31  ;;  %v7634_v56 = vld [vmem:[#allocation219_spill] sm:$0xff]  ;;  %v7637_v49 = vld [vmem:[#allocation129_spill] sm:$0xff] }
 0x1e1   : > { %7628 = vst [vmem:[#allocation101_spill] sm:$0xff] %v6157_v1  ;;  %v6169_v48 = vmul.f32 %v5608_v61, %v6027_v39  ;;  %v1796_v38 = vadd.f32 %v7632_v58, %v1766_v5  ;;  %v6173_v46 = vmul.f32 %v3222_v24, %v5661_v14  ;;  %v1855_v23 = vadd.f32 %v7633_v16, %v1825_v59  ;;  %v7639_v0 = vld [vmem:[#allocation143_spill] sm:$0xff]  ;;  %v7640_v52 = vld [vmem:[#allocation88_spill] sm:$0xff]  ;;  %v6187_v58 = vld [vmem:[#allocation9 + $0xa] ss:$0 sm:$0xff] }
 0x1e2   : > { %7626 = vst [vmem:[#allocation212_spill] sm:$0xff] %v6150_v62  ;;  %7629 = vst [vmem:[#allocation155_spill] sm:$0xff] %v6161_v26  ;;  %v1944_v1 = vadd.f32 %v7634_v56, %v1914_v33  ;;  %v7635_v62 = vld [vmem:[#allocation176_spill] sm:$0xff]  ;;  %v6191_v24 = vmul.f32 %v6187_v58, %v5548_v34  ;;  %v6195_v59 = vmul.f32 %v5564_v60, %v5885_v25  ;;  %v7644_v56 = vld [vmem:[#allocation89_spill] sm:$0xff] }
 0x1e3   : > { %7630 = vst [vmem:[#allocation51_spill] sm:$0xff] %v6165_v43  ;;  %7631 = vst [vmem:[#allocation188_spill] sm:$0xff] %v6169_v48  ;;  %v6179_v26 = vmul.f32 %v6146_v18, %v7635_v62  ;;  %v6183_v43 = vmul.f32 %v5960_v36, %v7637_v49  ;;  %v2197_v48 = vadd.f32 %v7639_v0, %v2176_v2  ;;  %v7643_v33 = vld [vmem:[#allocation224_spill] sm:$0xff] }
 0x1e4   : > { %v1826_v5 = vadd.f32 %v7640_v52, %v1796_v38  ;;  %7641 = vst [vmem:[#allocation102_spill] sm:$0xff] %v6191_v24  ;;  %7642 = vst [vmem:[#allocation226_spill] sm:$0xff] %v6195_v59  ;;  %v1885_v16 = vadd.f32 %v7643_v33, %v1855_v23  ;;  %v1974_v13 = vadd.f32 %v7644_v56, %v1944_v1  ;;  %v7647_v52 = vld [vmem:[#allocation223_spill] sm:$0xff]  ;;  %v7650_v23 = vld [vmem:[#allocation81_spill] sm:$0xff] }
 0x1e5   : > { %7636 = vst [vmem:[#allocation122_spill] sm:$0xff] %v6179_v26  ;;  %7638 = vst [vmem:[#allocation80_spill] sm:$0xff] %v6183_v43  ;;  %v6201_v15 = vmul.f32 %v5508_v47, %v5887_v27  ;;  %v6205_v2 = vmul.f32 %v5608_v61, %v5901_v54  ;;  %v6210_v34 = vmul.f32 %v6074_v55, %v5626_v30  ;;  %v7651_v56 = vld [vmem:[#allocation180_spill] sm:$0xff]  ;;  %v7677_v24 = vld [vmem:[#allocation194_spill] sm:$0xff] }
 0x1e6   : > { %v1856_v0 = vadd.f32 %v7647_v52, %v1826_v5  ;;  %v6214_v38 = vmul.f32 %v5641_v12, %v5889_v29  ;;  %v2227_v1 = vmul.f32 %v5508_v47, %v7635_v62  ;;  %v1915_v33 = vadd.f32 %v7650_v23, %v1885_v16  ;;  %v7654_v52 = vld [vmem:[#allocation175_spill] sm:$0xff] }
 0x1e7   : > { %7645 = vst [vmem:[#allocation103_spill] sm:$0xff] %v6201_v15  ;;  %7646 = vst [vmem:[#allocation158_spill] sm:$0xff] %v6205_v2  ;;  %v2004_v63 = vadd.f32 %v7651_v56, %v1974_v13  ;;  %v6222_v19 = vmul.f32 %v5674_v32, %v5915_v4  ;;  %v6226_v5 = vmul.f32 %v5682_v11, %v5940_v44  ;;  %v7657_v16 = vld [vmem:[#allocation187_spill] sm:$0xff]  ;;  %v7658_v13 = vld [vmem:[#allocation221_spill] sm:$0xff] }
 0x1e8   : > { %7648 = vst [vmem:[#allocation207_spill] sm:$0xff] %v6210_v34  ;;  %7649 = vst [vmem:[#allocation64_spill] sm:$0xff] %v6214_v38  ;;  %v2218_v34 = vadd.f32 %v7654_v52, %v2197_v48  ;;  %v1886_v2 = vadd.f32 %v7655_v50, %v1856_v0  ;;  %v7656_v38 = vld [vmem:[#allocation213_spill] sm:$0xff]  ;;  %v2248_v62 = vmul.f32 %v5608_v61, %v7637_v49  ;;  %v7661_v48 = vld [vmem:[#allocation215_spill] sm:$0xff] }
 0x1e9   : > { %7652 = vst [vmem:[#allocation135_spill] sm:$0xff] %v6222_v19  ;;  %7653 = vst [vmem:[#allocation47_spill] sm:$0xff] %v6226_v5  ;;  %v2235_v37 = vadd.f32 %v2227_v1, %v7656_v38  ;;  %v1945_v23 = vadd.f32 %v7657_v16, %v1915_v33  ;;  %v2034_v56 = vadd.f32 %v7658_v13, %v2004_v63  ;;  %v7662_v50 = vld [vmem:[#allocation182_spill] sm:$0xff]  ;;  %v6248_v1 = vld [vmem:[#allocation9 + $0x9] ss:$0 sm:$0xff] }
 0x1ea   : > { %v6237_v19 = vmul.f32 %v5780_v57, %v5927_v6  ;;  %v6241_v5 = vmul.f32 %v5797_v7, %v5929_v21  ;;  %v1916_v52 = vadd.f32 %v7661_v48, %v1886_v2  ;;  %v6246_v0 = vmul.f32 %v7662_v50, %v5942_v9  ;;  %v7664_v33 = vld [vmem:[#allocation130_spill] sm:$0xff]  ;;  %v7666_v15 = vld [vmem:[#allocation228_spill] sm:$0xff] }
 0x1eb   : > { %v2256_v38 = vadd.f32 %v2248_v62, %v2235_v37  ;;  %v2269_v63 = vmul.f32 %v6248_v1, %v5626_v30  ;;  %v1975_v16 = vadd.f32 %v7664_v33, %v1945_v23  ;;  %v7665_v13 = vld [vmem:[#allocation206_spill] sm:$0xff]  ;;  %v6256_v51 = vmul.f32 %v7666_v15, %v5944_v22  ;;  %v7672_v37 = vld [vmem:[#allocation53_spill] sm:$0xff]  ;;  %v6340_v26 = vld [vmem:[#allocation2 + $0x84] sm:$0xff] }
 0x1ec   : > { %7659 = vst [vmem:[#allocation104_spill] sm:$0xff] %v6237_v19  ;;  %7660 = vst [vmem:[#allocation20_spill] sm:$0xff] %v6241_v5  ;;  %v2064_v19 = vadd.f32 %v7665_v13, %v2034_v56  ;;  %v7668_v2 = vld [vmem:[#allocation186_spill] sm:$0xff]  ;;  %v1946_v62 = vadd.f32 %v7672_v37, %v1916_v52  ;;  %v2290_v30 = vmul.f32 %v6187_v58, %v5641_v12  ;;  %v7673_v23 = vld [vmem:[#allocation233_spill] sm:$0xff] }
 0x1ed   : > { %7663 = vst [vmem:[#allocation136_spill] sm:$0xff] %v6246_v0  ;;  %7667 = vst [vmem:[#allocation231_spill] sm:$0xff] %v6256_v51  ;;  %v6260_v48 = vmul.f32 %v7668_v2, %v5981_v35  ;;  %v7670_v5 = vld [vmem:[#allocation98_spill] sm:$0xff]  ;;  %v2277_v59 = vadd.f32 %v2269_v63, %v2256_v38  ;;  %v2005_v33 = vadd.f32 %v7673_v23, %v1975_v16  ;;  %v7674_v56 = vld [vmem:[#allocation60_spill] sm:$0xff] }
 0x1ee   : > { %v6263_v0 = vadd.f32 %v7670_v5, %v2218_v34  ;;  %v2085_v13 = vadd.f32 %v7674_v56, %v2064_v19  ;;  %v6272_v51 = vmul.f32 %v7675_v42, %v5956_v17  ;;  %v7679_v34 = vld [vmem:[#allocation156_spill] sm:$0xff]  ;;  %v2311_v52 = vmul.f32 %v5674_v32, %v5885_v25  ;;  %v7680_v38 = vld [vmem:[#allocation90_spill] sm:$0xff] }
 0x1ef   : > { %7669 = vst [vmem:[#allocation110_spill] sm:$0xff] %v6260_v48  ;;  %v6276_v48 = vmul.f32 %v7677_v24, %v5969_v20  ;;  %v1976_v5 = vadd.f32 %v7679_v34, %v1946_v62  ;;  %v2332_v12 = vmul.f32 %v5682_v11, %v5887_v27  ;;  %v2035_v63 = vadd.f32 %v7680_v38, %v2005_v33  ;;  %v7681_v19 = vld [vmem:[#allocation62_spill] sm:$0xff]  ;;  %v7686_v34 = vld [vmem:[#allocation225_spill] sm:$0xff]  ;;  %v7687_v38 = vld [vmem:[#allocation63_spill] sm:$0xff] }
 0x1f0   : > { %7671 = vst [vmem:[#allocation57_spill] sm:$0xff] %v6263_v0  ;;  %7676 = vst [vmem:[#allocation82_spill] sm:$0xff] %v6272_v51  ;;  %v2298_v0 = vadd.f32 %v2290_v30, %v2277_v59  ;;  %v2106_v16 = vadd.f32 %v7681_v19, %v2085_v13  ;;  %v6287_v37 = vmul.f32 %v5661_v14, %v5995_v28  ;;  %v7684_v62 = vld [vmem:[#allocation94_spill] sm:$0xff]  ;;  %v6326_v51 = vld [vmem:[#allocation2 + $0x82] sm:$0xff] }
 0x1f1   : > { %7678 = vst [vmem:[#allocation65_spill] sm:$0xff] %v6276_v48  ;;  %v6291_v23 = vmul.f32 %v6146_v18, %v5983_v41  ;;  %v2006_v59 = vadd.f32 %v7684_v62, %v1976_v5  ;;  %v6296_v30 = vmul.f32 %v5960_v36, %v6011_v3  ;;  %v2353_v33 = vmul.f32 %v5780_v57, %v5901_v54 }
 0x1f2   : > { %7682 = vst [vmem:[#allocation227_spill] sm:$0xff] %v6287_v37  ;;  %v2319_v56 = vadd.f32 %v2311_v52, %v2298_v0  ;;  %v2065_v13 = vadd.f32 %v7686_v34, %v2035_v63  ;;  %v2127_v19 = vadd.f32 %v7687_v38, %v2106_v16  ;;  %v2374_v14 = vmul.f32 %v6074_v55, %v5797_v7  ;;  %v7689_v52 = vld [vmem:[#allocation61_spill] sm:$0xff]  ;;  %v7690_v63 = vld [vmem:[#allocation67_spill] sm:$0xff]  ;;  %v7691_v37 = vld [vmem:[#allocation174_spill] sm:$0xff] }
 0x1f3   : > { %7683 = vst [vmem:[#allocation58_spill] sm:$0xff] %v6291_v23  ;;  %7685 = vst [vmem:[#allocation83_spill] sm:$0xff] %v6296_v30  ;;  %v2395_v18 = vmul.f32 %v7662_v50, %v5889_v29  ;;  %v7688_v23 = vld [vmem:[#allocation95_spill] sm:$0xff]  ;;  %v2416_v36 = vmul.f32 %v7666_v15, %v5915_v4  ;;  %v2437_v0 = vmul.f32 %v7668_v2, %v5940_v44 }
 0x1f4   : > { %v2036_v5 = vadd.f32 %v7688_v23, %v2006_v59  ;;  %v2340_v62 = vadd.f32 %v2332_v12, %v2319_v56  ;;  %v2086_v30 = vadd.f32 %v7689_v52, %v2065_v13  ;;  %v2148_v34 = vadd.f32 %v7690_v63, %v2127_v19  ;;  %v6318_v12 = vld [vmem:[#allocation2 + $0x81] sm:$0xff]  ;;  %v7692_v13 = vld [vmem:[#allocation37_spill] sm:$0xff]  ;;  %v7693_v19 = vld [vmem:[#allocation68_spill] sm:$0xff] }
 0x1f5   : > { %v2458_v16 = vmul.f32 %v7675_v42, %v5927_v6  ;;  %v2479_v38 = vmul.f32 %v7677_v24, %v5929_v21  ;;  %v2500_v59 = vmul.f32 %v6318_v12, %v5942_v9  ;;  %v2249_v56 = vmul.f32 %v5780_v57, %v7637_v49  ;;  %v7696_v9 = vld [vmem:[#allocation220_spill] sm:$0xff] }
 0x1f6   : > { %v2066_v48 = vadd.f32 %v7691_v37, %v2036_v5  ;;  %v2361_v23 = vadd.f32 %v2353_v33, %v2340_v62  ;;  %v2107_v52 = vadd.f32 %v7692_v13, %v2086_v30  ;;  %v2169_v63 = vadd.f32 %v7693_v19, %v2148_v34  ;;  %v7694_v37 = vld [vmem:[#allocation54_spill] sm:$0xff]  ;;  %v7697_v30 = vld [vmem:[#allocation85_spill] sm:$0xff] }
 0x1f7   : > { %v2521_v8 = vmul.f32 %v6326_v51, %v5944_v22  ;;  %v6332_v33 = vmul.f32 %v7694_v37, %v5981_v35  ;;  %v7695_v5 = vld [vmem:[#allocation118_spill] sm:$0xff]  ;;  %v2257_v21 = vadd.f32 %v2249_v56, %v7696_v9  ;;  %v2270_v49 = vmul.f32 %v6248_v1, %v5797_v7  ;;  %v6346_v35 = vld [vmem:[#allocation2 + $0x85] sm:$0xff] }
 0x1f8   : > { %v2087_v62 = vadd.f32 %v7695_v5, %v2066_v48  ;;  %v2382_v43 = vadd.f32 %v2374_v14, %v2361_v23  ;;  %v2128_v13 = vadd.f32 %v7697_v30, %v2107_v52  ;;  %v7698_v34 = vld [vmem:[#allocation70_spill] sm:$0xff]  ;;  %v6344_v22 = vmul.f32 %v6340_v26, %v5956_v17  ;;  %v7701_v9 = vld [vmem:[#allocation119_spill] sm:$0xff] }
 0x1f9   : > { %v2190_v19 = vadd.f32 %v7698_v34, %v2169_v63  ;;  %v6350_v48 = vmul.f32 %v6346_v35, %v5969_v20  ;;  %v2278_v7 = vadd.f32 %v2270_v49, %v2257_v21  ;;  %v2291_v56 = vmul.f32 %v6187_v58, %v7662_v50  ;;  %v7702_v52 = vld [vmem:[#allocation199_spill] sm:$0xff]  ;;  %v7704_v20 = vld [vmem:[#allocation74_spill] sm:$0xff]  ;;  %v7705_v49 = vld [vmem:[#allocation69_spill] sm:$0xff] }
 0x1fa   : > { %7699 = vst [vmem:[#allocation106_spill] sm:$0xff] %v6344_v22  ;;  %v2108_v14 = vadd.f32 %v7701_v9, %v2087_v62  ;;  %v2403_v23 = vadd.f32 %v2395_v18, %v2382_v43  ;;  %v2149_v63 = vadd.f32 %v7702_v52, %v2128_v13  ;;  %v7703_v5 = vld [vmem:[#allocation23_spill] sm:$0xff]  ;;  %v6359_v34 = vmul.f32 %v5564_v60, %v5995_v28  ;;  %v7706_v50 = vld [vmem:[#allocation216_spill] sm:$0xff] }
 0x1fb   : > { %7700 = vst [vmem:[#allocation109_spill] sm:$0xff] %v6350_v48  ;;  %v2211_v30 = vadd.f32 %v7703_v5, %v2190_v19  ;;  %v2312_v17 = vmul.f32 %v7666_v15, %v5885_v25  ;;  %v2299_v62 = vadd.f32 %v2291_v56, %v2278_v7  ;;  %v2333_v21 = vmul.f32 %v7668_v2, %v5887_v27  ;;  %v7707_v19 = vld [vmem:[#allocation120_spill] sm:$0xff] }
 0x1fc   : > { %v2129_v48 = vadd.f32 %v7704_v20, %v2108_v14  ;;  %v2424_v22 = vadd.f32 %v2416_v36, %v2403_v23  ;;  %v2170_v43 = vadd.f32 %v7705_v49, %v2149_v63  ;;  %v6370_v13 = vmul.f32 %v5508_v47, %v5983_v41  ;;  %v7708_v23 = vld [vmem:[#allocation123_spill] sm:$0xff]  ;;  %v7709_v56 = vld [vmem:[#allocation92_spill] sm:$0xff]  ;;  %v7710_v63 = vld [vmem:[#allocation121_spill] sm:$0xff] }
 0x1fd   : > { %v2232_v18 = vadd.f32 %v7706_v50, %v2211_v30  ;;  %v6374_v60 = vmul.f32 %v5608_v61, %v6011_v3  ;;  %v6379_v36 = vmul.f32 %v5674_v32, %v5997_v45  ;;  %v2320_v14 = vadd.f32 %v2312_v17, %v2299_v62  ;;  %v7711_v17 = vld [vmem:[#allocation208_spill] sm:$0xff]  ;;  %v7712_v62 = vld [vmem:[#allocation73_spill] sm:$0xff] }
 0x1fe   : > { %v2150_v9 = vadd.f32 %v7707_v19, %v2129_v48  ;;  %v2445_v20 = vadd.f32 %v2437_v0, %v2424_v22  ;;  %v2191_v7 = vadd.f32 %v7708_v23, %v2170_v43  ;;  %v6385_v47 = vmul.f32 %v5682_v11, %v5999_v10  ;;  %v7716_v23 = vld [vmem:[#allocation125_spill] sm:$0xff] }
 0x1ff   : > { %v2253_v52 = vadd.f32 %v7709_v56, %v2232_v18  ;;  %v6389_v61 = vmul.f32 %v5780_v57, %v6013_v40  ;;  %v2341_v0 = vadd.f32 %v2333_v21, %v2320_v14  ;;  %v2354_v5 = vmul.f32 %v7675_v42, %v5901_v54  ;;  %v7714_v18 = vld [vmem:[#allocation152_spill] sm:$0xff] }
 0x200   : > { %v2171_v48 = vadd.f32 %v7710_v63, %v2150_v9  ;;  %v2466_v22 = vadd.f32 %v2458_v16, %v2445_v20  ;;  %v2212_v30 = vadd.f32 %v7711_v17, %v2191_v7  ;;  %v6398_v43 = vmul.f32 %v7666_v15, %v6015_v53  ;;  %v7715_v20 = vld [vmem:[#allocation24_spill] sm:$0xff] }
 0x201   : > { %v2274_v49 = vadd.f32 %v7712_v62, %v2253_v52  ;;  %v6402_v50 = vmul.f32 %v7668_v2, %v6049_v31  ;;  %v2362_v16 = vadd.f32 %v2354_v5, %v2341_v0  ;;  %v2375_v21 = vmul.f32 %v6074_v55, %v7677_v24  ;;  %v7719_v5 = vld [vmem:[#allocation25_spill] sm:$0xff] }
 0x202   : > { %v2192_v19 = vadd.f32 %v7714_v18, %v2171_v48  ;;  %v2487_v9 = vadd.f32 %v2479_v38, %v2466_v22  ;;  %v2233_v14 = vadd.f32 %v7715_v20, %v2212_v30  ;;  %v6411_v56 = vmul.f32 %v7675_v42, %v6027_v39  ;;  %v7718_v22 = vld [vmem:[#allocation28_spill] sm:$0xff]  ;;  %v7720_v18 = vld [vmem:[#allocation122_spill] sm:$0xff] }
 0x203   : > { %7713 = vst [vmem:[#allocation84_spill] sm:$0xff] %v6402_v50  ;;  %v2295_v7 = vadd.f32 %v7716_v23, %v2274_v49  ;;  %v2396_v52 = vmul.f32 %v6318_v12, %v5889_v29  ;;  %v2383_v48 = vadd.f32 %v2375_v21, %v2362_v16  ;;  %v2417_v38 = vmul.f32 %v6326_v51, %v5915_v4  ;;  %v7723_v16 = vld [vmem:[#allocation26_spill] sm:$0xff] }
 0x204   : > { %7717 = vst [vmem:[#allocation148_spill] sm:$0xff] %v6411_v56  ;;  %v2213_v63 = vadd.f32 %v6173_v46, %v2192_v19  ;;  %v2508_v17 = vadd.f32 %v2500_v59, %v2487_v9  ;;  %v2254_v0 = vadd.f32 %v7718_v22, %v2233_v14  ;;  %v2438_v62 = vmul.f32 %v7694_v37, %v5940_v44  ;;  %v7721_v46 = vld [vmem:[#allocation27_spill] sm:$0xff]  ;;  %v7722_v19 = vld [vmem:[#allocation124_spill] sm:$0xff] }
 0x205   : > { %v2316_v30 = vadd.f32 %v7719_v5, %v2295_v7  ;;  %v2459_v49 = vmul.f32 %v6340_v26, %v5927_v6  ;;  %v2404_v39 = vadd.f32 %v2396_v52, %v2383_v48  ;;  %v2480_v59 = vmul.f32 %v6346_v35, %v7721_v46  ;;  %v3229_v14 = vld [vmem:[#allocation2 + $0x91] sm:$0xff]  ;;  %v7728_v48 = vld [vmem:[#allocation34_spill] sm:$0xff] }
 0x206   : > { %v2234_v20 = vadd.f32 %v7720_v18, %v2213_v63  ;;  %v2529_v23 = vadd.f32 %v2521_v8, %v2508_v17  ;;  %v2275_v9 = vadd.f32 %v7722_v19, %v2254_v0  ;;  %v7724_v22 = vld [vmem:[#allocation128_spill] sm:$0xff]  ;;  %v7725_v5 = vld [vmem:[#allocation129_spill] sm:$0xff]  ;;  %v7729_v18 = vld [vmem:[#allocation154_spill] sm:$0xff] }
 0x207   : > { %v2337_v21 = vadd.f32 %v7723_v16, %v2316_v30  ;;  %v2501_v7 = vmul.f32 %v3229_v14, %v7724_v22  ;;  %v2250_v31 = vmul.f32 %v7675_v42, %v7725_v5  ;;  %v7726_v56 = vld [vmem:[#allocation80_spill] sm:$0xff]  ;;  %v2425_v63 = vadd.f32 %v2417_v38, %v2404_v39  ;;  %v6434_v8 = vld [vmem:[#allocation2 + $0x92] sm:$0xff]  ;;  %v7734_v38 = vld [vmem:[#allocation38_spill] sm:$0xff] }
 0x208   : > { %v2255_v53 = vadd.f32 %v7726_v56, %v2234_v20  ;;  %v2550_v50 = vadd.f32 %v6332_v33, %v2529_v23  ;;  %v7727_v52 = vld [vmem:[#allocation29_spill] sm:$0xff]  ;;  %v2296_v30 = vadd.f32 %v7729_v18, %v2275_v9  ;;  %v2271_v22 = vmul.f32 %v6248_v1, %v7677_v24  ;;  %v7732_v56 = vld [vmem:[#allocation106_spill] sm:$0xff]  ;;  %v7733_v39 = vld [vmem:[#allocation100_spill] sm:$0xff] }
 0x209   : > { %v2522_v17 = vmul.f32 %v6434_v8, %v7727_v52  ;;  %v2358_v0 = vadd.f32 %v7728_v48, %v2337_v21  ;;  %v7730_v19 = vld [vmem:[#allocation229_spill] sm:$0xff]  ;;  %v2446_v33 = vadd.f32 %v2438_v62, %v2425_v63  ;;  %v2543_v23 = vmul.f32 %v7734_v38, %v7733_v39  ;;  %v7735_v6 = vld [vmem:[#allocation126_spill] sm:$0xff]  ;;  %v7736_v52 = vld [vmem:[#allocation159_spill] sm:$0xff] }
 0x20a   : > { %v2258_v16 = vadd.f32 %v2250_v31, %v7730_v19  ;;  %v7731_v5 = vld [vmem:[#allocation153_spill] sm:$0xff]  ;;  %v2571_v20 = vadd.f32 %v7732_v56, %v2550_v50  ;;  %v2317_v40 = vadd.f32 %v7736_v52, %v2296_v30  ;;  %v2292_v9 = vmul.f32 %v6318_v12, %v6187_v58  ;;  %v7737_v31 = vld [vmem:[#allocation102_spill] sm:$0xff] }
 0x20b   : > { %v2276_v46 = vadd.f32 %v7731_v5, %v2255_v53  ;;  %v2379_v42 = vadd.f32 %v7735_v6, %v2358_v0  ;;  %v7738_v18 = vld [vmem:[#allocation109_spill] sm:$0xff]  ;;  %v2467_v19 = vadd.f32 %v2459_v49, %v2446_v33  ;;  %v2313_v53 = vmul.f32 %v6326_v51, %v5885_v25  ;;  %v7740_v5 = vld [vmem:[#allocation211_spill] sm:$0xff]  ;;  %v7744_v33 = vld [vmem:[#allocation46_spill] sm:$0xff] }
 0x20c   : > { %v2279_v21 = vadd.f32 %v2271_v22, %v2258_v16  ;;  %v2592_v24 = vadd.f32 %v7738_v18, %v2571_v20  ;;  %v7739_v50 = vld [vmem:[#allocation77_spill] sm:$0xff]  ;;  %v2338_v63 = vadd.f32 %v7740_v5, %v2317_v40  ;;  %v2334_v6 = vmul.f32 %v7694_v37, %v5887_v27  ;;  %v7741_v22 = vld [vmem:[#allocation226_spill] sm:$0xff]  ;;  %v7743_v16 = vld [vmem:[#allocation40_spill] sm:$0xff] }
 0x20d   : > { %v2297_v48 = vadd.f32 %v7737_v31, %v2276_v46  ;;  %v2400_v62 = vadd.f32 %v7739_v50, %v2379_v42  ;;  %v2488_v0 = vadd.f32 %v2480_v59, %v2467_v19  ;;  %v6461_v46 = vld [vmem:[#allocation2 + $0x94] sm:$0xff]  ;;  %v7745_v40 = vld [vmem:[#allocation31_spill] sm:$0xff] }
 0x20e   : > { %v2300_v56 = vadd.f32 %v2292_v9, %v2279_v21  ;;  %v2613_v12 = vadd.f32 %v6359_v34, %v2592_v24  ;;  %v7742_v30 = vld [vmem:[#allocation193_spill] sm:$0xff]  ;;  %v2359_v42 = vadd.f32 %v7744_v33, %v2338_v63  ;;  %v7746_v18 = vld [vmem:[#allocation103_spill] sm:$0xff]  ;;  %v2606_v24 = vmul.f32 %v5674_v32, %v5995_v28 }
 0x20f   : > { %v2318_v52 = vadd.f32 %v7741_v22, %v2297_v48  ;;  %v2564_v49 = vmul.f32 %v6461_v46, %v7742_v30  ;;  %v2421_v20 = vadd.f32 %v7743_v16, %v2400_v62  ;;  %v6467_v31 = vld [vmem:[#allocation2 + $0x95] sm:$0xff]  ;;  %v2509_v59 = vadd.f32 %v2501_v7, %v2488_v0 }
 0x210   : > { %v2585_v21 = vmul.f32 %v6467_v31, %v7745_v40  ;;  %v2321_v9 = vadd.f32 %v2313_v53, %v2300_v56  ;;  %v2634_v34 = vadd.f32 %v6370_v13, %v2613_v12  ;;  %v7747_v19 = vld [vmem:[#allocation217_spill] sm:$0xff]  ;;  %v2355_v63 = vmul.f32 %v6340_v26, %v5901_v54  ;;  %v7749_v16 = vld [vmem:[#allocation158_spill] sm:$0xff] }
 0x211   : > { %v2339_v48 = vadd.f32 %v7746_v18, %v2318_v52  ;;  %v2442_v50 = vadd.f32 %v7747_v19, %v2421_v20  ;;  %v7748_v5 = vld [vmem:[#allocation177_spill] sm:$0xff]  ;;  %v2530_v56 = vadd.f32 %v2522_v17, %v2509_v59  ;;  %v2627_v13 = vmul.f32 %v5682_v11, %v5983_v41  ;;  %v7750_v7 = vld [vmem:[#allocation86_spill] sm:$0xff]  ;;  %v7753_v17 = vld [vmem:[#allocation32_spill] sm:$0xff] }
 0x212   : > { %v2380_v62 = vadd.f32 %v7748_v5, %v2359_v42  ;;  %v2342_v22 = vadd.f32 %v2334_v6, %v2321_v9  ;;  %v2655_v53 = vadd.f32 %v6374_v60, %v2634_v34  ;;  %v7751_v12 = vld [vmem:[#allocation185_spill] sm:$0xff]  ;;  %v2376_v20 = vmul.f32 %v6346_v35, %v6074_v55  ;;  %v7752_v6 = vld [vmem:[#allocation207_spill] sm:$0xff]  ;;  %v7754_v34 = vld [vmem:[#allocation160_spill] sm:$0xff] }
 0x213   : > { %v2360_v33 = vadd.f32 %v7749_v16, %v2339_v48  ;;  %v2463_v52 = vadd.f32 %v7750_v7, %v2442_v50  ;;  %v2551_v18 = vadd.f32 %v2543_v23, %v2530_v56  ;;  %v2648_v60 = vmul.f32 %v5780_v57, %v6011_v3  ;;  %v7755_v50 = vld [vmem:[#allocation64_spill] sm:$0xff]  ;;  %v7757_v16 = vld [vmem:[#allocation50_spill] sm:$0xff]  ;;  %v7758_v7 = vld [vmem:[#allocation135_spill] sm:$0xff] }
 0x214   : > { %v2401_v32 = vadd.f32 %v7751_v12, %v2380_v62  ;;  %v2363_v0 = vadd.f32 %v2355_v63, %v2342_v22  ;;  %v2676_v9 = vadd.f32 %v6379_v36, %v2655_v53  ;;  %v2397_v19 = vmul.f32 %v3229_v14, %v5889_v29  ;;  %v7756_v36 = vld [vmem:[#allocation41_spill] sm:$0xff]  ;;  %v7787_v57 = vld [vmem:[#allocation71_spill] sm:$0xff] }
 0x215   : > { %v2381_v42 = vadd.f32 %v7752_v6, %v2360_v33  ;;  %v2484_v48 = vadd.f32 %v7753_v17, %v2463_v52  ;;  %v2572_v22 = vadd.f32 %v2564_v49, %v2551_v18  ;;  %v2418_v63 = vmul.f32 %v6434_v8, %v5915_v4  ;;  %v7759_v49 = vld [vmem:[#allocation134_spill] sm:$0xff] }
 0x216   : > { %v2422_v11 = vadd.f32 %v7754_v34, %v2401_v32  ;;  %v2384_v59 = vadd.f32 %v2376_v20, %v2363_v0  ;;  %v2697_v62 = vadd.f32 %v6385_v47, %v2676_v9  ;;  %v2439_v56 = vmul.f32 %v7734_v38, %v5940_v44  ;;  %v7760_v0 = vld [vmem:[#allocation91_spill] sm:$0xff]  ;;  %v7762_v34 = vld [vmem:[#allocation36_spill] sm:$0xff] }
 0x217   : > { %v2402_v5 = vadd.f32 %v7755_v50, %v2381_v42  ;;  %v2505_v23 = vadd.f32 %v7756_v36, %v2484_v48  ;;  %v2593_v12 = vadd.f32 %v2585_v21, %v2572_v22  ;;  %v2669_v47 = vmul.f32 %v7666_v15, %v5997_v45  ;;  %v7761_v9 = vld [vmem:[#allocation47_spill] sm:$0xff]  ;;  %v7764_v21 = vld [vmem:[#allocation33_spill] sm:$0xff]  ;;  %v7767_v36 = vld [vmem:[#allocation104_spill] sm:$0xff] }
 0x218   : > { %v2443_v33 = vadd.f32 %v7757_v16, %v2422_v11  ;;  %v2405_v53 = vadd.f32 %v2397_v19, %v2384_v59  ;;  %v2718_v14 = vadd.f32 %v6389_v61, %v2697_v62  ;;  %v2690_v6 = vmul.f32 %v7668_v2, %v5999_v10  ;;  %v7763_v11 = vld [vmem:[#allocation230_spill] sm:$0xff]  ;;  %v7765_v19 = vld [vmem:[#allocation39_spill] sm:$0xff]  ;;  %v7768_v16 = vld [vmem:[#allocation84_spill] sm:$0xff] }
 0x219   : > { %v2423_v52 = vadd.f32 %v7758_v7, %v2402_v5  ;;  %v2526_v32 = vadd.f32 %v7759_v49, %v2505_v23  ;;  %v2614_v48 = vadd.f32 %v2606_v24, %v2593_v12  ;;  %v2711_v61 = vmul.f32 %v7763_v11, %v7762_v34  ;;  %v7766_v62 = vld [vmem:[#allocation30_spill] sm:$0xff]  ;;  %v7770_v24 = vld [vmem:[#allocation115_spill] sm:$0xff] }
 0x21a   : > { %v2464_v20 = vadd.f32 %v7760_v0, %v2443_v33  ;;  %v2426_v42 = vadd.f32 %v2418_v63, %v2405_v53  ;;  %v2739_v17 = vadd.f32 %v6398_v43, %v2718_v14  ;;  %v2460_v22 = vmul.f32 %v6461_v46, %v7766_v62  ;;  %v7769_v53 = vld [vmem:[#allocation66_spill] sm:$0xff]  ;;  %v7772_v49 = vld [vmem:[#allocation27_spill] sm:$0xff] }
 0x21b   : > { %v2444_v18 = vadd.f32 %v7761_v9, %v2423_v52  ;;  %v2547_v59 = vadd.f32 %v7764_v21, %v2526_v32  ;;  %v2635_v33 = vadd.f32 %v2627_v13, %v2614_v48  ;;  %v2732_v43 = vmul.f32 %v6326_v51, %v7769_v53  ;;  %v7771_v52 = vld [vmem:[#allocation99_spill] sm:$0xff]  ;;  %v7773_v32 = vld [vmem:[#allocation20_spill] sm:$0xff] }
 0x21c   : > { %v2485_v50 = vadd.f32 %v7765_v19, %v2464_v20  ;;  %v2447_v5 = vadd.f32 %v2439_v56, %v2426_v42  ;;  %v2760_v63 = vadd.f32 %v7768_v16, %v2739_v17  ;;  %v2481_v56 = vmul.f32 %v6467_v31, %v7772_v49  ;;  %v7774_v20 = vld [vmem:[#allocation148_spill] sm:$0xff]  ;;  %v7776_v17 = vld [vmem:[#allocation35_spill] sm:$0xff] }
 0x21d   : > { %v2465_v23 = vadd.f32 %v7767_v36, %v2444_v18  ;;  %v2568_v7 = vadd.f32 %v7770_v24, %v2547_v59  ;;  %v2656_v9 = vadd.f32 %v2648_v60, %v2635_v33  ;;  %v7775_v18 = vld [vmem:[#allocation42_spill] sm:$0xff]  ;;  %v7777_v21 = vld [vmem:[#allocation116_spill] sm:$0xff]  ;;  %v6538_v24 = vld [vmem:[#allocation2 + $0xa2] sm:$0xff] }
 0x21e   : > { %v2506_v14 = vadd.f32 %v7771_v52, %v2485_v50  ;;  %v2468_v12 = vadd.f32 %v2460_v22, %v2447_v5  ;;  %v2781_v42 = vadd.f32 %v7774_v20, %v2760_v63  ;;  %v2753_v13 = vmul.f32 %v7694_v37, %v7775_v18  ;;  %v6532_v59 = vld [vmem:[#allocation2 + $0xa1] sm:$0xff]  ;;  %v7778_v50 = vld [vmem:[#allocation128_spill] sm:$0xff]  ;;  %v7780_v60 = vld [vmem:[#allocation29_spill] sm:$0xff] }
 0x21f   : > { %v2486_v0 = vadd.f32 %v7773_v32, %v2465_v23  ;;  %v2589_v48 = vadd.f32 %v7776_v17, %v2568_v7  ;;  %v2502_v5 = vmul.f32 %v6532_v59, %v7778_v50  ;;  %v7779_v22 = vld [vmem:[#allocation136_spill] sm:$0xff]  ;;  %v2677_v23 = vadd.f32 %v2669_v47, %v2656_v9  ;;  %v7781_v33 = vld [vmem:[#allocation129_spill] sm:$0xff]  ;;  %v7782_v52 = vld [vmem:[#allocation43_spill] sm:$0xff] }
 0x220   : > { %v2527_v19 = vadd.f32 %v7777_v21, %v2506_v14  ;;  %v2489_v36 = vadd.f32 %v2481_v56, %v2468_v12  ;;  %2789 = vst [vmem:[%s5147_s26 + $0x19] sm:$0xff] %v2781_v42  ;;  %v2523_v63 = vmul.f32 %v6538_v24, %v7780_v60  ;;  %v2251_v7 = vmul.f32 %v6340_v26, %v7781_v33  ;;  %v7783_v12 = vld [vmem:[#allocation52_spill] sm:$0xff]  ;;  %v7784_v42 = vld [vmem:[#allocation231_spill] sm:$0xff]  ;;  %v7786_v60 = vld [vmem:[#allocation78_spill] sm:$0xff] }
 0x221   : > { %v2507_v16 = vadd.f32 %v7779_v22, %v2486_v0  ;;  %v2610_v14 = vadd.f32 %v7782_v52, %v2589_v48  ;;  %v6546_v20 = vld [vmem:[#allocation2 + $0xa3] sm:$0xff]  ;;  %v2698_v9 = vadd.f32 %v2690_v6, %v2677_v23  ;;  %v2272_v22 = vmul.f32 %v6346_v35, %v6248_v1  ;;  %v7791_v35 = vld [vmem:[#allocation97_spill] sm:$0xff] }
 0x222   : > { %v2548_v56 = vadd.f32 %v7783_v12, %v2527_v19  ;;  %v2510_v32 = vadd.f32 %v2502_v5, %v2489_v36  ;;  %v2544_v0 = vmul.f32 %v6546_v20, %v7733_v39  ;;  %v7785_v17 = vld [vmem:[#allocation172_spill] sm:$0xff]  ;;  %v7789_v5 = vld [vmem:[#allocation110_spill] sm:$0xff]  ;;  %v7790_v23 = vld [vmem:[#allocation55_spill] sm:$0xff] }
 0x223   : > { %v2528_v47 = vadd.f32 %v7784_v42, %v2507_v16  ;;  %v2259_v21 = vadd.f32 %v2251_v7, %v7785_v17  ;;  %v2631_v50 = vadd.f32 %v7786_v60, %v2610_v14  ;;  %v7788_v52 = vld [vmem:[#allocation44_spill] sm:$0xff]  ;;  %v2719_v49 = vadd.f32 %v2711_v61, %v2698_v9  ;;  %v7792_v14 = vld [vmem:[#allocation82_spill] sm:$0xff]  ;;  %v7795_v17 = vld [vmem:[#allocation59_spill] sm:$0xff] }
 0x224   : > { %v2569_v48 = vadd.f32 %v7787_v57, %v2548_v56  ;;  %v2774_v19 = vmul.f32 %v6340_v26, %v7788_v52  ;;  %v2531_v36 = vadd.f32 %v2523_v63, %v2510_v32  ;;  %v6559_v39 = vld [vmem:[#allocation2 + $0xa4] sm:$0xff]  ;;  %v2314_v57 = vmul.f32 %v6434_v8, %v5885_v25  ;;  %v7793_v32 = vld [vmem:[#allocation157_spill] sm:$0xff] }
 0x225   : > { %v2549_v12 = vadd.f32 %v7789_v5, %v2528_v47  ;;  %v2565_v6 = vmul.f32 %v6559_v39, %v7742_v30  ;;  %v2280_v16 = vadd.f32 %v2272_v22, %v2259_v21  ;;  %v2652_v7 = vadd.f32 %v7790_v23, %v2631_v50  ;;  %v7794_v47 = vld [vmem:[#allocation93_spill] sm:$0xff]  ;;  %v6573_v50 = vld [vmem:[#allocation2 + $0xa5] sm:$0xff] }
 0x226   : > { %v2590_v1 = vadd.f32 %v7791_v35, %v2569_v48  ;;  %v2552_v60 = vadd.f32 %v2544_v0, %v2531_v36  ;;  %v2740_v63 = vadd.f32 %v2732_v43, %v2719_v49  ;;  %v2335_v61 = vmul.f32 %v7734_v38, %v5887_v27  ;;  %v7796_v48 = vld [vmem:[#allocation65_spill] sm:$0xff]  ;;  %v7799_v35 = vld [vmem:[#allocation227_spill] sm:$0xff] }
 0x227   : > { %v2570_v56 = vadd.f32 %v7792_v14, %v2549_v12  ;;  %v2301_v42 = vadd.f32 %v7793_v32, %v2280_v16  ;;  %v2673_v9 = vadd.f32 %v7794_v47, %v2652_v7  ;;  %v2586_v0 = vmul.f32 %v6573_v50, %v7745_v40  ;;  %v7797_v12 = vld [vmem:[#allocation105_spill] sm:$0xff] }
 0x228   : > { %v2611_v21 = vadd.f32 %v7795_v17, %v2590_v1  ;;  %v2573_v22 = vadd.f32 %v2565_v6, %v2552_v60  ;;  %v2761_v5 = vadd.f32 %v2753_v13, %v2740_v63  ;;  %v2607_v43 = vmul.f32 %v7666_v15, %v5995_v28  ;;  %v7798_v38 = vld [vmem:[#allocation49_spill] sm:$0xff]  ;;  %v7801_v15 = vld [vmem:[#allocation56_spill] sm:$0xff] }
 0x229   : > { %v2591_v36 = vadd.f32 %v7796_v48, %v2570_v56  ;;  %v2322_v49 = vadd.f32 %v2314_v57, %v2301_v42  ;;  %v2694_v16 = vadd.f32 %v7797_v12, %v2673_v9  ;;  %v2628_v6 = vmul.f32 %v7668_v2, %v5983_v41  ;;  %v7800_v56 = vld [vmem:[#allocation181_spill] sm:$0xff]  ;;  %v7802_v9 = vld [vmem:[#allocation58_spill] sm:$0xff]  ;;  %v7804_v48 = vld [vmem:[#allocation79_spill] sm:$0xff] }
 0x22a   : > { %v2632_v23 = vadd.f32 %v7798_v38, %v2611_v21  ;;  %v2594_v7 = vadd.f32 %v2586_v0, %v2573_v22  ;;  %v2782_v60 = vadd.f32 %v2774_v19, %v2761_v5  ;;  %v2356_v13 = vmul.f32 %v6461_v46, %v5901_v54  ;;  %v3238_v32 = vld [vmem:[#allocation2 + $0x52] sm:$0xff]  ;;  %v7805_v12 = vld [vmem:[#allocation83_spill] sm:$0xff] }
 0x22b   : > { %v2612_v1 = vadd.f32 %v7799_v35, %v2591_v36  ;;  %v2343_v14 = vadd.f32 %v2335_v61, %v2322_v49  ;;  %v2715_v63 = vadd.f32 %v7800_v56, %v2694_v16  ;;  %v2667_v42 = vmul.f32 %v3238_v32, %v5997_v45  ;;  %v3239_v21 = vld [vmem:[#allocation2 + $0x53] sm:$0xff] }
 0x22c   : > { %v2653_v57 = vadd.f32 %v7801_v15, %v2632_v23  ;;  %v2615_v47 = vadd.f32 %v2607_v43, %v2594_v7  ;;  %v2688_v2 = vmul.f32 %v3239_v21, %v5999_v10  ;;  %2790 = vst [vmem:[%s5147_s26 + $0x21] sm:$0xff] %v2782_v60  ;;  %v2377_v19 = vmul.f32 %v6467_v31, %v6074_v55  ;;  %v7803_v61 = vld [vmem:[#allocation210_spill] sm:$0xff]  ;;  %v7806_v7 = vld [vmem:[#allocation45_spill] sm:$0xff]  ;;  %v7807_v31 = vld [vmem:[#allocation212_spill] sm:$0xff] }
 0x22d   : > { %v2633_v17 = vadd.f32 %v7802_v9, %v2612_v1  ;;  %v2364_v22 = vadd.f32 %v2356_v13, %v2343_v14  ;;  %v2736_v0 = vadd.f32 %v7803_v61, %v2715_v63  ;;  %v2649_v49 = vmul.f32 %v7763_v11, %v6011_v3  ;;  %v7808_v63 = vld [vmem:[#allocation96_spill] sm:$0xff] }
 0x22e   : > { %v2674_v36 = vadd.f32 %v7804_v48, %v2653_v57  ;;  %v2636_v5 = vadd.f32 %v2628_v6, %v2615_v47  ;;  %v2670_v16 = vmul.f32 %v6326_v51, %v5997_v45  ;;  %v2398_v23 = vmul.f32 %v6532_v59, %v5889_v29  ;;  %v7809_v57 = vld [vmem:[#allocation101_spill] sm:$0xff] }
 0x22f   : > { %v2654_v43 = vadd.f32 %v7805_v12, %v2633_v17  ;;  %v2385_v38 = vadd.f32 %v2377_v19, %v2364_v22  ;;  %v2757_v35 = vadd.f32 %v7806_v7, %v2736_v0  ;;  %v2691_v6 = vmul.f32 %v7694_v37, %v5999_v10  ;;  %v3240_v47 = vld [vmem:[#allocation2 + $0x54] sm:$0xff]  ;;  %v3241_v22 = vld [vmem:[#allocation2 + $0x62] sm:$0xff] }
 0x230   : > { %v2695_v1 = vadd.f32 %v7807_v31, %v2674_v36  ;;  %v2657_v60 = vadd.f32 %v2649_v49, %v2636_v5  ;;  %v2419_v13 = vmul.f32 %v6538_v24, %v5915_v4  ;;  %v2440_v56 = vmul.f32 %v6546_v20, %v5940_v44  ;;  %v7810_v0 = vld [vmem:[#allocation155_spill] sm:$0xff] }
 0x231   : > { %v2675_v14 = vadd.f32 %v2667_v42, %v2654_v43  ;;  %v2406_v11 = vadd.f32 %v2398_v23, %v2385_v38  ;;  %v2778_v15 = vadd.f32 %v7808_v63, %v2757_v35  ;;  %v2709_v9 = vmul.f32 %v3240_v47, %v7762_v34  ;;  %v3242_v42 = vld [vmem:[#allocation2 + $0x63] sm:$0xff]  ;;  %v6628_v35 = vld [vmem:[#allocation2 + $0x93] sm:$0xff] }
 0x232   : > { %v2716_v32 = vadd.f32 %v7809_v57, %v2695_v1  ;;  %v2678_v17 = vadd.f32 %v2670_v16, %v2657_v60  ;;  %v2730_v37 = vmul.f32 %v3241_v22, %v7769_v53  ;;  %v2751_v19 = vmul.f32 %v3242_v42, %v7775_v18  ;;  %v7811_v38 = vld [vmem:[#allocation51_spill] sm:$0xff]  ;;  %v7812_v1 = vld [vmem:[#allocation57_spill] sm:$0xff]  ;;  %v7816_v47 = vld [vmem:[#allocation72_spill] sm:$0xff] }
 0x233   : > { %v2696_v21 = vadd.f32 %v2688_v2, %v2675_v14  ;;  %v2427_v61 = vadd.f32 %v2419_v13, %v2406_v11  ;;  %2786 = vst [vmem:[%s5147_s26 + $0x1] sm:$0xff] %v2778_v15  ;;  %v2712_v5 = vmul.f32 %v6340_v26, %v7762_v34  ;;  %v2252_v49 = vmul.f32 %v6461_v46, %v7781_v33  ;;  %v7813_v11 = vld [vmem:[#allocation27_spill] sm:$0xff] }
 0x234   : > { %v2737_v48 = vadd.f32 %v7810_v0, %v2716_v32  ;;  %v2699_v36 = vadd.f32 %v2691_v6, %v2678_v17  ;;  %v2733_v2 = vmul.f32 %v6434_v8, %v7769_v53  ;;  %v2461_v16 = vmul.f32 %v6559_v39, %v7766_v62  ;;  %v7815_v15 = vld [vmem:[#allocation75_spill] sm:$0xff] }
 0x235   : > { %v2717_v12 = vadd.f32 %v2709_v9, %v2696_v21  ;;  %v2448_v43 = vadd.f32 %v2440_v56, %v2427_v61  ;;  %v2754_v31 = vmul.f32 %v6628_v35, %v7775_v18  ;;  %v2260_v60 = vadd.f32 %v2252_v49, %v7812_v1  ;;  %v7814_v56 = vld [vmem:[#allocation188_spill] sm:$0xff]  ;;  %v7818_v49 = vld [vmem:[#allocation29_spill] sm:$0xff] }
 0x236   : > { %v2758_v23 = vadd.f32 %v7811_v38, %v2737_v48  ;;  %v2720_v7 = vadd.f32 %v2712_v5, %v2699_v36  ;;  %v2294_v33 = vmul.f32 %v6532_v59, %v6187_v58  ;;  %v2482_v13 = vmul.f32 %v6573_v50, %v7813_v11  ;;  %v3244_v58 = vld [vmem:[#allocation2 + $0xb1] sm:$0xff] }
 0x237   : > { %v2738_v6 = vadd.f32 %v2730_v37, %v2717_v12  ;;  %v2469_v14 = vadd.f32 %v2461_v16, %v2448_v43  ;;  %v2772_v57 = vmul.f32 %v7815_v15, %v7788_v52  ;;  %v2281_v9 = vadd.f32 %v7816_v47, %v2260_v60  ;;  %v7817_v59 = vld [vmem:[#allocation128_spill] sm:$0xff]  ;;  %v6649_v5 = vld [vmem:[#allocation2 + $0xb2] sm:$0xff] }
 0x238   : > { %v2779_v63 = vadd.f32 %v7814_v56, %v2758_v23  ;;  %v2741_v32 = vadd.f32 %v2733_v2, %v2720_v7  ;;  %v2775_v21 = vmul.f32 %v6461_v46, %v7788_v52  ;;  %v2503_v37 = vmul.f32 %v3244_v58, %v7817_v59  ;;  %v6654_v38 = vld [vmem:[#allocation2 + $0xb3] sm:$0xff]  ;;  %v7819_v23 = vld [vmem:[#allocation100_spill] sm:$0xff] }
 0x239   : > { %v2759_v17 = vadd.f32 %v2751_v19, %v2738_v6  ;;  %v2490_v22 = vadd.f32 %v2482_v13, %v2469_v14  ;;  %v2302_v61 = vadd.f32 %v2294_v33, %v2281_v9  ;;  %v2315_v0 = vmul.f32 %v6538_v24, %v5885_v25  ;;  %v6661_v1 = vld [vmem:[#allocation2 + $0xb4] sm:$0xff] }
 0x23a   : > { %2787 = vst [vmem:[%s5147_s26 + $0x9] sm:$0xff] %v2779_v63  ;;  %v2762_v42 = vadd.f32 %v2754_v31, %v2741_v32  ;;  %v2336_v48 = vmul.f32 %v6546_v20, %v5887_v27  ;;  %v2524_v12 = vmul.f32 %v6649_v5, %v7818_v49  ;;  %v2545_v7 = vmul.f32 %v6654_v38, %v7819_v23  ;;  %v3248_v13 = vld [vmem:[#allocation2 + $0xb5] sm:$0xff]  ;;  %v3249_v32 = vld [vmem:[#allocation2 + $0x83] sm:$0xff] }
 0x23b   : > { %v2780_v36 = vadd.f32 %v2772_v57, %v2759_v17  ;;  %v2511_v19 = vadd.f32 %v2503_v37, %v2490_v22  ;;  %v2323_v43 = vadd.f32 %v2315_v0, %v2302_v61  ;;  %v2357_v27 = vmul.f32 %v6559_v39, %v5901_v54 }
 0x23c   : > { %v2783_v2 = vadd.f32 %v2775_v21, %v2762_v42  ;;  %v2566_v60 = vmul.f32 %v6661_v1, %v7742_v30  ;;  %v2378_v33 = vmul.f32 %v6573_v50, %v6074_v55  ;;  %v2587_v56 = vmul.f32 %v3248_v13, %v7745_v40 }
 0x23d   : > { %2788 = vst [vmem:[%s5147_s26 + $0x11] sm:$0xff] %v2780_v36  ;;  %v2532_v16 = vadd.f32 %v2524_v12, %v2511_v19  ;;  %v2344_v25 = vadd.f32 %v2336_v48, %v2323_v43  ;;  %v2399_v63 = vmul.f32 %v3244_v58, %v5889_v29  ;;  %v2608_v54 = vmul.f32 %v6326_v51, %v5995_v28  ;;  %v3250_v36 = vld [vmem:[#allocation2 + $0xc1] sm:$0xff] }
 0x23e   : > { %2791 = vst [vmem:[%s5147_s26 + $0x29] sm:$0xff] %v2783_v2  ;;  %v2629_v47 = vmul.f32 %v3249_v32, %v5983_v41  ;;  %v2420_v17 = vmul.f32 %v6649_v5, %v5915_v4  ;;  %v2441_v21 = vmul.f32 %v6654_v38, %v5940_v44  ;;  %v2650_v29 = vmul.f32 %v6340_v26, %v6011_v3  ;;  %v3251_v2 = vld [vmem:[#allocation2 + $0xc2] sm:$0xff] }
 0x23f   : > { %v2553_v31 = vadd.f32 %v2545_v7, %v2532_v16  ;;  %v2365_v6 = vadd.f32 %v2357_v27, %v2344_v25  ;;  %v2462_v51 = vmul.f32 %v6661_v1, %v7766_v62  ;;  %v2671_v42 = vmul.f32 %v6434_v8, %v5997_v45  ;;  %v3252_v27 = vld [vmem:[#allocation2 + $0xc3] sm:$0xff] }
 0x240   : > { %v2692_v4 = vmul.f32 %v6628_v35, %v5999_v10  ;;  %v2483_v0 = vmul.f32 %v3248_v13, %v7813_v11  ;;  %v2504_v19 = vmul.f32 %v3250_v36, %v7817_v59  ;;  %v2713_v12 = vmul.f32 %v6461_v46, %v7762_v34 }
 0x241   : > { %v2574_v14 = vadd.f32 %v2566_v60, %v2553_v31  ;;  %v2386_v15 = vadd.f32 %v2378_v33, %v2365_v6  ;;  %v2525_v43 = vmul.f32 %v3251_v2, %v7818_v49  ;;  %v2734_v7 = vmul.f32 %v6538_v24, %v7769_v53  ;;  %v3253_v33 = vld [vmem:[#allocation2 + $0xc4] sm:$0xff] }
 0x242   : > { %v2755_v11 = vmul.f32 %v6546_v20, %v7775_v18  ;;  %v2546_v59 = vmul.f32 %v3252_v27, %v7819_v23  ;;  %v2567_v6 = vmul.f32 %v3253_v33, %v7742_v30  ;;  %v2776_v49 = vmul.f32 %v6559_v39, %v7788_v52 }
 0x243   : > { %v2595_v57 = vadd.f32 %v2587_v56, %v2574_v14  ;;  %v2407_v9 = vadd.f32 %v2399_v63, %v2386_v15  ;;  %v3254_v56 = vld [vmem:[#allocation2 + $0xc5] sm:$0xff]  ;;  %v2630_v23 = vmul.f32 %v6628_v35, %v5983_v41  ;;  %v2714_v41 = vmul.f32 %v6559_v39, %v7762_v34 }
 0x244   : > { %v2588_v63 = vmul.f32 %v3254_v56, %v7745_v40  ;;  %v2672_v40 = vmul.f32 %v6538_v24, %v5997_v45  ;;  %v2756_v45 = vmul.f32 %v6654_v38, %v7775_v18  ;;  %v2777_v39 = vmul.f32 %v6661_v1, %v7788_v52 }
 0x245   : > { %v2616_v55 = vadd.f32 %v2608_v54, %v2595_v57  ;;  %v2428_v50 = vadd.f32 %v2420_v17, %v2407_v9  ;;  %v2609_v54 = vmul.f32 %v6434_v8, %v5995_v28  ;;  %v2693_v17 = vmul.f32 %v6546_v20, %v5999_v10 }
 0x247   : > { %v2637_v22 = vadd.f32 %v2629_v47, %v2616_v55  ;;  %v2449_v58 = vadd.f32 %v2441_v21, %v2428_v50  ;;  %v2651_v47 = vmul.f32 %v6461_v46, %v6011_v3  ;;  %v2735_v55 = vmul.f32 %v6649_v5, %v7769_v53 }
 0x249   : > { %v2658_v37 = vadd.f32 %v2650_v29, %v2637_v22  ;;  %v2470_v61 = vadd.f32 %v2462_v51, %v2449_v58 }
 0x24b   : > { %v2679_v48 = vadd.f32 %v2671_v42, %v2658_v37  ;;  %v2491_v44 = vadd.f32 %v2483_v0, %v2470_v61 }
 0x24d   : > { %v2700_v26 = vadd.f32 %v2692_v4, %v2679_v48  ;;  %v2512_v62 = vadd.f32 %v2504_v19, %v2491_v44 }
 0x24f   : > { %v2721_v16 = vadd.f32 %v2713_v12, %v2700_v26  ;;  %v2533_v25 = vadd.f32 %v2525_v43, %v2512_v62 }
 0x251   : > { %v2742_v31 = vadd.f32 %v2734_v7, %v2721_v16  ;;  %v2554_v60 = vadd.f32 %v2546_v59, %v2533_v25 }
 0x253   : > { %v2763_v14 = vadd.f32 %v2755_v11, %v2742_v31  ;;  %v2575_v13 = vadd.f32 %v2567_v6, %v2554_v60 }
 0x255   : > { %v2784_v15 = vadd.f32 %v2776_v49, %v2763_v14  ;;  %v2596_v57 = vadd.f32 %v2588_v63, %v2575_v13 }
 0x257   : > { %2792 = vst [vmem:[%s5147_s26 + $0x31] sm:$0xff] %v2784_v15  ;;  %v2617_v30 = vadd.f32 %v2609_v54, %v2596_v57 }
 0x259   : > { %v2638_v32 = vadd.f32 %v2630_v23, %v2617_v30 }
 0x25b   : > { %v2659_v9 = vadd.f32 %v2651_v47, %v2638_v32 }
 0x25d   : > { %v2680_v28 = vadd.f32 %v2672_v40, %v2659_v9 }
 0x25f   : > { %v2701_v8 = vadd.f32 %v2693_v17, %v2680_v28 }
 0x261   : > { %v2722_v35 = vadd.f32 %v2714_v41, %v2701_v8 }
 0x263   : > { %v2743_v3 = vadd.f32 %v2735_v55, %v2722_v35 }
 0x265   : > { %v2764_v10 = vadd.f32 %v2756_v45, %v2743_v3 }
 0x267   : > { %v2785_v46 = vadd.f32 %v2777_v39, %v2764_v10 }
 0x269   : > { %2793 = vst [vmem:[%s5147_s26 + $0x39] sm:$0xff] %v2785_v46 }
 0x26a   : > { %3410 = shalt.err (!%p3407_p0)
}
 0x26b   : > { %s3411_s10 = scalar_lea.hbm %s6724_s12, 1152  ;;  %s3415_s9 = scalar_lea.hbm %s6779_s5, 2304 }
 0x26c   : > { %p3412_p4 = scmp.ne.s32.totalorder %s6724_s12, %s3411_s10  ;;  %p3416_p12 = scmp.lt.u32.totalorder %s6724_s12, %s6779_s5 }
 0x26d   : > { %p3417_p1 = scmp.lt.u32.totalorder %s3415_s9, %s3411_s10  ;;  %p3419_p8 = scmp.lt.u32.totalorder %s3411_s10, %s6724_s12 }
 0x26e   : > { %p3413_p13 = pnand %p3412_p4, %p3711_p5 }
 0x26f   : > { %p3418_p11 = por %p3417_p1, %p3416_p12 }
 0x270   : > { %p3414_p2 = pneg %p3413_p13 }
 0x271   : > { %p3420_p6 = por %p3419_p8, %p3418_p11 }
 0x273   : > { %p3421_p10 = pnand %p3420_p6, %p3414_p2 }
 0x275   : > { %3424 = shalt.err (!%p3421_p10)
}
 0x276   : > { %s3498_s26 = smov 128   ;;  %s3499_s30 = smov 8  }
 0x277   : > { %3063 = dma.vmem_to_hbm [thread:$0]  (%p3711_p5), %s6717_s28, 1152, %s6724_s12, %s2795_s18, %s3498_s26, %s3498_s26, %s3499_s30  }
 0x278 PF: > { %s7820_s11 = sld [smem:[#allocation18_spill]]  ;;  %s7821_s13 = sld [smem:[#allocation19_spill]] }
 0x279   : > { %p7823_p7 = scmp.ge.s32.totalorder %s3487_s23, 2 }
 0x27e   : > { %s2824_s29 = sand.u32 1, %s7820_s11   ;;  %p7822_p3 = scmp.ne.s32.totalorder %s7821_s13, 0 }
 0x27f   : > { %s2825_s21 = scalar_lea.sflag [#allocation6], %s2824_s29 }
 0x280   : > { %p3083_p9 = pnand %p7823_p7, %p7822_p3 }
 0x282   : > { %3462 = dma.done.wait (!%p3083_p9), %s2825_s21, 1152  }
 0x283   : > { %3464 = vsyncadd (!%p3083_p9), %s2825_s21, 4294966144  ;;  %s23_s23 = sadd.s32 1, %s3487_s23   ;;  %s7824_s18 = smov %s3471_s19 }
 0x284   : > { %p20_p0 = scmp.ge.s32.totalorder %s23_s23, 4   ;;  %s7825_s19 = smov %s3475_s20 }
 0x285   : > { %s7826_s20 = smov %s3723_s6  ;;  %s7827_s21 = smov %s3483_s22 }
 0x286   : > { %s7828_s22 = smov %s7830_s24  ;;  %22 = sbr.rel (!%p20_p0) target bundleno = 8 (0x8), region = 155 }
 0x28d   :  { %2830 = vsyncpa [#allocation5], 1 }
 0x28e   :  { %2832 = vsyncpa [#allocation5 + $0x1], 1 }
 0x28f   :  { %2833 = vsyncpa [#allocation8], 1 }
 0x290   :  { %2834 = vsyncpa [#allocation11], 1 }
 0x291   :  { %2835 = vsyncpa [#allocation6], 1 }
 0x292   :  { %2837 = vsyncpa [#allocation6 + $0x1], 1 }

</bundles_post_ra>
